<compile_context>
chip_gen: v7x
topology: tpu7x:2x2x1
jax: 0.10.0
libtpu: 0.0.40
codegen_flags: <defaults>
</compile_context>

<pallas_src>
import functools

import jax
import jax.numpy as jnp
from jax.experimental import pallas as pl
from jax.experimental.pallas import tpu as pltpu

PARAM_DTYPE = jnp.bfloat16     # weights / tables / tokens
ACT_DTYPE = jnp.bfloat16       # activations between kernels


def _pick_vmem_limit():
    # v5e/v6e: 128 MiB physical -> ~96 MiB; v7x: 64 MiB physical -> 48 MiB.
    try:
        info = pltpu.get_tpu_info()
        cap = getattr(info, "vmem_capacity_bytes", None)
        if cap:
            return int(min(cap * 3 // 4, 100 * 1024 * 1024))
    except Exception:
        pass
    return 48 * 1024 * 1024   # conservative fallback, safe on v7x


VMEM_LIMIT = _pick_vmem_limit()


def _round_up(x, m):
    return ((x + m - 1) // m) * m


def _pad_rows(x2, mp):
    m = x2.shape[0]
    return x2 if mp == m else jnp.pad(x2, ((0, mp - m), (0, 0)))


def _row_block(m):
    # Row tiles are multiples of 16 (bf16 packs 16 sublanes/vreg), capped at
    # 512 so double-buffered blocks amortize grid-step overhead on v5e/v6e
    # while staying inside v7x's smaller VMEM.
    if m >= 512:
        return 512
    return _round_up(max(m, 1), 16)


# ----------------------------- Pallas kernels -----------------------------

def _linear_kernel(x_ref, w_ref, b_ref, o_ref, acc_ref, *, activation):
    @pl.when(pl.program_id(2) == 0)
    def _():
        acc_ref[...] = jnp.zeros_like(acc_ref)

    acc_ref[...] += jnp.dot(x_ref[...], w_ref[...],
                            preferred_element_type=jnp.float32)

    @pl.when(pl.program_id(2) == pl.num_programs(2) - 1)
    def _():
        y = acc_ref[...] + b_ref[...].astype(jnp.float32)
        if activation == "gelu":
            y = jax.nn.gelu(y)
        elif activation == "relu":
            y = jnp.maximum(y, 0.0)
        o_ref[...] = y.astype(o_ref.dtype)


def pallas_linear(x, w, b, activation=None):
    """Tiled y = act(x @ w + b).  x: (..., K) bf16, w: (K, N) bf16, b: (N,)."""
    lead = x.shape[:-1]
    K = x.shape[-1]
    N = w.shape[-1]
    x2 = x.reshape(-1, K)
    M = x2.shape[0]

    bm = _row_block(M)
    bn = N if N <= 512 else 512      # wide N tiles -> activation block read once
    bk = K if K <= 1024 else 1024
    Mp, Np, Kp = _round_up(M, bm), _round_up(N, bn), _round_up(K, bk)

    x2p = jnp.pad(x2, ((0, Mp - M), (0, Kp - K))) if (Mp, Kp) != (M, K) else x2
    wp = jnp.pad(w, ((0, Kp - K), (0, Np - N))) if (Kp, Np) != (K, N) else w
    bp = (jnp.pad(b, (0, Np - N)) if Np != N else b).reshape(1, Np)

    grid = (Mp // bm, Np // bn, Kp // bk)
    out = pl.pallas_call(
        functools.partial(_linear_kernel, activation=activation),
        out_shape=jax.ShapeDtypeStruct((Mp, Np), x.dtype),
        grid=grid,
        in_specs=[pl.BlockSpec((bm, bk), lambda i, j, k: (i, k)),
                  pl.BlockSpec((bk, bn), lambda i, j, k: (k, j)),
                  pl.BlockSpec((1, bn), lambda i, j, k: (0, j))],
        out_specs=pl.BlockSpec((bm, bn), lambda i, j, k: (i, j)),
        scratch_shapes=[pltpu.VMEM((bm, bn), jnp.float32)],
        compiler_params=pltpu.CompilerParams(
            dimension_semantics=("parallel", "parallel", "arbitrary"),
            vmem_limit_bytes=VMEM_LIMIT),
    )(x2p, wp, bp)
    return out[:M, :N].reshape(lead + (N,))


def _layernorm_kernel(x_ref, g_ref, b_ref, o_ref):
    x = x_ref[...].astype(jnp.float32)
    mu = jnp.mean(x, axis=-1, keepdims=True)
    var = jnp.mean(jnp.square(x - mu), axis=-1, keepdims=True)
    xn = (x - mu) * jax.lax.rsqrt(var + 1e-5)
    o_ref[...] = (xn * g_ref[...].astype(jnp.float32)
                  + b_ref[...].astype(jnp.float32)).astype(o_ref.dtype)


def pallas_layernorm(x, g, b):
    lead = x.shape[:-1]
    D = x.shape[-1]
    x2 = x.reshape(-1, D)
    M = x2.shape[0]
    bm = _row_block(M)
    Mp = _round_up(M, bm)
    out = pl.pallas_call(
        _layernorm_kernel,
        out_shape=jax.ShapeDtypeStruct((Mp, D), x.dtype),
        grid=(Mp // bm,),
        in_specs=[pl.BlockSpec((bm, D), lambda i: (i, 0)),
                  pl.BlockSpec((1, D), lambda i: (0, 0)),
                  pl.BlockSpec((1, D), lambda i: (0, 0))],
        out_specs=pl.BlockSpec((bm, D), lambda i: (i, 0)),
        compiler_params=pltpu.CompilerParams(
            dimension_semantics=("parallel",),
            vmem_limit_bytes=VMEM_LIMIT),
    )(_pad_rows(x2, Mp), g.reshape(1, D), b.reshape(1, D))
    return out[:M].reshape(lead + (D,))


def _temporal_embed_kernel(x_ref, w_ref, b_ref, a_ref, o_ref):
    # scalar series -> d_model via VPU broadcast-multiply, fused with pos+mod.
    x = x_ref[0].astype(jnp.float32)                       # (S, 1)
    y = x * w_ref[...].astype(jnp.float32) + b_ref[...].astype(jnp.float32)
    y = y + a_ref[...].astype(jnp.float32)
    o_ref[0] = y.astype(o_ref.dtype)


def pallas_temporal_embed_posmod(x, w, b, addend):
    """x: (B, S) scalar series; w: (1, D); b: (D,); addend: (S, D)."""
    B, S = x.shape
    D = w.shape[-1]
    x3 = x[..., None].astype(jnp.float32)                  # (B, S, 1)
    return pl.pallas_call(
        _temporal_embed_kernel,
        out_shape=jax.ShapeDtypeStruct((B, S, D), addend.dtype),
        grid=(B,),
        in_specs=[pl.BlockSpec((1, S, 1), lambda i: (i, 0, 0)),
                  pl.BlockSpec((1, D), lambda i: (0, 0)),
                  pl.BlockSpec((1, D), lambda i: (0, 0)),
                  pl.BlockSpec((S, D), lambda i: (0, 0))],
        out_specs=pl.BlockSpec((1, S, D), lambda i: (i, 0, 0)),
        compiler_params=pltpu.CompilerParams(
            dimension_semantics=("parallel",)),
    )(x3, w, b.reshape(1, D), addend)


def _img_embed_kernel(x_ref, w_ref, b_ref, a_ref, o_ref):
    # patch embedding + pos+mod add fused (addend broadcast over batch).
    y = jnp.dot(x_ref[0], w_ref[...], preferred_element_type=jnp.float32)
    y = y + b_ref[...].astype(jnp.float32) + a_ref[...].astype(jnp.float32)
    o_ref[0] = y.astype(o_ref.dtype)


def pallas_img_embed_posmod(patches, w, b, addend):
    """patches: (B, P, pdim); w: (pdim, D); b: (D,); addend: (P, D)."""
    B, P, pdim = patches.shape
    D = w.shape[-1]
    return pl.pallas_call(
        _img_embed_kernel,
        out_shape=jax.ShapeDtypeStruct((B, P, D), addend.dtype),
        grid=(B,),
        in_specs=[pl.BlockSpec((1, P, pdim), lambda i: (i, 0, 0)),
                  pl.BlockSpec((pdim, D), lambda i: (0, 0)),
                  pl.BlockSpec((1, D), lambda i: (0, 0)),
                  pl.BlockSpec((P, D), lambda i: (0, 0))],
        out_specs=pl.BlockSpec((1, P, D), lambda i: (i, 0, 0)),
        compiler_params=pltpu.CompilerParams(
            dimension_semantics=("parallel",),
            vmem_limit_bytes=VMEM_LIMIT),
    )(patches, w, b.reshape(1, D), addend)


def _attn_kernel(q_ref, k_ref, v_ref, m_ref, o_ref, w_ref, wacc_ref, *, scale):
    # One (batch, head) pair per grid step.  bf16 operands into the MXU,
    # f32 scores/softmax only.  Head-mean attention weights accumulate in a
    # f32 VMEM scratch over the (arbitrary) head axis.
    h = pl.program_id(1)

    @pl.when(h == 0)
    def _():
        wacc_ref[...] = jnp.zeros_like(wacc_ref)

    q = q_ref[0, 0, 0]                                      # (S, dh) bf16
    k = k_ref[0, 0, 0]
    v = v_ref[0, 0, 0]
    s = jax.lax.dot_general(q, k, (((1,), (1,)), ((), ())),
                            preferred_element_type=jnp.float32) * scale
    s = s + m_ref[0]                                        # (1, S) key bias
    s = s - jnp.max(s, axis=-1, keepdims=True)
    p = jnp.exp(s)
    p = p * pl.reciprocal(jnp.sum(p, axis=-1, keepdims=True), approx=True)
    wacc_ref[...] += p
    o_ref[0, 0] = jnp.dot(p.astype(v.dtype), v,
                          preferred_element_type=jnp.float32).astype(o_ref.dtype)

    @pl.when(h == pl.num_programs(1) - 1)
    def _():
        w_ref[0] = (wacc_ref[...] * (1.0 / pl.num_programs(1))).astype(w_ref.dtype)


def pallas_attention_block(qkv_heads, key_bias, weights_dtype=jnp.bfloat16):
    """qkv_heads: (3, B, H, S, dh) bf16; key_bias: (B, S) additive bias."""
    # TODO(synk): flash-style KV-tiled variant for long sequences (v7x VMEM).
    _, B, H, S, dh = qkv_heads.shape
    bias = key_bias[:, None, :].astype(jnp.float32)          # (B, 1, S)
    o, w = pl.pallas_call(
        functools.partial(_attn_kernel, scale=1.0 / (dh ** 0.5)),
        out_shape=(jax.ShapeDtypeStruct((B, H, S, dh), qkv_heads.dtype),
                   jax.ShapeDtypeStruct((B, S, S), weights_dtype)),
        grid=(B, H),
        in_specs=[pl.BlockSpec((1, 1, 1, S, dh), lambda b, h: (0, b, h, 0, 0)),
                  pl.BlockSpec((1, 1, 1, S, dh), lambda b, h: (1, b, h, 0, 0)),
                  pl.BlockSpec((1, 1, 1, S, dh), lambda b, h: (2, b, h, 0, 0)),
                  pl.BlockSpec((1, 1, S), lambda b, h: (b, 0, 0))],
        out_specs=(pl.BlockSpec((1, 1, S, dh), lambda b, h: (b, h, 0, 0)),
                   pl.BlockSpec((1, S, S), lambda b, h: (b, 0, 0))),
        scratch_shapes=[pltpu.VMEM((S, S), jnp.float32)],
        compiler_params=pltpu.CompilerParams(
            dimension_semantics=("parallel", "arbitrary"),
            vmem_limit_bytes=VMEM_LIMIT),
    )(qkv_heads, qkv_heads, qkv_heads, bias)
    return o, w


def _proj_res_ln_kernel(a_ref, x_ref, w_ref, b_ref, g_ref, bt_ref, o_ref):
    # LN1(x + attn @ Wo + bo) — fused output projection + residual + LayerNorm.
    y = jnp.dot(a_ref[...], w_ref[...], preferred_element_type=jnp.float32)
    y = y + b_ref[...].astype(jnp.float32)
    z = x_ref[...].astype(jnp.float32) + y
    mu = jnp.mean(z, axis=-1, keepdims=True)
    var = jnp.mean(jnp.square(z - mu), axis=-1, keepdims=True)
    zn = (z - mu) * jax.lax.rsqrt(var + 1e-5)
    o_ref[...] = (zn * g_ref[...].astype(jnp.float32)
                  + bt_ref[...].astype(jnp.float32)).astype(o_ref.dtype)


def pallas_proj_residual_ln(attn, x, w, b, g, beta):
    lead = x.shape[:-1]
    D = x.shape[-1]
    a2, x2 = attn.reshape(-1, D), x.reshape(-1, D)
    M = x2.shape[0]
    bm = _row_block(M)
    Mp = _round_up(M, bm)
    out = pl.pallas_call(
        _proj_res_ln_kernel,
        out_shape=jax.ShapeDtypeStruct((Mp, D), x.dtype),
        grid=(Mp // bm,),
        in_specs=[pl.BlockSpec((bm, D), lambda i: (i, 0)),
                  pl.BlockSpec((bm, D), lambda i: (i, 0)),
                  pl.BlockSpec((D, D), lambda i: (0, 0)),
                  pl.BlockSpec((1, D), lambda i: (0, 0)),
                  pl.BlockSpec((1, D), lambda i: (0, 0)),
                  pl.BlockSpec((1, D), lambda i: (0, 0))],
        out_specs=pl.BlockSpec((bm, D), lambda i: (i, 0)),
        input_output_aliases={1: 0},            # residual x buffer reused as out
        compiler_params=pltpu.CompilerParams(
            dimension_semantics=("parallel",),
            vmem_limit_bytes=VMEM_LIMIT),
    )(_pad_rows(a2, Mp), _pad_rows(x2, Mp),
      w, b.reshape(1, D), g.reshape(1, D), beta.reshape(1, D))
    return out[:M].reshape(lead + (D,))


def _ffn_block_kernel(x_ref, w1_ref, b1_ref, w2_ref, b2_ref, g_ref, bt_ref,
                      o_ref, acc_ref, *, activation):
    # LN2(x + W2 @ act(W1 @ x + b1) + b2), d_ff tiled over grid axis 1 — the
    # (bm, d_ff) intermediate never exists; acc is a (bm, D) f32 scratch.
    j = pl.program_id(1)

    @pl.when(j == 0)
    def _():
        acc_ref[...] = jnp.zeros_like(acc_ref)

    x = x_ref[...]
    h = jnp.dot(x, w1_ref[...], preferred_element_type=jnp.float32)
    h = h + b1_ref[...].astype(jnp.float32)
    if activation == "gelu":
        h = jax.nn.gelu(h)
    elif activation == "relu":
        h = jnp.maximum(h, 0.0)
    acc_ref[...] += jnp.dot(h.astype(x.dtype), w2_ref[...],
                            preferred_element_type=jnp.float32)

    @pl.when(j == pl.num_programs(1) - 1)
    def _():
        z = x.astype(jnp.float32) + acc_ref[...] + b2_ref[...].astype(jnp.float32)
        mu = jnp.mean(z, axis=-1, keepdims=True)
        var = jnp.mean(jnp.square(z - mu), axis=-1, keepdims=True)
        zn = (z - mu) * jax.lax.rsqrt(var + 1e-5)
        o_ref[...] = (zn * g_ref[...].astype(jnp.float32)
                      + bt_ref[...].astype(jnp.float32)).astype(o_ref.dtype)


def pallas_ffn_block(x, w1, b1, w2, b2, g, beta, activation):
    lead = x.shape[:-1]
    D = x.shape[-1]
    F = w1.shape[-1]
    x2 = x.reshape(-1, D)
    M = x2.shape[0]
    bm = _row_block(M)
    Mp = _round_up(M, bm)
    bf = F if F <= 512 else 512
    Fp = _round_up(F, bf)
    w1p = jnp.pad(w1, ((0, 0), (0, Fp - F))) if Fp != F else w1
    b1p = (jnp.pad(b1, (0, Fp - F)) if Fp != F else b1).reshape(1, Fp)
    w2p = jnp.pad(w2, ((0, Fp - F), (0, 0))) if Fp != F else w2
    out = pl.pallas_call(
        functools.partial(_ffn_block_kernel, activation=activation),
        out_shape=jax.ShapeDtypeStruct((Mp, D), x.dtype),
        grid=(Mp // bm, Fp // bf),
        in_specs=[pl.BlockSpec((bm, D), lambda i, j: (i, 0)),
                  pl.BlockSpec((D, bf), lambda i, j: (0, j)),
                  pl.BlockSpec((1, bf), lambda i, j: (0, j)),
                  pl.BlockSpec((bf, D), lambda i, j: (j, 0)),
                  pl.BlockSpec((1, D), lambda i, j: (0, 0)),
                  pl.BlockSpec((1, D), lambda i, j: (0, 0)),
                  pl.BlockSpec((1, D), lambda i, j: (0, 0))],
        out_specs=pl.BlockSpec((bm, D), lambda i, j: (i, 0)),
        scratch_shapes=[pltpu.VMEM((bm, D), jnp.float32)],
        input_output_aliases={0: 0},            # residual x buffer reused as out
        compiler_params=pltpu.CompilerParams(
            dimension_semantics=("parallel", "arbitrary"),
            vmem_limit_bytes=VMEM_LIMIT),
    )(_pad_rows(x2, Mp), w1p, b1p, w2p, b2.reshape(1, D),
      g.reshape(1, D), beta.reshape(1, D))
    return out[:M].reshape(lead + (D,))


def _posmod_dec_kernel(x_ref, a_ref, w_ref, b_ref, o_ref):
    # Second PosModEmb add fused into the decoder-dim projection's prologue.
    z = x_ref[0].astype(jnp.float32) + a_ref[...].astype(jnp.float32)
    y = jnp.dot(z.astype(x_ref.dtype), w_ref[...],
                preferred_element_type=jnp.float32)
    o_ref[0] = (y + b_ref[...].astype(jnp.float32)).astype(o_ref.dtype)


def pallas_posmod_decoder(x, addend, w, b):
    """x: (B, L, D); addend: (L, D); w: (D, d_dec); b: (d_dec,)."""
    B, L, D = x.shape
    N = w.shape[-1]
    return pl.pallas_call(
        _posmod_dec_kernel,
        out_shape=jax.ShapeDtypeStruct((B, L, N), x.dtype),
        grid=(B,),
        in_specs=[pl.BlockSpec((1, L, D), lambda i: (i, 0, 0)),
                  pl.BlockSpec((L, D), lambda i: (0, 0)),
                  pl.BlockSpec((D, N), lambda i: (0, 0)),
                  pl.BlockSpec((1, N), lambda i: (0, 0))],
        out_specs=pl.BlockSpec((1, L, N), lambda i: (i, 0, 0)),
        compiler_params=pltpu.CompilerParams(
            dimension_semantics=("parallel",),
            vmem_limit_bytes=VMEM_LIMIT),
    )(x, addend, w, b.reshape(1, N))


# ------------------------------ parameters ---------------------------------

def build_params(key, cfg):
    D = cfg["d_enc"]
    keys = jax.random.split(key, 64)
    ki = iter(keys)

    def nrm(shape):
        return (jax.random.normal(next(ki), shape, jnp.float32) * 0.02
                ).astype(PARAM_DTYPE)

    def zeros(shape):
        return jnp.zeros(shape, PARAM_DTYPE)

    def ones(shape):
        return jnp.ones(shape, PARAM_DTYPE)

    p = {}
    p["global_token"] = nrm((D,))
    p["temporal_w"] = {c: nrm((1, D)) for c in cfg["temporal_cols"]}
    p["temporal_b"] = {c: zeros((D,)) for c in cfg["temporal_cols"]}
    pdim = cfg["img_c"] * cfg["patch"] * cfg["patch"]
    p["img_w"] = {c: nrm((pdim, D)) for c in cfg["img_cols"]}
    p["img_b"] = {c: zeros((D,)) for c in cfg["img_cols"]}
    p["nlp_table"] = {c: nrm((cfg["vocab"], D)) for c in cfg["nlp_cols"]}
    p["pos_temporal"] = nrm((cfg["seq_len"], D))
    p["pos_img"] = {c: nrm((cfg["num_patches"], D)) for c in cfg["img_cols"]}
    p["pos_nlp"] = {c: nrm((cfg["nlp_len"], D)) for c in cfg["nlp_cols"]}
    p["mod"] = {name: nrm((D,)) for name in
                ["global"] + cfg["temporal_cols"] + cfg["img_cols"] + cfg["nlp_cols"]}
    p["norm1_g"], p["norm1_b"] = ones((D,)), zeros((D,))
    p["norm2_g"], p["norm2_b"] = ones((D,)), zeros((D,))
    layers = []
    for _ in range(cfg["num_layers"]):
        lp = {}
        lp["wqkv"] = nrm((D, 3 * D))           # fused Q/K/V projection
        lp["bqkv"] = zeros((3 * D,))
        lp["wo"] = nrm((D, D))
        lp["bo"] = zeros((D,))
        lp["w1"] = nrm((D, cfg["d_ff"]))
        lp["b1"] = zeros((cfg["d_ff"],))
        lp["w2"] = nrm((cfg["d_ff"], D))
        lp["b2"] = zeros((D,))
        lp["ln1_g"], lp["ln1_b"] = ones((D,)), zeros((D,))
        lp["ln2_g"], lp["ln2_b"] = ones((D,)), zeros((D,))
        layers.append(lp)
    p["layers"] = layers
    p["mask_token_temporal"] = nrm((D,))
    p["mask_token_img"] = {c: nrm((D,)) for c in cfg["img_cols"]}
    p["mask_token_nlp"] = {c: nrm((D,)) for c in cfg["nlp_cols"]}
    p["dec_w"] = nrm((D, cfg["d_dec"]))
    p["dec_b"] = zeros((cfg["d_dec"],))
    return p


# ------------------------------ sub-modules --------------------------------

def posmod_addend(params, key, L, cfg):
    """(L, D) positional + modality addend, computed param-side (tiny)."""
    if key == "global" or key in cfg["temporal_cols"]:
        pos = params["pos_temporal"][:L]
    elif key in cfg["img_cols"]:
        pos = params["pos_img"][key][:L]
    else:
        pos = params["pos_nlp"][key][:L]
    return (pos.astype(jnp.float32)
            + params["mod"][key].astype(jnp.float32)[None, :]).astype(ACT_DTYPE)


def embed_and_posmod(params, data_dict, cfg):
    """Embedding + PosModEmb fused per modality."""
    D = cfg["d_enc"]
    B = data_dict[cfg["temporal_cols"][0]].shape[0]
    emb = {}
    # global token: pure-parameter math, broadcast over batch.
    g = (params["global_token"].astype(jnp.float32)[None, :]
         + posmod_addend(params, "global", cfg["seq_len"], cfg).astype(jnp.float32)
         ).astype(ACT_DTYPE)
    emb["global"] = jnp.broadcast_to(g[None], (B, cfg["seq_len"], D))
    for col in cfg["temporal_cols"]:
        emb[col] = pallas_temporal_embed_posmod(
            data_dict[col], params["temporal_w"][col], params["temporal_b"][col],
            posmod_addend(params, col, cfg["seq_len"], cfg))
    for col in cfg["img_cols"]:
        img = data_dict[col]                                   # NCHW
        p = cfg["patch"]
        Bi, C, H, W = img.shape
        patches = img.reshape(Bi, C, H // p, p, W // p, p)
        patches = patches.transpose(0, 2, 4, 1, 3, 5).reshape(
            Bi, (H // p) * (W // p), C * p * p).astype(ACT_DTYPE)
        emb[col] = pallas_img_embed_posmod(
            patches, params["img_w"][col], params["img_b"][col],
            posmod_addend(params, col, patches.shape[1], cfg))
    for col in cfg["nlp_cols"]:
        # gather + pos/mod add left to XLA so it fuses into one op (no extra
        # HBM round trip for a trivial add).
        addend = posmod_addend(params, col, data_dict[col].shape[1], cfg)
        gathered = jnp.take(params["nlp_table"][col], data_dict[col], axis=0)
        emb[col] = (gathered.astype(jnp.float32)
                    + addend[None].astype(jnp.float32)).astype(ACT_DTYPE)
    return emb


def remain_apply(rng, emb, padding_mask_dict, remain_rto, cfg):
    temporal_keys = ["global"] + cfg["temporal_cols"]
    block = jnp.stack([emb[k] for k in temporal_keys], axis=2)     # (B, S, M, D)
    B, S, M, D = block.shape
    idx_dict = {}
    pm = dict(padding_mask_dict)

    def keep_and_revert(k, n, nkeep):
        noise = jax.random.uniform(k, (B, n))
        shuffle = jnp.argsort(noise, axis=1)
        revert = jnp.argsort(shuffle, axis=1)
        return shuffle[:, :nkeep], revert

    k1, k2, k3 = jax.random.split(rng, 3)
    nk_t = max(1, int(S * remain_rto))
    keep_t, rev_t = keep_and_revert(k1, S, nk_t)
    idx_dict["temporal_revert_idx"] = rev_t
    block_remain = jnp.take_along_axis(
        block, jnp.broadcast_to(keep_t[:, :, None, None], (B, nk_t, M, D)), axis=1)

    img_remain, nlp_remain = {}, {}
    for kk, col in zip(jax.random.split(k2, len(cfg["img_cols"])), cfg["img_cols"]):
        P = emb[col].shape[1]
        nk = max(1, int(P * remain_rto))
        keep, rev = keep_and_revert(kk, P, nk)
        idx_dict[f"{col}_revert_idx"] = rev
        img_remain[col] = jnp.take_along_axis(
            emb[col], jnp.broadcast_to(keep[:, :, None], (B, nk, D)), axis=1)
    for kk, col in zip(jax.random.split(k3, len(cfg["nlp_cols"])), cfg["nlp_cols"]):
        L = emb[col].shape[1]
        nk = max(1, int(L * remain_rto))
        keep, rev = keep_and_revert(kk, L, nk)
        idx_dict[f"{col}_revert_idx"] = rev
        nlp_remain[col] = jnp.take_along_axis(
            emb[col], jnp.broadcast_to(keep[:, :, None], (B, nk, D)), axis=1)
        pm[f"{col}_remain_mask"] = jnp.take_along_axis(
            padding_mask_dict[f"{col}_mask"], keep, axis=1)
    return block_remain, img_remain, nlp_remain, idx_dict, pm


def encoder_apply(params, t_block, img_dict, nlp_dict, padding_mask_dict, cfg):
    B, Sk, M, D = t_block.shape
    nhead = cfg["nhead"]
    dh = D // nhead
    parts = [t_block.reshape(B, Sk * M, D)]
    bias_parts = [jnp.zeros((B, Sk * M), jnp.float32)]
    for col in cfg["img_cols"]:
        parts.append(img_dict[col])
        bias_parts.append(jnp.zeros((B, img_dict[col].shape[1]), jnp.float32))
    for col in cfg["nlp_cols"]:
        parts.append(nlp_dict[col])
        m = padding_mask_dict[f"{col}_remain_mask"]
        bias_parts.append(jnp.where(m, -1e9, 0.0).astype(jnp.float32))
    x = jnp.concatenate(parts, axis=1)
    key_bias = jnp.concatenate(bias_parts, axis=1)
    L = x.shape[1]
    wdtype = cfg.get("attn_weights_dtype", jnp.bfloat16)

    weights = {}
    for li, lp in enumerate(params["layers"]):
        qkv = pallas_linear(x, lp["wqkv"], lp["bqkv"])                 # fused Q/K/V
        # relayout to (3, B, H, L, dh) so each head block is a full-extent tile
        qkv_heads = qkv.reshape(B, L, 3, nhead, dh).transpose(2, 0, 3, 1, 4)
        o_h, w = pallas_attention_block(qkv_heads, key_bias, weights_dtype=wdtype)
        attn = o_h.transpose(0, 2, 1, 3).reshape(B, L, D)              # merge heads
        x = pallas_proj_residual_ln(attn, x, lp["wo"], lp["bo"],
                                    lp["ln1_g"], lp["ln1_b"])          # proj+res+LN1
        x = pallas_ffn_block(x, lp["w1"], lp["b1"], lp["w2"], lp["b2"],
                             lp["ln2_g"], lp["ln2_b"], cfg["activation"])  # FFN+res+LN2
        weights[f"layer_{li}"] = w

    idx = Sk * M
    t_enc = x[:, :idx, :].reshape(B, Sk, M, D)
    img_enc, nlp_enc = {}, {}
    for col in cfg["img_cols"]:
        Li = img_dict[col].shape[1]
        img_enc[col] = x[:, idx:idx + Li, :]; idx += Li
    for col in cfg["nlp_cols"]:
        Li = nlp_dict[col].shape[1]
        nlp_enc[col] = x[:, idx:idx + Li, :]; idx += Li
    return t_enc, img_enc, nlp_enc, weights


def revert_apply(params, t_enc, img_enc, nlp_enc, idx_dict, cfg):
    B, Sk, M, D = t_enc.shape
    S = cfg["seq_len"]
    rev_t = idx_dict["temporal_revert_idx"]
    fill = jnp.broadcast_to(params["mask_token_temporal"][None, None, None, :].astype(ACT_DTYPE),
                            (B, S - Sk, M, D))
    full = jnp.concatenate([t_enc, fill], axis=1)
    full = jnp.take_along_axis(
        full, jnp.broadcast_to(rev_t[:, :, None, None], (B, S, M, D)), axis=1)
    out = {}
    for n, col in enumerate(cfg["temporal_cols"]):
        out[col] = full[:, :, n + 1, :]          # drop 'global' (modality 0)
    for col in cfg["img_cols"]:
        rev = idx_dict[f"{col}_revert_idx"]
        P = rev.shape[1]
        kp = img_enc[col].shape[1]
        fl = jnp.broadcast_to(params["mask_token_img"][col][None, None, :].astype(ACT_DTYPE),
                              (B, P - kp, D))
        fi = jnp.concatenate([img_enc[col], fl], axis=1)
        out[col] = jnp.take_along_axis(fi, jnp.broadcast_to(rev[:, :, None], (B, P, D)), axis=1)
    for col in cfg["nlp_cols"]:
        rev = idx_dict[f"{col}_revert_idx"]
        L = rev.shape[1]
        kp = nlp_enc[col].shape[1]
        fl = jnp.broadcast_to(params["mask_token_nlp"][col][None, None, :].astype(ACT_DTYPE),
                              (B, L - kp, D))
        fn = jnp.concatenate([nlp_enc[col], fl], axis=1)
        out[col] = jnp.take_along_axis(fn, jnp.broadcast_to(rev[:, :, None], (B, L, D)), axis=1)
    return out


# ------------------------------ full forward -------------------------------

def mbae_encoder_forward(params, data_input, rng, remain_rto, cfg):
    # to_gpu equivalent: route dict entries
    data_dict, idx_dict, padding_mask_dict = {}, {}, {}
    for k, v in data_input.items():
        if k.endswith("idx"):
            idx_dict[k] = v
        elif k.endswith("mask"):
            padding_mask_dict[k] = v
        else:
            data_dict[k] = v

    emb = embed_and_posmod(params, data_dict, cfg)
    t_block, img_rem, nlp_rem, ridx, padding_mask_dict = remain_apply(
        rng, emb, padding_mask_dict, remain_rto, cfg)
    idx_dict.update(ridx)

    B, Sk, M, D = t_block.shape
    parts = [t_block.reshape(B, -1, D)]
    for col in cfg["img_cols"]:
        parts.append(img_rem[col])
    for col in cfg["nlp_cols"]:
        parts.append(nlp_rem[col])
    flat = jnp.concatenate(parts, axis=1)
    flat = pallas_layernorm(flat, params["norm1_g"], params["norm1_b"])
    idx = Sk * M
    t_block = flat[:, :idx, :].reshape(B, Sk, M, D)
    for col in cfg["img_cols"]:
        L = img_rem[col].shape[1]; img_rem[col] = flat[:, idx:idx + L, :]; idx += L
    for col in cfg["nlp_cols"]:
        L = nlp_rem[col].shape[1]; nlp_rem[col] = flat[:, idx:idx + L, :]; idx += L

    t_enc, img_enc, nlp_enc, enc_w = encoder_apply(
        params, t_block, img_rem, nlp_rem, padding_mask_dict, cfg)

    parts = [t_enc.reshape(B, -1, D)]
    for col in cfg["img_cols"]:
        parts.append(img_enc[col])
    for col in cfg["nlp_cols"]:
        parts.append(nlp_enc[col])
    flat = jnp.concatenate(parts, axis=1)
    flat = pallas_layernorm(flat, params["norm2_g"], params["norm2_b"])
    idx = Sk * M
    t_enc = flat[:, :idx, :].reshape(B, Sk, M, D)
    for col in cfg["img_cols"]:
        L = img_enc[col].shape[1]; img_enc[col] = flat[:, idx:idx + L, :]; idx += L
    for col in cfg["nlp_cols"]:
        L = nlp_enc[col].shape[1]; nlp_enc[col] = flat[:, idx:idx + L, :]; idx += L

    rev = revert_apply(params, t_enc, img_enc, nlp_enc, idx_dict, cfg)

    # NOTE: the original module applies norm2 a second time here (matches spec).
    stacked = jnp.stack([rev[c] for c in cfg["temporal_cols"]], axis=-2)  # (B,S,T,D)
    B2, seq_len, num_mod, D2 = stacked.shape
    flat = stacked.reshape(B2, -1, D2)
    for col in cfg["img_cols"]:
        flat = jnp.concatenate([flat, rev[col]], axis=-2)
    for col in cfg["nlp_cols"]:
        flat = jnp.concatenate([flat, rev[col]], axis=-2)
    flat = pallas_layernorm(flat, params["norm2_g"], params["norm2_b"])
    t_blk = flat[:, :seq_len * num_mod, :].reshape(B2, seq_len, num_mod, D2)
    for n, col in enumerate(cfg["temporal_cols"]):
        rev[col] = t_blk[:, :, n, :]
    idx = seq_len * num_mod
    for col in cfg["img_cols"]:
        L = rev[col].shape[1]; rev[col] = flat[:, idx:idx + L, :]; idx += L
    for col in cfg["nlp_cols"]:
        L = rev[col].shape[1]; rev[col] = flat[:, idx:idx + L, :]; idx += L

    # Final PosModEmb + decoder-dim projection: one fused kernel on the
    # concatenated sequence (posmod add in the prologue), then split per col.
    order = cfg["temporal_cols"] + cfg["img_cols"] + cfg["nlp_cols"]
    lens = [rev[c].shape[1] for c in order]
    cat = jnp.concatenate([rev[c] for c in order], axis=1)
    addend_cat = jnp.concatenate(
        [posmod_addend(params, c, rev[c].shape[1], cfg) for c in order], axis=0)
    dec = pallas_posmod_decoder(cat, addend_cat, params["dec_w"], params["dec_b"])
    result, idx = {}, 0
    for c, L in zip(order, lens):
        result[c] = dec[:, idx:idx + L, :]; idx += L
    return result, enc_w, data_dict, idx_dict, padding_mask_dict


# --------------------------------- main -------------------------------------

if __name__ == "__main__":
    B = 2
    cfg = dict(
        temporal_cols=["temp_a", "temp_b"],
        img_cols=["img_x"],
        nlp_cols=["nlp_x"],
        d_enc=32, d_dec=16, nhead=2, d_ff=64, num_layers=2,
        activation="gelu",
        patch=8, seq_len=8,
        img_c=3, img_h=16, img_w=16,
        num_patches=(16 // 8) * (16 // 8),
        nlp_len=8, vocab=50,
        # bf16 attention-weight writeback (halves the largest per-layer HBM write)
        attn_weights_dtype=jnp.bfloat16,
    )

    root = jax.random.PRNGKey(0)
    kp, kd, kr = jax.random.split(root, 3)
    params = build_params(kp, cfg)

    k1, k1b, k2, k3 = jax.random.split(kd, 4)
    data_input = {
        "temp_a": jax.random.normal(k1, (B, cfg["seq_len"]), jnp.float32),
        "temp_b": jax.random.normal(k1b, (B, cfg["seq_len"]), jnp.float32),
        "img_x": jax.random.normal(k2, (B, cfg["img_c"], cfg["img_h"], cfg["img_w"]),
                                   jnp.float32),
        "nlp_x": jax.random.randint(k3, (B, cfg["nlp_len"]), 0, cfg["vocab"]),
        "nlp_x_mask": jnp.zeros((B, cfg["nlp_len"]), jnp.bool_),
    }

    fwd = jax.jit(functools.partial(mbae_encoder_forward, remain_rto=0.5, cfg=cfg))
    out_dict, enc_w, data_dict, idx_dict, pm_dict = fwd(params, data_input, kr)

    for leaf in jax.tree_util.tree_leaves((out_dict, enc_w, idx_dict, pm_dict)):
        jax.block_until_ready(leaf)

    # quick sanity on shapes implied by the torch forward
    assert out_dict["temp_a"].shape == (B, cfg["seq_len"], cfg["d_dec"])
    assert out_dict["img_x"].shape == (B, cfg["num_patches"], cfg["d_dec"])
    assert out_dict["nlp_x"].shape == (B, cfg["nlp_len"], cfg["d_dec"])
    assert enc_w["layer_0"].shape[0] == B
    print("KERNEL_OK")
</pallas_src>

<mosaic_0001>
module attributes {stable_mosaic.version = 11 : i64} {
  func.func private @main(%arg0: i32) attributes {dimension_semantics = [#tpu.dimension_semantics<core_parallel>], iteration_bounds = array<i64: 2>, tpu.core_type = #tpu.core_type<sc_scalar_subcore>, window_params = []} {
    return
  }
}

module attributes {stable_mosaic.version = 11 : i64} {
  func.func private @main(%arg0: i32) attributes {dimension_semantics = [#tpu.dimension_semantics<core_parallel>], iteration_bounds = array<i64: 2>, tpu.core_type = #tpu.core_type<sc_scalar_subcore>, window_params = []} {
    return
  }
}

module attributes {stable_mosaic.version = 11 : i64} {
  func.func @_temporal_embed_kernel(%arg0: i32, %arg1: memref<1x8x1xf32, #tpu.memory_space<vmem>>, %arg2: memref<1x32xbf16, #tpu.memory_space<vmem>>, %arg3: memref<1x32xbf16, #tpu.memory_space<vmem>>, %arg4: memref<8x32xbf16, #tpu.memory_space<vmem>>, %arg5: memref<1x8x32xbf16, #tpu.memory_space<vmem>>) attributes {dimension_semantics = [#tpu.dimension_semantics<parallel>], iteration_bounds = array<i64: 2>, scalar_prefetch = 0 : i64, scratch_operands = 0 : i64, tpu.core_type = #tpu.core_type<tc>, window_params = [{transform_indices = @transform_0, window_bounds = array<i64: 1, 8, 1>}, {pipeline_mode = #tpu.pipeline_mode<synchronous>, transform_indices = @transform_1, window_bounds = array<i64: 1, 32>}, {pipeline_mode = #tpu.pipeline_mode<synchronous>, transform_indices = @transform_2, window_bounds = array<i64: 1, 32>}, {pipeline_mode = #tpu.pipeline_mode<synchronous>, transform_indices = @transform_3, window_bounds = array<i64: 8, 32>}, {transform_indices = @transform_4, window_bounds = array<i64: 1, 8, 32>}]} {
    %c0 = arith.constant 0 : index
    %c0_0 = arith.constant 0 : index
    %c0_1 = arith.constant 0 : index
    %0 = vector.load %arg1[%c0, %c0_0, %c0_1] : memref<1x8x1xf32, #tpu.memory_space<vmem>>, vector<1x8x1xf32>
    %1 = vector.shape_cast %0 : vector<1x8x1xf32> to vector<8x1xf32>
    %c0_2 = arith.constant 0 : index
    %c0_3 = arith.constant 0 : index
    %2 = vector.load %arg2[%c0_2, %c0_3] : memref<1x32xbf16, #tpu.memory_space<vmem>>, vector<1x32xbf16>
    %3 = arith.extf %2 : vector<1x32xbf16> to vector<1x32xf32>
    %4 = vector.broadcast %1 : vector<8x1xf32> to vector<8x32xf32>
    %5 = vector.broadcast %3 : vector<1x32xf32> to vector<8x32xf32>
    %6 = arith.mulf %4, %5 : vector<8x32xf32>
    %c0_4 = arith.constant 0 : index
    %c0_5 = arith.constant 0 : index
    %7 = vector.load %arg3[%c0_4, %c0_5] : memref<1x32xbf16, #tpu.memory_space<vmem>>, vector<1x32xbf16>
    %8 = arith.extf %7 : vector<1x32xbf16> to vector<1x32xf32>
    %9 = vector.broadcast %8 : vector<1x32xf32> to vector<8x32xf32>
    %10 = arith.addf %6, %9 : vector<8x32xf32>
    %c0_6 = arith.constant 0 : index
    %c0_7 = arith.constant 0 : index
    %11 = vector.load %arg4[%c0_6, %c0_7] : memref<8x32xbf16, #tpu.memory_space<vmem>>, vector<8x32xbf16>
    %12 = arith.extf %11 : vector<8x32xbf16> to vector<8x32xf32>
    %13 = arith.addf %10, %12 : vector<8x32xf32>
    %14 = arith.truncf %13 : vector<8x32xf32> to vector<8x32xbf16>
    %c0_8 = arith.constant 0 : index
    %c0_9 = arith.constant 0 : index
    %c0_10 = arith.constant 0 : index
    %15 = vector.load %arg5[%c0_8, %c0_9, %c0_10] : memref<1x8x32xbf16, #tpu.memory_space<vmem>>, vector<1x8x32xbf16>
    %16 = vector.shape_cast %15 : vector<1x8x32xbf16> to vector<8x32xbf16>
    %17 = vector.shape_cast %14 : vector<8x32xbf16> to vector<1x8x32xbf16>
    tpu.vector_store %arg5[%c0_8, %c0_9, %c0_10], %17 {strides = array<i32>} : memref<1x8x32xbf16, #tpu.memory_space<vmem>>, vector<1x8x32xbf16>,
    return
  }
  func.func @transform_0(%arg0: i32) -> (i32, i32, i32) {
    %c0_i32 = arith.constant 0 : i32
    %c0_i32_0 = arith.constant 0 : i32
    %c0_i32_1 = arith.constant 0 : i32
    return %arg0, %c0_i32, %c0_i32_0 : i32, i32, i32
  }
  func.func @transform_1(%arg0: i32) -> (i32, i32) {
    %c0_i32 = arith.constant 0 : i32
    %c0_i32_0 = arith.constant 0 : i32
    %c0_i32_1 = arith.constant 0 : i32
    return %c0_i32, %c0_i32_0 : i32, i32
  }
  func.func @transform_2(%arg0: i32) -> (i32, i32) {
    %c0_i32 = arith.constant 0 : i32
    %c0_i32_0 = arith.constant 0 : i32
    %c0_i32_1 = arith.constant 0 : i32
    return %c0_i32, %c0_i32_0 : i32, i32
  }
  func.func @transform_3(%arg0: i32) -> (i32, i32) {
    %c0_i32 = arith.constant 0 : i32
    %c0_i32_0 = arith.constant 0 : i32
    %c0_i32_1 = arith.constant 0 : i32
    return %c0_i32, %c0_i32_0 : i32, i32
  }
  func.func @transform_4(%arg0: i32) -> (i32, i32, i32) {
    %c0_i32 = arith.constant 0 : i32
    %c0_i32_0 = arith.constant 0 : i32
    %c0_i32_1 = arith.constant 0 : i32
    return %arg0, %c0_i32, %c0_i32_0 : i32, i32, i32
  }
}

module attributes {stable_mosaic.version = 11 : i64} {
  func.func @_img_embed_kernel(%arg0: i32, %arg1: memref<1x4x192xbf16, #tpu.memory_space<vmem>>, %arg2: memref<192x32xbf16, #tpu.memory_space<vmem>>, %arg3: memref<1x32xbf16, #tpu.memory_space<vmem>>, %arg4: memref<4x32xbf16, #tpu.memory_space<vmem>>, %arg5: memref<1x4x32xbf16, #tpu.memory_space<vmem>>) attributes {dimension_semantics = [#tpu.dimension_semantics<parallel>], iteration_bounds = array<i64: 2>, scalar_prefetch = 0 : i64, scratch_operands = 0 : i64, tpu.core_type = #tpu.core_type<tc>, window_params = [{transform_indices = @transform_0, window_bounds = array<i64: 1, 4, 192>}, {pipeline_mode = #tpu.pipeline_mode<synchronous>, transform_indices = @transform_1, window_bounds = array<i64: 192, 32>}, {pipeline_mode = #tpu.pipeline_mode<synchronous>, transform_indices = @transform_2, window_bounds = array<i64: 1, 32>}, {pipeline_mode = #tpu.pipeline_mode<synchronous>, transform_indices = @transform_3, window_bounds = array<i64: 4, 32>}, {transform_indices = @transform_4, window_bounds = array<i64: 1, 4, 32>}]} {
    %c0 = arith.constant 0 : index
    %c0_0 = arith.constant 0 : index
    %c0_1 = arith.constant 0 : index
    %0 = vector.load %arg1[%c0, %c0_0, %c0_1] : memref<1x4x192xbf16, #tpu.memory_space<vmem>>, vector<1x4x192xbf16>
    %1 = vector.shape_cast %0 : vector<1x4x192xbf16> to vector<4x192xbf16>
    %c0_2 = arith.constant 0 : index
    %c0_3 = arith.constant 0 : index
    %2 = vector.load %arg2[%c0_2, %c0_3] : memref<192x32xbf16, #tpu.memory_space<vmem>>, vector<192x32xbf16>
    %cst = arith.constant dense<0.000000e+00> : vector<4x32xf32>
    %3 = tpu.matmul %1, %2, %cst {dimension_numbers = #tpu.dot_dimension_numbers<[1], [0], [0], [1], [0, 0, 1, 1], [], []>} : vector<4x192xbf16>, vector<192x32xbf16>, vector<4x32xf32> -> vector<4x32xf32>
    %c0_4 = arith.constant 0 : index
    %c0_5 = arith.constant 0 : index
    %4 = vector.load %arg3[%c0_4, %c0_5] : memref<1x32xbf16, #tpu.memory_space<vmem>>, vector<1x32xbf16>
    %5 = arith.extf %4 : vector<1x32xbf16> to vector<1x32xf32>
    %6 = vector.broadcast %5 : vector<1x32xf32> to vector<4x32xf32>
    %7 = arith.addf %3, %6 : vector<4x32xf32>
    %c0_6 = arith.constant 0 : index
    %c0_7 = arith.constant 0 : index
    %8 = vector.load %arg4[%c0_6, %c0_7] : memref<4x32xbf16, #tpu.memory_space<vmem>>, vector<4x32xbf16>
    %9 = arith.extf %8 : vector<4x32xbf16> to vector<4x32xf32>
    %10 = arith.addf %7, %9 : vector<4x32xf32>
    %11 = arith.truncf %10 : vector<4x32xf32> to vector<4x32xbf16>
    %c0_8 = arith.constant 0 : index
    %c0_9 = arith.constant 0 : index
    %c0_10 = arith.constant 0 : index
    %12 = vector.load %arg5[%c0_8, %c0_9, %c0_10] : memref<1x4x32xbf16, #tpu.memory_space<vmem>>, vector<1x4x32xbf16>
    %13 = vector.shape_cast %12 : vector<1x4x32xbf16> to vector<4x32xbf16>
    %14 = vector.shape_cast %11 : vector<4x32xbf16> to vector<1x4x32xbf16>
    tpu.vector_store %arg5[%c0_8, %c0_9, %c0_10], %14 {strides = array<i32>} : memref<1x4x32xbf16, #tpu.memory_space<vmem>>, vector<1x4x32xbf16>,
    return
  }
  func.func @transform_0(%arg0: i32) -> (i32, i32, i32) {
    %c0_i32 = arith.constant 0 : i32
    %c0_i32_0 = arith.constant 0 : i32
    %c0_i32_1 = arith.constant 0 : i32
    return %arg0, %c0_i32, %c0_i32_0 : i32, i32, i32
  }
  func.func @transform_1(%arg0: i32) -> (i32, i32) {
    %c0_i32 = arith.constant 0 : i32
    %c0_i32_0 = arith.constant 0 : i32
    %c0_i32_1 = arith.constant 0 : i32
    return %c0_i32, %c0_i32_0 : i32, i32
  }
  func.func @transform_2(%arg0: i32) -> (i32, i32) {
    %c0_i32 = arith.constant 0 : i32
    %c0_i32_0 = arith.constant 0 : i32
    %c0_i32_1 = arith.constant 0 : i32
    return %c0_i32, %c0_i32_0 : i32, i32
  }
  func.func @transform_3(%arg0: i32) -> (i32, i32) {
    %c0_i32 = arith.constant 0 : i32
    %c0_i32_0 = arith.constant 0 : i32
    %c0_i32_1 = arith.constant 0 : i32
    return %c0_i32, %c0_i32_0 : i32, i32
  }
  func.func @transform_4(%arg0: i32) -> (i32, i32, i32) {
    %c0_i32 = arith.constant 0 : i32
    %c0_i32_0 = arith.constant 0 : i32
    %c0_i32_1 = arith.constant 0 : i32
    return %arg0, %c0_i32, %c0_i32_0 : i32, i32, i32
  }
}

module attributes {stable_mosaic.version = 11 : i64} {
  func.func @_linear_kernel(%arg0: i32, %arg1: i32, %arg2: i32, %arg3: memref<48x32xbf16, #tpu.memory_space<vmem>>, %arg4: memref<32x96xbf16, #tpu.memory_space<vmem>>, %arg5: memref<1x96xbf16, #tpu.memory_space<vmem>>, %arg6: memref<48x96xbf16, #tpu.memory_space<vmem>>, %arg7: memref<48x96xf32, #tpu.memory_space<vmem>>) attributes {dimension_semantics = [#tpu.dimension_semantics<parallel>, #tpu.dimension_semantics<parallel>, #tpu.dimension_semantics<arbitrary>], iteration_bounds = array<i64: 1, 1, 1>, scalar_prefetch = 0 : i64, scratch_operands = 1 : i64, tpu.core_type = #tpu.core_type<tc>, window_params = [{transform_indices = @transform_0, window_bounds = array<i64: 48, 32>}, {transform_indices = @transform_1, window_bounds = array<i64: 32, 96>}, {transform_indices = @transform_2, window_bounds = array<i64: 1, 96>}, {transform_indices = @transform_3, window_bounds = array<i64: 48, 96>}]} {
    %c0_i32 = arith.constant 0 : i32
    %0 = arith.cmpi eq, %arg2, %c0_i32 : i32
    %1 = arith.extui %0 : i1 to i32
    %c0_i32_0 = arith.constant 0 : i32
    %2 = arith.cmpi ne, %1, %c0_i32_0 : i32
    scf.if %2 {
      %cst_10 = arith.constant 0.000000e+00 : f32
      %12 = vector.broadcast %cst_10 : f32 to vector<48x96xf32>
      %c0_11 = arith.constant 0 : index
      %c0_12 = arith.constant 0 : index
      %13 = vector.load %arg7[%c0_11, %c0_12] : memref<48x96xf32, #tpu.memory_space<vmem>>, vector<48x96xf32>
      tpu.vector_store %arg7[%c0_11, %c0_12], %12 {strides = array<i32>} : memref<48x96xf32, #tpu.memory_space<vmem>>, vector<48x96xf32>,
    } else {
    }
    %c0 = arith.constant 0 : index
    %c0_1 = arith.constant 0 : index
    %3 = vector.load %arg7[%c0, %c0_1] : memref<48x96xf32, #tpu.memory_space<vmem>>, vector<48x96xf32>
    %c0_2 = arith.constant 0 : index
    %c0_3 = arith.constant 0 : index
    %4 = vector.load %arg3[%c0_2, %c0_3] : memref<48x32xbf16, #tpu.memory_space<vmem>>, vector<48x32xbf16>
    %c0_4 = arith.constant 0 : index
    %c0_5 = arith.constant 0 : index
    %5 = vector.load %arg4[%c0_4, %c0_5] : memref<32x96xbf16, #tpu.memory_space<vmem>>, vector<32x96xbf16>
    %cst = arith.constant dense<0.000000e+00> : vector<48x96xf32>
    %6 = tpu.matmul %4, %5, %cst {dimension_numbers = #tpu.dot_dimension_numbers<[1], [0], [0], [1], [0, 0, 1, 1], [], []>} : vector<48x32xbf16>, vector<32x96xbf16>, vector<48x96xf32> -> vector<48x96xf32>
    %7 = arith.addf %3, %6 : vector<48x96xf32>
    %c0_6 = arith.constant 0 : index
    %c0_7 = arith.constant 0 : index
    %8 = vector.load %arg7[%c0_6, %c0_7] : memref<48x96xf32, #tpu.memory_space<vmem>>, vector<48x96xf32>
    tpu.vector_store %arg7[%c0_6, %c0_7], %7 {strides = array<i32>} : memref<48x96xf32, #tpu.memory_space<vmem>>, vector<48x96xf32>,
    %c0_i32_8 = arith.constant 0 : i32
    %9 = arith.cmpi eq, %arg2, %c0_i32_8 : i32
    %10 = arith.extui %9 : i1 to i32
    %c0_i32_9 = arith.constant 0 : i32
    %11 = arith.cmpi ne, %10, %c0_i32_9 : i32
    scf.if %11 {
      %c0_10 = arith.constant 0 : index
      %c0_11 = arith.constant 0 : index
      %12 = vector.load %arg7[%c0_10, %c0_11] : memref<48x96xf32, #tpu.memory_space<vmem>>, vector<48x96xf32>
      %c0_12 = arith.constant 0 : index
      %c0_13 = arith.constant 0 : index
      %13 = vector.load %arg5[%c0_12, %c0_13] : memref<1x96xbf16, #tpu.memory_space<vmem>>, vector<1x96xbf16>
      %14 = arith.extf %13 : vector<1x96xbf16> to vector<1x96xf32>
      %15 = vector.broadcast %14 : vector<1x96xf32> to vector<48x96xf32>
      %16 = arith.addf %12, %15 : vector<48x96xf32>
      %17 = arith.truncf %16 : vector<48x96xf32> to vector<48x96xbf16>
      %c0_14 = arith.constant 0 : index
      %c0_15 = arith.constant 0 : index
      %18 = vector.load %arg6[%c0_14, %c0_15] : memref<48x96xbf16, #tpu.memory_space<vmem>>, vector<48x96xbf16>
      tpu.vector_store %arg6[%c0_14, %c0_15], %17 {strides = array<i32>} : memref<48x96xbf16, #tpu.memory_space<vmem>>, vector<48x96xbf16>,
    } else {
    }
    return
  }
  func.func @transform_0(%arg0: i32, %arg1: i32, %arg2: i32) -> (i32, i32) {
    %c0_i32 = arith.constant 0 : i32
    return %arg0, %arg2 : i32, i32
  }
  func.func @transform_1(%arg0: i32, %arg1: i32, %arg2: i32) -> (i32, i32) {
    %c0_i32 = arith.constant 0 : i32
    return %arg2, %arg1 : i32, i32
  }
  func.func @transform_2(%arg0: i32, %arg1: i32, %arg2: i32) -> (i32, i32) {
    %c0_i32 = arith.constant 0 : i32
    %c0_i32_0 = arith.constant 0 : i32
    return %c0_i32, %arg1 : i32, i32
  }
  func.func @transform_3(%arg0: i32, %arg1: i32, %arg2: i32) -> (i32, i32) {
    %c0_i32 = arith.constant 0 : i32
    return %arg0, %arg1 : i32, i32
  }
}

module attributes {stable_mosaic.version = 11 : i64} {
  func.func @_layernorm_kernel(%arg0: i32, %arg1: memref<48x32xbf16, #tpu.memory_space<vmem>>, %arg2: memref<1x32xbf16, #tpu.memory_space<vmem>>, %arg3: memref<1x32xbf16, #tpu.memory_space<vmem>>, %arg4: memref<48x32xbf16, #tpu.memory_space<vmem>>) attributes {dimension_semantics = [#tpu.dimension_semantics<parallel>], iteration_bounds = array<i64: 1>, scalar_prefetch = 0 : i64, scratch_operands = 0 : i64, tpu.core_type = #tpu.core_type<tc>, window_params = [{transform_indices = @transform_0, window_bounds = array<i64: 48, 32>}, {pipeline_mode = #tpu.pipeline_mode<synchronous>, transform_indices = @transform_1, window_bounds = array<i64: 1, 32>}, {pipeline_mode = #tpu.pipeline_mode<synchronous>, transform_indices = @transform_2, window_bounds = array<i64: 1, 32>}, {transform_indices = @transform_3, window_bounds = array<i64: 48, 32>}]} {
    %c0 = arith.constant 0 : index
    %c0_0 = arith.constant 0 : index
    %0 = vector.load %arg1[%c0, %c0_0] : memref<48x32xbf16, #tpu.memory_space<vmem>>, vector<48x32xbf16>
    %1 = arith.extf %0 : vector<48x32xbf16> to vector<48x32xf32>
    %cst = arith.constant dense<0.000000e+00> : vector<48xf32>
    %2 = vector.multi_reduction <add>, %1, %cst [1] : vector<48x32xf32> to vector<48xf32>
    %3 = vector.shape_cast %2 : vector<48xf32> to vector<48x1xf32>
    %cst_1 = arith.constant 3.200000e+01 : f32
    %4 = vector.broadcast %cst_1 : f32 to vector<48x1xf32>
    %5 = arith.divf %3, %4 : vector<48x1xf32>
    %6 = vector.broadcast %5 : vector<48x1xf32> to vector<48x32xf32>
    %7 = arith.subf %1, %6 : vector<48x32xf32>
    %8 = arith.mulf %7, %7 : vector<48x32xf32>
    %cst_2 = arith.constant dense<0.000000e+00> : vector<48xf32>
    %9 = vector.multi_reduction <add>, %8, %cst_2 [1] : vector<48x32xf32> to vector<48xf32>
    %10 = vector.shape_cast %9 : vector<48xf32> to vector<48x1xf32>
    %cst_3 = arith.constant 3.200000e+01 : f32
    %11 = vector.broadcast %cst_3 : f32 to vector<48x1xf32>
    %12 = arith.divf %10, %11 : vector<48x1xf32>
    %13 = vector.broadcast %5 : vector<48x1xf32> to vector<48x32xf32>
    %14 = arith.subf %1, %13 : vector<48x32xf32>
    %cst_4 = arith.constant 9.99999974E-6 : f32
    %15 = vector.broadcast %cst_4 : f32 to vector<48x1xf32>
    %16 = arith.addf %12, %15 : vector<48x1xf32>
    %17 = math.rsqrt %16 : vector<48x1xf32>
    %18 = vector.broadcast %17 : vector<48x1xf32> to vector<48x32xf32>
    %19 = arith.mulf %14, %18 : vector<48x32xf32>
    %c0_5 = arith.constant 0 : index
    %c0_6 = arith.constant 0 : index
    %20 = vector.load %arg2[%c0_5, %c0_6] : memref<1x32xbf16, #tpu.memory_space<vmem>>, vector<1x32xbf16>
    %21 = arith.extf %20 : vector<1x32xbf16> to vector<1x32xf32>
    %22 = vector.broadcast %21 : vector<1x32xf32> to vector<48x32xf32>
    %23 = arith.mulf %19, %22 : vector<48x32xf32>
    %c0_7 = arith.constant 0 : index
    %c0_8 = arith.constant 0 : index
    %24 = vector.load %arg3[%c0_7, %c0_8] : memref<1x32xbf16, #tpu.memory_space<vmem>>, vector<1x32xbf16>
    %25 = arith.extf %24 : vector<1x32xbf16> to vector<1x32xf32>
    %26 = vector.broadcast %25 : vector<1x32xf32> to vector<48x32xf32>
    %27 = arith.addf %23, %26 : vector<48x32xf32>
    %28 = arith.truncf %27 : vector<48x32xf32> to vector<48x32xbf16>
    %c0_9 = arith.constant 0 : index
    %c0_10 = arith.constant 0 : index
    %29 = vector.load %arg4[%c0_9, %c0_10] : memref<48x32xbf16, #tpu.memory_space<vmem>>, vector<48x32xbf16>
    tpu.vector_store %arg4[%c0_9, %c0_10], %28 {strides = array<i32>} : memref<48x32xbf16, #tpu.memory_space<vmem>>, vector<48x32xbf16>,
    return
  }
  func.func @transform_0(%arg0: i32) -> (i32, i32) {
    %c0_i32 = arith.constant 0 : i32
    %c0_i32_0 = arith.constant 0 : i32
    return %arg0, %c0_i32 : i32, i32
  }
  func.func @transform_1(%arg0: i32) -> (i32, i32) {
    %c0_i32 = arith.constant 0 : i32
    %c0_i32_0 = arith.constant 0 : i32
    %c0_i32_1 = arith.constant 0 : i32
    return %c0_i32, %c0_i32_0 : i32, i32
  }
  func.func @transform_2(%arg0: i32) -> (i32, i32) {
    %c0_i32 = arith.constant 0 : i32
    %c0_i32_0 = arith.constant 0 : i32
    %c0_i32_1 = arith.constant 0 : i32
    return %c0_i32, %c0_i32_0 : i32, i32
  }
  func.func @transform_3(%arg0: i32) -> (i32, i32) {
    %c0_i32 = arith.constant 0 : i32
    %c0_i32_0 = arith.constant 0 : i32
    return %arg0, %c0_i32 : i32, i32
  }
}

module attributes {stable_mosaic.version = 11 : i64} {
  func.func @_attn_kernel(%arg0: i32, %arg1: i32, %arg2: memref<1x1x1x18x16xbf16, #tpu.memory_space<vmem>>, %arg3: memref<1x1x1x18x16xbf16, #tpu.memory_space<vmem>>, %arg4: memref<1x1x1x18x16xbf16, #tpu.memory_space<vmem>>, %arg5: memref<1x1x18xf32, #tpu.memory_space<vmem>>, %arg6: memref<1x1x18x16xbf16, #tpu.memory_space<vmem>>, %arg7: memref<1x18x18xbf16, #tpu.memory_space<vmem>>, %arg8: memref<18x18xf32, #tpu.memory_space<vmem>>) attributes {dimension_semantics = [#tpu.dimension_semantics<parallel>, #tpu.dimension_semantics<arbitrary>], iteration_bounds = array<i64: 2, 2>, scalar_prefetch = 0 : i64, scratch_operands = 1 : i64, tpu.core_type = #tpu.core_type<tc>, window_params = [{transform_indices = @transform_0, window_bounds = array<i64: 1, 1, 1, 18, 16>}, {transform_indices = @transform_1, window_bounds = array<i64: 1, 1, 1, 18, 16>}, {transform_indices = @transform_2, window_bounds = array<i64: 1, 1, 1, 18, 16>}, {transform_indices = @transform_3, window_bounds = array<i64: 1, 1, 18>}, {transform_indices = @transform_4, window_bounds = array<i64: 1, 1, 18, 16>}, {transform_indices = @transform_5, window_bounds = array<i64: 1, 18, 18>}]} {
    %c0_i32 = arith.constant 0 : i32
    %0 = arith.cmpi eq, %arg1, %c0_i32 : i32
    %1 = arith.extui %0 : i1 to i32
    %c0_i32_0 = arith.constant 0 : i32
    %2 = arith.cmpi ne, %1, %c0_i32_0 : i32
    scf.if %2 {
      %cst_31 = arith.constant 0.000000e+00 : f32
      %38 = vector.broadcast %cst_31 : f32 to vector<18x18xf32>
      %c0_32 = arith.constant 0 : index
      %c0_33 = arith.constant 0 : index
      %39 = vector.load %arg8[%c0_32, %c0_33] : memref<18x18xf32, #tpu.memory_space<vmem>>, vector<18x18xf32>
      tpu.vector_store %arg8[%c0_32, %c0_33], %38 {strides = array<i32>} : memref<18x18xf32, #tpu.memory_space<vmem>>, vector<18x18xf32>,
    } else {
    }
    %c0 = arith.constant 0 : index
    %c0_1 = arith.constant 0 : index
    %c0_2 = arith.constant 0 : index
    %c0_3 = arith.constant 0 : index
    %c0_4 = arith.constant 0 : index
    %3 = vector.load %arg2[%c0, %c0_1, %c0_2, %c0_3, %c0_4] : memref<1x1x1x18x16xbf16, #tpu.memory_space<vmem>>, vector<1x1x1x18x16xbf16>
    %4 = vector.shape_cast %3 : vector<1x1x1x18x16xbf16> to vector<18x16xbf16>
    %c0_5 = arith.constant 0 : index
    %c0_6 = arith.constant 0 : index
    %c0_7 = arith.constant 0 : index
    %c0_8 = arith.constant 0 : index
    %c0_9 = arith.constant 0 : index
    %5 = vector.load %arg3[%c0_5, %c0_6, %c0_7, %c0_8, %c0_9] : memref<1x1x1x18x16xbf16, #tpu.memory_space<vmem>>, vector<1x1x1x18x16xbf16>
    %6 = vector.shape_cast %5 : vector<1x1x1x18x16xbf16> to vector<18x16xbf16>
    %c0_10 = arith.constant 0 : index
    %c0_11 = arith.constant 0 : index
    %c0_12 = arith.constant 0 : index
    %c0_13 = arith.constant 0 : index
    %c0_14 = arith.constant 0 : index
    %7 = vector.load %arg4[%c0_10, %c0_11, %c0_12, %c0_13, %c0_14] : memref<1x1x1x18x16xbf16, #tpu.memory_space<vmem>>, vector<1x1x1x18x16xbf16>
    %8 = vector.shape_cast %7 : vector<1x1x1x18x16xbf16> to vector<18x16xbf16>
    %cst = arith.constant dense<0.000000e+00> : vector<18x18xf32>
    %9 = tpu.matmul %4, %6, %cst {dimension_numbers = #tpu.dot_dimension_numbers<[1], [1], [0], [0], [0, 0, 1, 0], [], []>} : vector<18x16xbf16>, vector<18x16xbf16>, vector<18x18xf32> -> vector<18x18xf32>
    %cst_15 = arith.constant 2.500000e-01 : f32
    %10 = vector.broadcast %cst_15 : f32 to vector<18x18xf32>
    %11 = arith.mulf %9, %10 : vector<18x18xf32>
    %c0_16 = arith.constant 0 : index
    %c0_17 = arith.constant 0 : index
    %c0_18 = arith.constant 0 : index
    %12 = vector.load %arg5[%c0_16, %c0_17, %c0_18] : memref<1x1x18xf32, #tpu.memory_space<vmem>>, vector<1x1x18xf32>
    %13 = vector.shape_cast %12 : vector<1x1x18xf32> to vector<1x18xf32>
    %14 = vector.broadcast %13 : vector<1x18xf32> to vector<18x18xf32>
    %15 = arith.addf %11, %14 : vector<18x18xf32>
    %cst_19 = arith.constant dense<0xFF800000> : vector<18xf32>
    %16 = vector.multi_reduction <maximumf>, %15, %cst_19 [1] : vector<18x18xf32> to vector<18xf32>
    %17 = vector.shape_cast %16 : vector<18xf32> to vector<18x1xf32>
    %18 = vector.broadcast %17 : vector<18x1xf32> to vector<18x18xf32>
    %19 = arith.subf %15, %18 : vector<18x18xf32>
    %20 = math.exp %19 : vector<18x18xf32>
    %cst_20 = arith.constant dense<0.000000e+00> : vector<18xf32>
    %21 = vector.multi_reduction <add>, %20, %cst_20 [1] : vector<18x18xf32> to vector<18xf32>
    %22 = vector.shape_cast %21 : vector<18xf32> to vector<18x1xf32>
    %23 = tpu.reciprocal %22 {approx = true} : vector<18x1xf32> -> vector<18x1xf32>
    %24 = vector.broadcast %23 : vector<18x1xf32> to vector<18x18xf32>
    %25 = arith.mulf %20, %24 : vector<18x18xf32>
    %c0_21 = arith.constant 0 : index
    %c0_22 = arith.constant 0 : index
    %26 = vector.load %arg8[%c0_21, %c0_22] : memref<18x18xf32, #tpu.memory_space<vmem>>, vector<18x18xf32>
    %27 = arith.addf %26, %25 : vector<18x18xf32>
    %c0_23 = arith.constant 0 : index
    %c0_24 = arith.constant 0 : index
    %28 = vector.load %arg8[%c0_23, %c0_24] : memref<18x18xf32, #tpu.memory_space<vmem>>, vector<18x18xf32>
    tpu.vector_store %arg8[%c0_23, %c0_24], %27 {strides = array<i32>} : memref<18x18xf32, #tpu.memory_space<vmem>>, vector<18x18xf32>,
    %29 = arith.truncf %25 : vector<18x18xf32> to vector<18x18xbf16>
    %cst_25 = arith.constant dense<0.000000e+00> : vector<18x16xf32>
    %30 = tpu.matmul %29, %8, %cst_25 {dimension_numbers = #tpu.dot_dimension_numbers<[1], [0], [0], [1], [0, 0, 1, 1], [], []>} : vector<18x18xbf16>, vector<18x16xbf16>, vector<18x16xf32> -> vector<18x16xf32>
    %31 = arith.truncf %30 : vector<18x16xf32> to vector<18x16xbf16>
    %c0_26 = arith.constant 0 : index
    %c0_27 = arith.constant 0 : index
    %c0_28 = arith.constant 0 : index
    %c0_29 = arith.constant 0 : index
    %32 = vector.load %arg6[%c0_26, %c0_27, %c0_28, %c0_29] : memref<1x1x18x16xbf16, #tpu.memory_space<vmem>>, vector<1x1x18x16xbf16>
    %33 = vector.shape_cast %32 : vector<1x1x18x16xbf16> to vector<18x16xbf16>
    %34 = vector.shape_cast %31 : vector<18x16xbf16> to vector<1x1x18x16xbf16>
    tpu.vector_store %arg6[%c0_26, %c0_27, %c0_28, %c0_29], %34 {strides = array<i32>} : memref<1x1x18x16xbf16, #tpu.memory_space<vmem>>, vector<1x1x18x16xbf16>,
    %c1_i32 = arith.constant 1 : i32
    %35 = arith.cmpi eq, %arg1, %c1_i32 : i32
    %36 = arith.extui %35 : i1 to i32
    %c0_i32_30 = arith.constant 0 : i32
    %37 = arith.cmpi ne, %36, %c0_i32_30 : i32
    scf.if %37 {
      %c0_31 = arith.constant 0 : index
      %c0_32 = arith.constant 0 : index
      %38 = vector.load %arg8[%c0_31, %c0_32] : memref<18x18xf32, #tpu.memory_space<vmem>>, vector<18x18xf32>
      %cst_33 = arith.constant 5.000000e-01 : f32
      %39 = vector.broadcast %cst_33 : f32 to vector<18x18xf32>
      %40 = arith.mulf %38, %39 : vector<18x18xf32>
      %41 = arith.truncf %40 : vector<18x18xf32> to vector<18x18xbf16>
      %c0_34 = arith.constant 0 : index
      %c0_35 = arith.constant 0 : index
      %c0_36 = arith.constant 0 : index
      %42 = vector.load %arg7[%c0_34, %c0_35, %c0_36] : memref<1x18x18xbf16, #tpu.memory_space<vmem>>, vector<1x18x18xbf16>
      %43 = vector.shape_cast %42 : vector<1x18x18xbf16> to vector<18x18xbf16>
      %44 = vector.shape_cast %41 : vector<18x18xbf16> to vector<1x18x18xbf16>
      tpu.vector_store %arg7[%c0_34, %c0_35, %c0_36], %44 {strides = array<i32>} : memref<1x18x18xbf16, #tpu.memory_space<vmem>>, vector<1x18x18xbf16>,
    } else {
    }
    return
  }
  func.func @transform_0(%arg0: i32, %arg1: i32) -> (i32, i32, i32, i32, i32) {
    %c0_i32 = arith.constant 0 : i32
    %c0_i32_0 = arith.constant 0 : i32
    %c0_i32_1 = arith.constant 0 : i32
    %c0_i32_2 = arith.constant 0 : i32
    return %c0_i32, %arg0, %arg1, %c0_i32_0, %c0_i32_1 : i32, i32, i32, i32, i32
  }
  func.func @transform_1(%arg0: i32, %arg1: i32) -> (i32, i32, i32, i32, i32) {
    %c1_i32 = arith.constant 1 : i32
    %c0_i32 = arith.constant 0 : i32
    %c0_i32_0 = arith.constant 0 : i32
    %c0_i32_1 = arith.constant 0 : i32
    return %c1_i32, %arg0, %arg1, %c0_i32, %c0_i32_0 : i32, i32, i32, i32, i32
  }
  func.func @transform_2(%arg0: i32, %arg1: i32) -> (i32, i32, i32, i32, i32) {
    %c2_i32 = arith.constant 2 : i32
    %c0_i32 = arith.constant 0 : i32
    %c0_i32_0 = arith.constant 0 : i32
    %c0_i32_1 = arith.constant 0 : i32
    return %c2_i32, %arg0, %arg1, %c0_i32, %c0_i32_0 : i32, i32, i32, i32, i32
  }
  func.func @transform_3(%arg0: i32, %arg1: i32) -> (i32, i32, i32) {
    %c0_i32 = arith.constant 0 : i32
    %c0_i32_0 = arith.constant 0 : i32
    %c0_i32_1 = arith.constant 0 : i32
    return %arg0, %c0_i32, %c0_i32_0 : i32, i32, i32
  }
  func.func @transform_4(%arg0: i32, %arg1: i32) -> (i32, i32, i32, i32) {
    %c0_i32 = arith.constant 0 : i32
    %c0_i32_0 = arith.constant 0 : i32
    %c0_i32_1 = arith.constant 0 : i32
    return %arg0, %arg1, %c0_i32, %c0_i32_0 : i32, i32, i32, i32
  }
  func.func @transform_5(%arg0: i32, %arg1: i32) -> (i32, i32, i32) {
    %c0_i32 = arith.constant 0 : i32
    %c0_i32_0 = arith.constant 0 : i32
    %c0_i32_1 = arith.constant 0 : i32
    return %arg0, %c0_i32, %c0_i32_0 : i32, i32, i32
  }
}

module attributes {stable_mosaic.version = 11 : i64} {
  func.func @_proj_res_ln_kernel(%arg0: i32, %arg1: memref<48x32xbf16, #tpu.memory_space<vmem>>, %arg2: memref<48x32xbf16, #tpu.memory_space<vmem>>, %arg3: memref<32x32xbf16, #tpu.memory_space<vmem>>, %arg4: memref<1x32xbf16, #tpu.memory_space<vmem>>, %arg5: memref<1x32xbf16, #tpu.memory_space<vmem>>, %arg6: memref<1x32xbf16, #tpu.memory_space<vmem>>, %arg7: memref<48x32xbf16, #tpu.memory_space<vmem>>) attributes {dimension_semantics = [#tpu.dimension_semantics<parallel>], iteration_bounds = array<i64: 1>, scalar_prefetch = 0 : i64, scratch_operands = 0 : i64, tpu.core_type = #tpu.core_type<tc>, window_params = [{transform_indices = @transform_0, window_bounds = array<i64: 48, 32>}, {transform_indices = @transform_1, window_bounds = array<i64: 48, 32>}, {pipeline_mode = #tpu.pipeline_mode<synchronous>, transform_indices = @transform_2, window_bounds = array<i64: 32, 32>}, {pipeline_mode = #tpu.pipeline_mode<synchronous>, transform_indices = @transform_3, window_bounds = array<i64: 1, 32>}, {pipeline_mode = #tpu.pipeline_mode<synchronous>, transform_indices = @transform_4, window_bounds = array<i64: 1, 32>}, {pipeline_mode = #tpu.pipeline_mode<synchronous>, transform_indices = @transform_5, window_bounds = array<i64: 1, 32>}, {transform_indices = @transform_6, window_bounds = array<i64: 48, 32>}]} {
    %c0 = arith.constant 0 : index
    %c0_0 = arith.constant 0 : index
    %0 = vector.load %arg1[%c0, %c0_0] : memref<48x32xbf16, #tpu.memory_space<vmem>>, vector<48x32xbf16>
    %c0_1 = arith.constant 0 : index
    %c0_2 = arith.constant 0 : index
    %1 = vector.load %arg3[%c0_1, %c0_2] : memref<32x32xbf16, #tpu.memory_space<vmem>>, vector<32x32xbf16>
    %cst = arith.constant dense<0.000000e+00> : vector<48x32xf32>
    %2 = tpu.matmul %0, %1, %cst {dimension_numbers = #tpu.dot_dimension_numbers<[1], [0], [0], [1], [0, 0, 1, 1], [], []>} : vector<48x32xbf16>, vector<32x32xbf16>, vector<48x32xf32> -> vector<48x32xf32>
    %c0_3 = arith.constant 0 : index
    %c0_4 = arith.constant 0 : index
    %3 = vector.load %arg4[%c0_3, %c0_4] : memref<1x32xbf16, #tpu.memory_space<vmem>>, vector<1x32xbf16>
    %4 = arith.extf %3 : vector<1x32xbf16> to vector<1x32xf32>
    %5 = vector.broadcast %4 : vector<1x32xf32> to vector<48x32xf32>
    %6 = arith.addf %2, %5 : vector<48x32xf32>
    %c0_5 = arith.constant 0 : index
    %c0_6 = arith.constant 0 : index
    %7 = vector.load %arg2[%c0_5, %c0_6] : memref<48x32xbf16, #tpu.memory_space<vmem>>, vector<48x32xbf16>
    %8 = arith.extf %7 : vector<48x32xbf16> to vector<48x32xf32>
    %9 = arith.addf %8, %6 : vector<48x32xf32>
    %cst_7 = arith.constant dense<0.000000e+00> : vector<48xf32>
    %10 = vector.multi_reduction <add>, %9, %cst_7 [1] : vector<48x32xf32> to vector<48xf32>
    %11 = vector.shape_cast %10 : vector<48xf32> to vector<48x1xf32>
    %cst_8 = arith.constant 3.200000e+01 : f32
    %12 = vector.broadcast %cst_8 : f32 to vector<48x1xf32>
    %13 = arith.divf %11, %12 : vector<48x1xf32>
    %14 = vector.broadcast %13 : vector<48x1xf32> to vector<48x32xf32>
    %15 = arith.subf %9, %14 : vector<48x32xf32>
    %16 = arith.mulf %15, %15 : vector<48x32xf32>
    %cst_9 = arith.constant dense<0.000000e+00> : vector<48xf32>
    %17 = vector.multi_reduction <add>, %16, %cst_9 [1] : vector<48x32xf32> to vector<48xf32>
    %18 = vector.shape_cast %17 : vector<48xf32> to vector<48x1xf32>
    %cst_10 = arith.constant 3.200000e+01 : f32
    %19 = vector.broadcast %cst_10 : f32 to vector<48x1xf32>
    %20 = arith.divf %18, %19 : vector<48x1xf32>
    %21 = vector.broadcast %13 : vector<48x1xf32> to vector<48x32xf32>
    %22 = arith.subf %9, %21 : vector<48x32xf32>
    %cst_11 = arith.constant 9.99999974E-6 : f32
    %23 = vector.broadcast %cst_11 : f32 to vector<48x1xf32>
    %24 = arith.addf %20, %23 : vector<48x1xf32>
    %25 = math.rsqrt %24 : vector<48x1xf32>
    %26 = vector.broadcast %25 : vector<48x1xf32> to vector<48x32xf32>
    %27 = arith.mulf %22, %26 : vector<48x32xf32>
    %c0_12 = arith.constant 0 : index
    %c0_13 = arith.constant 0 : index
    %28 = vector.load %arg5[%c0_12, %c0_13] : memref<1x32xbf16, #tpu.memory_space<vmem>>, vector<1x32xbf16>
    %29 = arith.extf %28 : vector<1x32xbf16> to vector<1x32xf32>
    %30 = vector.broadcast %29 : vector<1x32xf32> to vector<48x32xf32>
    %31 = arith.mulf %27, %30 : vector<48x32xf32>
    %c0_14 = arith.constant 0 : index
    %c0_15 = arith.constant 0 : index
    %32 = vector.load %arg6[%c0_14, %c0_15] : memref<1x32xbf16, #tpu.memory_space<vmem>>, vector<1x32xbf16>
    %33 = arith.extf %32 : vector<1x32xbf16> to vector<1x32xf32>
    %34 = vector.broadcast %33 : vector<1x32xf32> to vector<48x32xf32>
    %35 = arith.addf %31, %34 : vector<48x32xf32>
    %36 = arith.truncf %35 : vector<48x32xf32> to vector<48x32xbf16>
    %c0_16 = arith.constant 0 : index
    %c0_17 = arith.constant 0 : index
    %37 = vector.load %arg7[%c0_16, %c0_17] : memref<48x32xbf16, #tpu.memory_space<vmem>>, vector<48x32xbf16>
    tpu.vector_store %arg7[%c0_16, %c0_17], %36 {strides = array<i32>} : memref<48x32xbf16, #tpu.memory_space<vmem>>, vector<48x32xbf16>,
    return
  }
  func.func @transform_0(%arg0: i32) -> (i32, i32) {
    %c0_i32 = arith.constant 0 : i32
    %c0_i32_0 = arith.constant 0 : i32
    return %arg0, %c0_i32 : i32, i32
  }
  func.func @transform_1(%arg0: i32) -> (i32, i32) {
    %c0_i32 = arith.constant 0 : i32
    %c0_i32_0 = arith.constant 0 : i32
    return %arg0, %c0_i32 : i32, i32
  }
  func.func @transform_2(%arg0: i32) -> (i32, i32) {
    %c0_i32 = arith.constant 0 : i32
    %c0_i32_0 = arith.constant 0 : i32
    %c0_i32_1 = arith.constant 0 : i32
    return %c0_i32, %c0_i32_0 : i32, i32
  }
  func.func @transform_3(%arg0: i32) -> (i32, i32) {
    %c0_i32 = arith.constant 0 : i32
    %c0_i32_0 = arith.constant 0 : i32
    %c0_i32_1 = arith.constant 0 : i32
    return %c0_i32, %c0_i32_0 : i32, i32
  }
  func.func @transform_4(%arg0: i32) -> (i32, i32) {
    %c0_i32 = arith.constant 0 : i32
    %c0_i32_0 = arith.constant 0 : i32
    %c0_i32_1 = arith.constant 0 : i32
    return %c0_i32, %c0_i32_0 : i32, i32
  }
  func.func @transform_5(%arg0: i32) -> (i32, i32) {
    %c0_i32 = arith.constant 0 : i32
    %c0_i32_0 = arith.constant 0 : i32
    %c0_i32_1 = arith.constant 0 : i32
    return %c0_i32, %c0_i32_0 : i32, i32
  }
  func.func @transform_6(%arg0: i32) -> (i32, i32) {
    %c0_i32 = arith.constant 0 : i32
    %c0_i32_0 = arith.constant 0 : i32
    return %arg0, %c0_i32 : i32, i32
  }
}

module attributes {stable_mosaic.version = 11 : i64} {
  func.func @_ffn_block_kernel(%arg0: i32, %arg1: i32, %arg2: memref<48x32xbf16, #tpu.memory_space<vmem>>, %arg3: memref<32x64xbf16, #tpu.memory_space<vmem>>, %arg4: memref<1x64xbf16, #tpu.memory_space<vmem>>, %arg5: memref<64x32xbf16, #tpu.memory_space<vmem>>, %arg6: memref<1x32xbf16, #tpu.memory_space<vmem>>, %arg7: memref<1x32xbf16, #tpu.memory_space<vmem>>, %arg8: memref<1x32xbf16, #tpu.memory_space<vmem>>, %arg9: memref<48x32xbf16, #tpu.memory_space<vmem>>, %arg10: memref<48x32xf32, #tpu.memory_space<vmem>>) attributes {dimension_semantics = [#tpu.dimension_semantics<parallel>, #tpu.dimension_semantics<arbitrary>], iteration_bounds = array<i64: 1, 1>, scalar_prefetch = 0 : i64, scratch_operands = 1 : i64, tpu.core_type = #tpu.core_type<tc>, window_params = [{transform_indices = @transform_0, window_bounds = array<i64: 48, 32>}, {transform_indices = @transform_1, window_bounds = array<i64: 32, 64>}, {transform_indices = @transform_2, window_bounds = array<i64: 1, 64>}, {transform_indices = @transform_3, window_bounds = array<i64: 64, 32>}, {pipeline_mode = #tpu.pipeline_mode<synchronous>, transform_indices = @transform_4, window_bounds = array<i64: 1, 32>}, {pipeline_mode = #tpu.pipeline_mode<synchronous>, transform_indices = @transform_5, window_bounds = array<i64: 1, 32>}, {pipeline_mode = #tpu.pipeline_mode<synchronous>, transform_indices = @transform_6, window_bounds = array<i64: 1, 32>}, {transform_indices = @transform_7, window_bounds = array<i64: 48, 32>}]} {
    %c0_i32 = arith.constant 0 : i32
    %0 = arith.cmpi eq, %arg1, %c0_i32 : i32
    %1 = arith.extui %0 : i1 to i32
    %c0_i32_0 = arith.constant 0 : i32
    %2 = arith.cmpi ne, %1, %c0_i32_0 : i32
    scf.if %2 {
      %cst_19 = arith.constant 0.000000e+00 : f32
      %32 = vector.broadcast %cst_19 : f32 to vector<48x32xf32>
      %c0_20 = arith.constant 0 : index
      %c0_21 = arith.constant 0 : index
      %33 = vector.load %arg10[%c0_20, %c0_21] : memref<48x32xf32, #tpu.memory_space<vmem>>, vector<48x32xf32>
      tpu.vector_store %arg10[%c0_20, %c0_21], %32 {strides = array<i32>} : memref<48x32xf32, #tpu.memory_space<vmem>>, vector<48x32xf32>,
    } else {
    }
    %c0 = arith.constant 0 : index
    %c0_1 = arith.constant 0 : index
    %3 = vector.load %arg2[%c0, %c0_1] : memref<48x32xbf16, #tpu.memory_space<vmem>>, vector<48x32xbf16>
    %c0_2 = arith.constant 0 : index
    %c0_3 = arith.constant 0 : index
    %4 = vector.load %arg3[%c0_2, %c0_3] : memref<32x64xbf16, #tpu.memory_space<vmem>>, vector<32x64xbf16>
    %cst = arith.constant dense<0.000000e+00> : vector<48x64xf32>
    %5 = tpu.matmul %3, %4, %cst {dimension_numbers = #tpu.dot_dimension_numbers<[1], [0], [0], [1], [0, 0, 1, 1], [], []>} : vector<48x32xbf16>, vector<32x64xbf16>, vector<48x64xf32> -> vector<48x64xf32>
    %c0_4 = arith.constant 0 : index
    %c0_5 = arith.constant 0 : index
    %6 = vector.load %arg4[%c0_4, %c0_5] : memref<1x64xbf16, #tpu.memory_space<vmem>>, vector<1x64xbf16>
    %7 = arith.extf %6 : vector<1x64xbf16> to vector<1x64xf32>
    %8 = vector.broadcast %7 : vector<1x64xf32> to vector<48x64xf32>
    %9 = arith.addf %5, %8 : vector<48x64xf32>
    %10 = arith.mulf %9, %9 : vector<48x64xf32>
    %11 = arith.mulf %9, %10 : vector<48x64xf32>
    %cst_6 = arith.constant 4.471500e-02 : f32
    %12 = vector.broadcast %cst_6 : f32 to vector<48x64xf32>
    %13 = arith.mulf %12, %11 : vector<48x64xf32>
    %14 = arith.addf %9, %13 : vector<48x64xf32>
    %cst_7 = arith.constant 0.797884583 : f32
    %15 = vector.broadcast %cst_7 : f32 to vector<48x64xf32>
    %16 = arith.mulf %15, %14 : vector<48x64xf32>
    %17 = math.tanh %16 : vector<48x64xf32>
    %cst_8 = arith.constant 1.000000e+00 : f32
    %18 = vector.broadcast %cst_8 : f32 to vector<48x64xf32>
    %19 = arith.addf %18, %17 : vector<48x64xf32>
    %cst_9 = arith.constant 5.000000e-01 : f32
    %20 = vector.broadcast %cst_9 : f32 to vector<48x64xf32>
    %21 = arith.mulf %20, %19 : vector<48x64xf32>
    %22 = arith.mulf %9, %21 : vector<48x64xf32>
    %c0_10 = arith.constant 0 : index
    %c0_11 = arith.constant 0 : index
    %23 = vector.load %arg10[%c0_10, %c0_11] : memref<48x32xf32, #tpu.memory_space<vmem>>, vector<48x32xf32>
    %24 = arith.truncf %22 : vector<48x64xf32> to vector<48x64xbf16>
    %c0_12 = arith.constant 0 : index
    %c0_13 = arith.constant 0 : index
    %25 = vector.load %arg5[%c0_12, %c0_13] : memref<64x32xbf16, #tpu.memory_space<vmem>>, vector<64x32xbf16>
    %cst_14 = arith.constant dense<0.000000e+00> : vector<48x32xf32>
    %26 = tpu.matmul %24, %25, %cst_14 {dimension_numbers = #tpu.dot_dimension_numbers<[1], [0], [0], [1], [0, 0, 1, 1], [], []>} : vector<48x64xbf16>, vector<64x32xbf16>, vector<48x32xf32> -> vector<48x32xf32>
    %27 = arith.addf %23, %26 : vector<48x32xf32>
    %c0_15 = arith.constant 0 : index
    %c0_16 = arith.constant 0 : index
    %28 = vector.load %arg10[%c0_15, %c0_16] : memref<48x32xf32, #tpu.memory_space<vmem>>, vector<48x32xf32>
    tpu.vector_store %arg10[%c0_15, %c0_16], %27 {strides = array<i32>} : memref<48x32xf32, #tpu.memory_space<vmem>>, vector<48x32xf32>,
    %c0_i32_17 = arith.constant 0 : i32
    %29 = arith.cmpi eq, %arg1, %c0_i32_17 : i32
    %30 = arith.extui %29 : i1 to i32
    %c0_i32_18 = arith.constant 0 : i32
    %31 = arith.cmpi ne, %30, %c0_i32_18 : i32
    scf.if %31 {
      %32 = arith.extf %3 : vector<48x32xbf16> to vector<48x32xf32>
      %c0_19 = arith.constant 0 : index
      %c0_20 = arith.constant 0 : index
      %33 = vector.load %arg10[%c0_19, %c0_20] : memref<48x32xf32, #tpu.memory_space<vmem>>, vector<48x32xf32>
      %34 = arith.addf %32, %33 : vector<48x32xf32>
      %c0_21 = arith.constant 0 : index
      %c0_22 = arith.constant 0 : index
      %35 = vector.load %arg6[%c0_21, %c0_22] : memref<1x32xbf16, #tpu.memory_space<vmem>>, vector<1x32xbf16>
      %36 = arith.extf %35 : vector<1x32xbf16> to vector<1x32xf32>
      %37 = vector.broadcast %36 : vector<1x32xf32> to vector<48x32xf32>
      %38 = arith.addf %34, %37 : vector<48x32xf32>
      %cst_23 = arith.constant dense<0.000000e+00> : vector<48xf32>
      %39 = vector.multi_reduction <add>, %38, %cst_23 [1] : vector<48x32xf32> to vector<48xf32>
      %40 = vector.shape_cast %39 : vector<48xf32> to vector<48x1xf32>
      %cst_24 = arith.constant 3.200000e+01 : f32
      %41 = vector.broadcast %cst_24 : f32 to vector<48x1xf32>
      %42 = arith.divf %40, %41 : vector<48x1xf32>
      %43 = vector.broadcast %42 : vector<48x1xf32> to vector<48x32xf32>
      %44 = arith.subf %38, %43 : vector<48x32xf32>
      %45 = arith.mulf %44, %44 : vector<48x32xf32>
      %cst_25 = arith.constant dense<0.000000e+00> : vector<48xf32>
      %46 = vector.multi_reduction <add>, %45, %cst_25 [1] : vector<48x32xf32> to vector<48xf32>
      %47 = vector.shape_cast %46 : vector<48xf32> to vector<48x1xf32>
      %cst_26 = arith.constant 3.200000e+01 : f32
      %48 = vector.broadcast %cst_26 : f32 to vector<48x1xf32>
      %49 = arith.divf %47, %48 : vector<48x1xf32>
      %50 = vector.broadcast %42 : vector<48x1xf32> to vector<48x32xf32>
      %51 = arith.subf %38, %50 : vector<48x32xf32>
      %cst_27 = arith.constant 9.99999974E-6 : f32
      %52 = vector.broadcast %cst_27 : f32 to vector<48x1xf32>
      %53 = arith.addf %49, %52 : vector<48x1xf32>
      %54 = math.rsqrt %53 : vector<48x1xf32>
      %55 = vector.broadcast %54 : vector<48x1xf32> to vector<48x32xf32>
      %56 = arith.mulf %51, %55 : vector<48x32xf32>
      %c0_28 = arith.constant 0 : index
      %c0_29 = arith.constant 0 : index
      %57 = vector.load %arg7[%c0_28, %c0_29] : memref<1x32xbf16, #tpu.memory_space<vmem>>, vector<1x32xbf16>
      %58 = arith.extf %57 : vector<1x32xbf16> to vector<1x32xf32>
      %59 = vector.broadcast %58 : vector<1x32xf32> to vector<48x32xf32>
      %60 = arith.mulf %56, %59 : vector<48x32xf32>
      %c0_30 = arith.constant 0 : index
      %c0_31 = arith.constant 0 : index
      %61 = vector.load %arg8[%c0_30, %c0_31] : memref<1x32xbf16, #tpu.memory_space<vmem>>, vector<1x32xbf16>
      %62 = arith.extf %61 : vector<1x32xbf16> to vector<1x32xf32>
      %63 = vector.broadcast %62 : vector<1x32xf32> to vector<48x32xf32>
      %64 = arith.addf %60, %63 : vector<48x32xf32>
      %65 = arith.truncf %64 : vector<48x32xf32> to vector<48x32xbf16>
      %c0_32 = arith.constant 0 : index
      %c0_33 = arith.constant 0 : index
      %66 = vector.load %arg9[%c0_32, %c0_33] : memref<48x32xbf16, #tpu.memory_space<vmem>>, vector<48x32xbf16>
      tpu.vector_store %arg9[%c0_32, %c0_33], %65 {strides = array<i32>} : memref<48x32xbf16, #tpu.memory_space<vmem>>, vector<48x32xbf16>,
    } else {
    }
    return
  }
  func.func @transform_0(%arg0: i32, %arg1: i32) -> (i32, i32) {
    %c0_i32 = arith.constant 0 : i32
    %c0_i32_0 = arith.constant 0 : i32
    return %arg0, %c0_i32 : i32, i32
  }
  func.func @transform_1(%arg0: i32, %arg1: i32) -> (i32, i32) {
    %c0_i32 = arith.constant 0 : i32
    %c0_i32_0 = arith.constant 0 : i32
    return %c0_i32, %arg1 : i32, i32
  }
  func.func @transform_2(%arg0: i32, %arg1: i32) -> (i32, i32) {
    %c0_i32 = arith.constant 0 : i32
    %c0_i32_0 = arith.constant 0 : i32
    return %c0_i32, %arg1 : i32, i32
  }
  func.func @transform_3(%arg0: i32, %arg1: i32) -> (i32, i32) {
    %c0_i32 = arith.constant 0 : i32
    %c0_i32_0 = arith.constant 0 : i32
    return %arg1, %c0_i32 : i32, i32
  }
  func.func @transform_4(%arg0: i32, %arg1: i32) -> (i32, i32) {
    %c0_i32 = arith.constant 0 : i32
    %c0_i32_0 = arith.constant 0 : i32
    %c0_i32_1 = arith.constant 0 : i32
    return %c0_i32, %c0_i32_0 : i32, i32
  }
  func.func @transform_5(%arg0: i32, %arg1: i32) -> (i32, i32) {
    %c0_i32 = arith.constant 0 : i32
    %c0_i32_0 = arith.constant 0 : i32
    %c0_i32_1 = arith.constant 0 : i32
    return %c0_i32, %c0_i32_0 : i32, i32
  }
  func.func @transform_6(%arg0: i32, %arg1: i32) -> (i32, i32) {
    %c0_i32 = arith.constant 0 : i32
    %c0_i32_0 = arith.constant 0 : i32
    %c0_i32_1 = arith.constant 0 : i32
    return %c0_i32, %c0_i32_0 : i32, i32
  }
  func.func @transform_7(%arg0: i32, %arg1: i32) -> (i32, i32) {
    %c0_i32 = arith.constant 0 : i32
    %c0_i32_0 = arith.constant 0 : i32
    return %arg0, %c0_i32 : i32, i32
  }
}

module attributes {stable_mosaic.version = 11 : i64} {
  func.func @_layernorm_kernel(%arg0: i32, %arg1: memref<64x32xbf16, #tpu.memory_space<vmem>>, %arg2: memref<1x32xbf16, #tpu.memory_space<vmem>>, %arg3: memref<1x32xbf16, #tpu.memory_space<vmem>>, %arg4: memref<64x32xbf16, #tpu.memory_space<vmem>>) attributes {dimension_semantics = [#tpu.dimension_semantics<parallel>], iteration_bounds = array<i64: 1>, scalar_prefetch = 0 : i64, scratch_operands = 0 : i64, tpu.core_type = #tpu.core_type<tc>, window_params = [{transform_indices = @transform_0, window_bounds = array<i64: 64, 32>}, {pipeline_mode = #tpu.pipeline_mode<synchronous>, transform_indices = @transform_1, window_bounds = array<i64: 1, 32>}, {pipeline_mode = #tpu.pipeline_mode<synchronous>, transform_indices = @transform_2, window_bounds = array<i64: 1, 32>}, {transform_indices = @transform_3, window_bounds = array<i64: 64, 32>}]} {
    %c0 = arith.constant 0 : index
    %c0_0 = arith.constant 0 : index
    %0 = vector.load %arg1[%c0, %c0_0] : memref<64x32xbf16, #tpu.memory_space<vmem>>, vector<64x32xbf16>
    %1 = arith.extf %0 : vector<64x32xbf16> to vector<64x32xf32>
    %cst = arith.constant dense<0.000000e+00> : vector<64xf32>
    %2 = vector.multi_reduction <add>, %1, %cst [1] : vector<64x32xf32> to vector<64xf32>
    %3 = vector.shape_cast %2 : vector<64xf32> to vector<64x1xf32>
    %cst_1 = arith.constant 3.200000e+01 : f32
    %4 = vector.broadcast %cst_1 : f32 to vector<64x1xf32>
    %5 = arith.divf %3, %4 : vector<64x1xf32>
    %6 = vector.broadcast %5 : vector<64x1xf32> to vector<64x32xf32>
    %7 = arith.subf %1, %6 : vector<64x32xf32>
    %8 = arith.mulf %7, %7 : vector<64x32xf32>
    %cst_2 = arith.constant dense<0.000000e+00> : vector<64xf32>
    %9 = vector.multi_reduction <add>, %8, %cst_2 [1] : vector<64x32xf32> to vector<64xf32>
    %10 = vector.shape_cast %9 : vector<64xf32> to vector<64x1xf32>
    %cst_3 = arith.constant 3.200000e+01 : f32
    %11 = vector.broadcast %cst_3 : f32 to vector<64x1xf32>
    %12 = arith.divf %10, %11 : vector<64x1xf32>
    %13 = vector.broadcast %5 : vector<64x1xf32> to vector<64x32xf32>
    %14 = arith.subf %1, %13 : vector<64x32xf32>
    %cst_4 = arith.constant 9.99999974E-6 : f32
    %15 = vector.broadcast %cst_4 : f32 to vector<64x1xf32>
    %16 = arith.addf %12, %15 : vector<64x1xf32>
    %17 = math.rsqrt %16 : vector<64x1xf32>
    %18 = vector.broadcast %17 : vector<64x1xf32> to vector<64x32xf32>
    %19 = arith.mulf %14, %18 : vector<64x32xf32>
    %c0_5 = arith.constant 0 : index
    %c0_6 = arith.constant 0 : index
    %20 = vector.load %arg2[%c0_5, %c0_6] : memref<1x32xbf16, #tpu.memory_space<vmem>>, vector<1x32xbf16>
    %21 = arith.extf %20 : vector<1x32xbf16> to vector<1x32xf32>
    %22 = vector.broadcast %21 : vector<1x32xf32> to vector<64x32xf32>
    %23 = arith.mulf %19, %22 : vector<64x32xf32>
    %c0_7 = arith.constant 0 : index
    %c0_8 = arith.constant 0 : index
    %24 = vector.load %arg3[%c0_7, %c0_8] : memref<1x32xbf16, #tpu.memory_space<vmem>>, vector<1x32xbf16>
    %25 = arith.extf %24 : vector<1x32xbf16> to vector<1x32xf32>
    %26 = vector.broadcast %25 : vector<1x32xf32> to vector<64x32xf32>
    %27 = arith.addf %23, %26 : vector<64x32xf32>
    %28 = arith.truncf %27 : vector<64x32xf32> to vector<64x32xbf16>
    %c0_9 = arith.constant 0 : index
    %c0_10 = arith.constant 0 : index
    %29 = vector.load %arg4[%c0_9, %c0_10] : memref<64x32xbf16, #tpu.memory_space<vmem>>, vector<64x32xbf16>
    tpu.vector_store %arg4[%c0_9, %c0_10], %28 {strides = array<i32>} : memref<64x32xbf16, #tpu.memory_space<vmem>>, vector<64x32xbf16>,
    return
  }
  func.func @transform_0(%arg0: i32) -> (i32, i32) {
    %c0_i32 = arith.constant 0 : i32
    %c0_i32_0 = arith.constant 0 : i32
    return %arg0, %c0_i32 : i32, i32
  }
  func.func @transform_1(%arg0: i32) -> (i32, i32) {
    %c0_i32 = arith.constant 0 : i32
    %c0_i32_0 = arith.constant 0 : i32
    %c0_i32_1 = arith.constant 0 : i32
    return %c0_i32, %c0_i32_0 : i32, i32
  }
  func.func @transform_2(%arg0: i32) -> (i32, i32) {
    %c0_i32 = arith.constant 0 : i32
    %c0_i32_0 = arith.constant 0 : i32
    %c0_i32_1 = arith.constant 0 : i32
    return %c0_i32, %c0_i32_0 : i32, i32
  }
  func.func @transform_3(%arg0: i32) -> (i32, i32) {
    %c0_i32 = arith.constant 0 : i32
    %c0_i32_0 = arith.constant 0 : i32
    return %arg0, %c0_i32 : i32, i32
  }
}

module attributes {stable_mosaic.version = 11 : i64} {
  func.func @_posmod_dec_kernel(%arg0: i32, %arg1: memref<1x28x32xbf16, #tpu.memory_space<vmem>>, %arg2: memref<28x32xbf16, #tpu.memory_space<vmem>>, %arg3: memref<32x16xbf16, #tpu.memory_space<vmem>>, %arg4: memref<1x16xbf16, #tpu.memory_space<vmem>>, %arg5: memref<1x28x16xbf16, #tpu.memory_space<vmem>>) attributes {dimension_semantics = [#tpu.dimension_semantics<parallel>], iteration_bounds = array<i64: 2>, scalar_prefetch = 0 : i64, scratch_operands = 0 : i64, tpu.core_type = #tpu.core_type<tc>, window_params = [{transform_indices = @transform_0, window_bounds = array<i64: 1, 28, 32>}, {pipeline_mode = #tpu.pipeline_mode<synchronous>, transform_indices = @transform_1, window_bounds = array<i64: 28, 32>}, {pipeline_mode = #tpu.pipeline_mode<synchronous>, transform_indices = @transform_2, window_bounds = array<i64: 32, 16>}, {pipeline_mode = #tpu.pipeline_mode<synchronous>, transform_indices = @transform_3, window_bounds = array<i64: 1, 16>}, {transform_indices = @transform_4, window_bounds = array<i64: 1, 28, 16>}]} {
    %c0 = arith.constant 0 : index
    %c0_0 = arith.constant 0 : index
    %c0_1 = arith.constant 0 : index
    %0 = vector.load %arg1[%c0, %c0_0, %c0_1] : memref<1x28x32xbf16, #tpu.memory_space<vmem>>, vector<1x28x32xbf16>
    %1 = vector.shape_cast %0 : vector<1x28x32xbf16> to vector<28x32xbf16>
    %2 = arith.extf %1 : vector<28x32xbf16> to vector<28x32xf32>
    %c0_2 = arith.constant 0 : index
    %c0_3 = arith.constant 0 : index
    %3 = vector.load %arg2[%c0_2, %c0_3] : memref<28x32xbf16, #tpu.memory_space<vmem>>, vector<28x32xbf16>
    %4 = arith.extf %3 : vector<28x32xbf16> to vector<28x32xf32>
    %5 = arith.addf %2, %4 : vector<28x32xf32>
    %6 = arith.truncf %5 : vector<28x32xf32> to vector<28x32xbf16>
    %c0_4 = arith.constant 0 : index
    %c0_5 = arith.constant 0 : index
    %7 = vector.load %arg3[%c0_4, %c0_5] : memref<32x16xbf16, #tpu.memory_space<vmem>>, vector<32x16xbf16>
    %cst = arith.constant dense<0.000000e+00> : vector<28x16xf32>
    %8 = tpu.matmul %6, %7, %cst {dimension_numbers = #tpu.dot_dimension_numbers<[1], [0], [0], [1], [0, 0, 1, 1], [], []>} : vector<28x32xbf16>, vector<32x16xbf16>, vector<28x16xf32> -> vector<28x16xf32>
    %c0_6 = arith.constant 0 : index
    %c0_7 = arith.constant 0 : index
    %9 = vector.load %arg4[%c0_6, %c0_7] : memref<1x16xbf16, #tpu.memory_space<vmem>>, vector<1x16xbf16>
    %10 = arith.extf %9 : vector<1x16xbf16> to vector<1x16xf32>
    %11 = vector.broadcast %10 : vector<1x16xf32> to vector<28x16xf32>
    %12 = arith.addf %8, %11 : vector<28x16xf32>
    %13 = arith.truncf %12 : vector<28x16xf32> to vector<28x16xbf16>
    %c0_8 = arith.constant 0 : index
    %c0_9 = arith.constant 0 : index
    %c0_10 = arith.constant 0 : index
    %14 = vector.load %arg5[%c0_8, %c0_9, %c0_10] : memref<1x28x16xbf16, #tpu.memory_space<vmem>>, vector<1x28x16xbf16>
    %15 = vector.shape_cast %14 : vector<1x28x16xbf16> to vector<28x16xbf16>
    %16 = vector.shape_cast %13 : vector<28x16xbf16> to vector<1x28x16xbf16>
    tpu.vector_store %arg5[%c0_8, %c0_9, %c0_10], %16 {strides = array<i32>} : memref<1x28x16xbf16, #tpu.memory_space<vmem>>, vector<1x28x16xbf16>,
    return
  }
  func.func @transform_0(%arg0: i32) -> (i32, i32, i32) {
    %c0_i32 = arith.constant 0 : i32
    %c0_i32_0 = arith.constant 0 : i32
    %c0_i32_1 = arith.constant 0 : i32
    return %arg0, %c0_i32, %c0_i32_0 : i32, i32, i32
  }
  func.func @transform_1(%arg0: i32) -> (i32, i32) {
    %c0_i32 = arith.constant 0 : i32
    %c0_i32_0 = arith.constant 0 : i32
    %c0_i32_1 = arith.constant 0 : i32
    return %c0_i32, %c0_i32_0 : i32, i32
  }
  func.func @transform_2(%arg0: i32) -> (i32, i32) {
    %c0_i32 = arith.constant 0 : i32
    %c0_i32_0 = arith.constant 0 : i32
    %c0_i32_1 = arith.constant 0 : i32
    return %c0_i32, %c0_i32_0 : i32, i32
  }
  func.func @transform_3(%arg0: i32) -> (i32, i32) {
    %c0_i32 = arith.constant 0 : i32
    %c0_i32_0 = arith.constant 0 : i32
    %c0_i32_1 = arith.constant 0 : i32
    return %c0_i32, %c0_i32_0 : i32, i32
  }
  func.func @transform_4(%arg0: i32) -> (i32, i32, i32) {
    %c0_i32 = arith.constant 0 : i32
    %c0_i32_0 = arith.constant 0 : i32
    %c0_i32_1 = arith.constant 0 : i32
    return %arg0, %c0_i32, %c0_i32_0 : i32, i32, i32
  }
}

</mosaic_0001>

<bundles_post_ra>
// kernel: mbae_encoder_forward.16
= control target key start
LH: loop header
LB: loop body
LE: loop exit
PB: predicated region body
PF: predicated region fallthrough
CT: control target
= control target key end

     0   :  { %s325_s15 = smov 0   ;;  %s351_s0 = inlined_call_operand.vmem [shape: f32[2,8,1], index: 0, kind: input, shape index: {}]   ;;  %s352_s1 = inlined_call_operand.vmem [shape: bf16[1,32], index: 1, kind: input, shape index: {}]   ;;  %s353_s2 = inlined_call_operand.vmem [shape: bf16[1,32], index: 2, kind: input, shape index: {}]   ;;  %s354_s3 = inlined_call_operand.vmem [shape: bf16[8,32], index: 3, kind: input, shape index: {}]   ;;  %s355_s4 = inlined_call_operand.vmem [shape: bf16[2,8,32], index: 4, kind: output, shape index: {}]  }
   0x1 LB: > { %s272_s16 = sadd.s32 4294967295, %s297_s15   ;;  %p276_p0 = scmp.ge.s32.totalorder %s297_s15, 1  ;;  %s297_s15 = sphi %s325_s15, %s14_s15  }
   0x2   : > { %p161_p1 = scmp.lt.s32.totalorder %s297_s15, 3 }
   0x4   : > { %p162_p2 = pnand %p276_p0, %p161_p1 }
   0x5   : > { %p185_p3 = scmp.lt.s32.totalorder (!%p162_p2), %s272_s16, 1  ;;  %v299_v0 = vmov (!%p162_p2), 0   ;;  %v201_v2 = vlaneseq (!%p162_p2)  ;;  %v194_v4 = vld [vmem:[%s352_s1] sm:$0x1] (!%p162_p2)  ;;  %vm217_vm0 = vcmask (!%p162_p2), 257024  }
   0x6   : > { %165 = sbr.rel (%p162_p2) target bundleno = 154 (0x9a), region = 36  ;;  %290 = vset.pattern.permute.xlu0 (!%p162_p2), %v299_v0  ;;  %v206_v5 = vld [vmem:[%s353_s2] sm:$0x1] (!%p162_p2)  ;;  %v195_v6 = vunpack.c.l.bf16 (!%p162_p2), %v194_v4 }
   0x7   : > { %v202_v3 = vshrl.u32 (!%p162_p2), %v201_v2, 7  ;;  %v207_v8 = vunpack.c.l.bf16 (!%p162_p2), %v206_v5  ;;  %v213_v10 = vld [vmem:[%s354_s3] sm:$0xf] (!%p162_p2) }
   0x8   : > { %v214_v13 = vunpack.c.l.bf16 (!%p162_p2), %v213_v10 }
   0x9   : > { %v203_v7 = vsub.s32 (!%p162_p2), 0, %v202_v3 }
   0xb   : > { %v204_v9 = vrot.slane (!%p162_p2), %v195_v6, %v203_v7  ;;  %v211_v11 = vrot.slane (!%p162_p2), %v207_v8, %v203_v7 }
   0xd   : > { %s357_s16 = smov (!%p185_p3, %s272_s16), 1 }
   0xe   : > { %s277_s17 = sshll.u32 %s357_s16, 3  ;;  %s278_s27 = sshll.u32 %s357_s16, 2 }
   0xf   : > { %s188_s20 = scalar_lea.vmem %s351_s0, %s277_s17  ;;  %s192_s30 = scalar_lea.vmem %s355_s4, %s278_s27 }
  0x10   : > { %v193_v1 = vld [vmem:[%s188_s20] sm:$0xff] }
  0x11   : > { %198 = vperm.xlu0 %290, %v193_v1  }
  0x90   : > { %v199_v12 = vpop.permute.xlu0 %198 }
  0x91   : > { %v205_v14 = vmul.f32 %v204_v9, %v199_v12 }
  0x93   : > { %v212_v15 = vadd.f32 %v211_v11, %v205_v14 }
  0x95   : > { %v215_v16 = vadd.f32 %v214_v13, %v212_v15 }
  0x97   : > { %v216_v17 = vpack.c.bf16 %v215_v16, %v215_v16 }
  0x99   : > { %218 = vst.msk [vmem:[%s192_s30] sm:$0xf] %vm217_vm0, %v216_v17 }
  0x9a PF: > { %s14_s15 = sadd.s32 1, %s297_s15  }
  0x9b   : > { %p11_p4 = scmp.ge.s32.totalorder %s14_s15, 4  }
  0x9d   :  { %13 = sbr.rel (!%p11_p4) target bundleno = 1 (0x1), region = 66 }

// kernel: mbae_encoder_forward.17
= control target key start
LH: loop header
LB: loop body
LE: loop exit
PB: predicated region body
PF: predicated region fallthrough
CT: control target
= control target key end

     0   :  { %s493_s15 = smov 0   ;;  %s556_s0 = inlined_call_operand.vmem [shape: bf16[2,4,192], index: 0, kind: input, shape index: {}]   ;;  %s557_s1 = inlined_call_operand.vmem [shape: bf16[192,32], index: 1, kind: input, shape index: {}]   ;;  %s558_s2 = inlined_call_operand.vmem [shape: bf16[1,32], index: 2, kind: input, shape index: {}]   ;;  %s559_s3 = inlined_call_operand.vmem [shape: bf16[4,32], index: 3, kind: input, shape index: {}]   ;;  %s560_s4 = inlined_call_operand.vmem [shape: bf16[2,4,32], index: 4, kind: output, shape index: {}]  }
   0x1 LB: > { %s413_s16 = sadd.s32 4294967295, %s465_s15   ;;  %p417_p0 = scmp.ge.s32.totalorder %s465_s15, 1  ;;  %s465_s15 = sphi %s493_s15, %s14_s15  }
   0x2   : > { %p162_p1 = scmp.lt.s32.totalorder %s465_s15, 3 }
   0x4   : > { %p163_p2 = pnand %p417_p0, %p162_p1 }
   0x5   : > { %v447_v0 = vld [vmem:[%s557_s1] sm:$0xff] (!%p163_p2)   ;;  %v467_v1 = vmov (!%p163_p2), 0   ;;  %p187_p3 = scmp.lt.s32.totalorder (!%p163_p2), %s413_s16, 1  ;;  %v448_v2 = vld [vmem:[%s557_s1 + $0x8] sm:$0xff] (!%p163_p2)   ;;  %v449_v3 = vld [vmem:[%s557_s1 + $0x10] sm:$0xff] (!%p163_p2)   ;;  %vm310_vm0 = vcmask (!%p163_p2), 523264   ;;  %v224_v15 = vlaneseq (!%p163_p2) }
   0x6   : > { %166 = sbr.rel (%p163_p2) target bundleno = 273 (0x111), region = 36  ;;  %314 = vmatprep.subr.bf16.mxu0 (!%p163_p2), %v467_v1  ;;  %v450_v4 = vld [vmem:[%s557_s1 + $0x18] sm:$0xff] (!%p163_p2)   ;;  %v451_v7 = vld [vmem:[%s557_s1 + $0x20] sm:$0xff] (!%p163_p2)   ;;  %v452_v8 = vld [vmem:[%s557_s1 + $0x28] sm:$0xff] (!%p163_p2)   ;;  %vm358_vm1 = vcmask (!%p163_p2), 254976  }
   0x7   : > { %315 = vmatpush1.bf16.msra.mxu0 (!%p163_p2), %v447_v0  ;;  %v453_v9 = vld [vmem:[%s557_s1 + $0x30] sm:$0xff] (!%p163_p2)   ;;  %v454_v10 = vld [vmem:[%s557_s1 + $0x38] sm:$0xff] (!%p163_p2)   ;;  %v455_v11 = vld [vmem:[%s557_s1 + $0x40] sm:$0xff] (!%p163_p2)   ;;  %v225_v16 = vshrl.u32 (!%p163_p2), %v224_v15, 7 }
   0x8   : > { %316 = vmatprep.subr.bf16.mxu0 (!%p163_p2), %v467_v1  ;;  %v456_v12 = vld [vmem:[%s557_s1 + $0x48] sm:$0xff] (!%p163_p2)   ;;  %v457_v13 = vld [vmem:[%s557_s1 + $0x50] sm:$0xff] (!%p163_p2)   ;;  %v458_v14 = vld [vmem:[%s557_s1 + $0x58] sm:$0xff] (!%p163_p2)  }
   0x9   : > { %v222_v17 = vld [vmem:[%s558_s2] sm:$0x1] (!%p163_p2)  ;;  %v226_v19 = vsub.s32 (!%p163_p2), 0, %v225_v16 }
   0xa   : > { %v223_v18 = vunpack.c.l.bf16 (!%p163_p2), %v222_v17  ;;  %v354_v20 = vld [vmem:[%s559_s3] sm:$0x3] (!%p163_p2) }
   0xb   : > { %317 = vmatpush1.bf16.msra.mxu0 (!%p163_p2), %v448_v2  ;;  %v355_v22 = vunpack.c.l.bf16 (!%p163_p2), %v354_v20 }
   0xc   : > { %318 = vmatprep.subr.bf16.mxu0 (!%p163_p2), %v467_v1  ;;  %v227_v21 = vrot.slane (!%p163_p2), %v223_v18, %v226_v19 }
   0xd   : > { %s562_s16 = smov (!%p187_p3, %s413_s16), 1 }
   0xe   : > { %s437_s23 = sshll.u32 %s562_s16, 2  ;;  %s420_s25 = sshll.u32 %s562_s16, 1 }
   0xf   : > { %s191_s26 = scalar_lea.vmem %s556_s0, %s437_s23  ;;  %319 = vmatpush1.bf16.msra.mxu0 %v449_v3  ;;  %s195_s28 = scalar_lea.vmem %s560_s4, %s420_s25 }
  0x10   : > { %320 = vmatprep.subr.bf16.mxu0 %v467_v1  ;;  %v421_v5 = vld.sshfl [vmem:[%s191_s26] sm:$0x33 pattern:$0x76325410] }
  0x11   : > { %v236_v6 = vcombine.high %v421_v5, %v421_v5 }
  0x13   : > { %321 = vmatpush1.bf16.msra.mxu0 %v450_v4  ;;  %434 = vmatprep.mubr.msk.bf16.mxu0 %vm310_vm0, %v236_v6 }
  0x14   : > { %322 = vmatprep.subr.bf16.mxu0 %v467_v1 }
  0x17   : > { %323 = vmatpush1.bf16.msra.mxu0 %v451_v7 }
  0x18   : > { %324 = vmatprep.subr.bf16.mxu0 %v467_v1 }
  0x1b   : > { %325 = vmatpush1.bf16.msra.mxu0 %v452_v8 }
  0x1c   : > { %326 = vmatprep.subr.bf16.mxu0 %v467_v1 }
  0x1f   : > { %327 = vmatpush1.bf16.msra.mxu0 %v453_v9 }
  0x20   : > { %328 = vmatprep.subr.bf16.mxu0 %v467_v1 }
  0x23   : > { %329 = vmatpush1.bf16.msra.mxu0 %v454_v10 }
  0x24   : > { %330 = vmatprep.subr.bf16.mxu0 %v467_v1 }
  0x27   : > { %331 = vmatpush1.bf16.msra.mxu0 %v455_v11 }
  0x28   : > { %332 = vmatprep.subr.bf16.mxu0 %v467_v1 }
  0x2b   : > { %333 = vmatpush1.bf16.msra.mxu0 %v456_v12 }
  0x2c   : > { %334 = vmatprep.subr.bf16.mxu0 %v467_v1 }
  0x2f   : > { %335 = vmatpush1.bf16.msra.mxu0 %v457_v13 }
  0x30   : > { %336 = vmatprep.subr.bf16.mxu0 %v467_v1 }
  0x33   : > { %337 = vmatpush1.bf16.msra.mxu0 %v458_v14 }
  0x36   : > { %347 = vmatmul.mubr.bf16.vlgmr.msra.gmra.mrb[0].mxu0 %v421_v5 }
 0x109   : > { %v348_v23 = vpop.f32.mrb[0].mxu0 }
 0x10a   : > { %v349_v24 = vadd.f32 %v348_v23, %v227_v21  ;;  %v350_v25 = vpop.f32.mrb[1].mxu0 }
 0x10b   : > { %v351_v26 = vpop.f32.mrb[2].mxu0 }
 0x10c   : > { %v356_v27 = vadd.f32 %v355_v22, %v349_v24  ;;  %v352_v28 = vpop.f32.mrb[3].mxu0 }
 0x10e   : > { %v357_v29 = vpack.c.bf16 %v356_v27, %v356_v27 }
 0x110   : > { %359 = vst.msk [vmem:[%s195_s28] sm:$0x3] %vm358_vm1, %v357_v29 }
 0x111 PF: > { %s14_s15 = sadd.s32 1, %s465_s15  }
 0x112   : > { %p11_p4 = scmp.ge.s32.totalorder %s14_s15, 4  }
 0x114   :  { %13 = sbr.rel (!%p11_p4) target bundleno = 1 (0x1), region = 66 }

// kernel: mbae_encoder_forward.19
= control target key start
LH: loop header
LB: loop body
LE: loop exit
PB: predicated region body
PF: predicated region fallthrough
CT: control target
= control target key end

     0   :  { %vm19_vm0 = vcmask 785408   ;;  %v257_v0 = vmov 0.0   ;;  %vm258_vm1 = vmmov 0   ;;  %vm69_vm2 = vcmask 261120   ;;  %s336_s1 = inlined_call_operand.vmem [shape: bf16[32,96], index: 1, kind: input, shape index: {}]   ;;  %s337_s0 = inlined_call_operand.vmem [shape: bf16[48,32], index: 0, kind: input, shape index: {}]   ;;  %s338_s2 = inlined_call_operand.vmem [shape: bf16[1,96], index: 2, kind: input, shape index: {}]   ;;  %s339_s3 = inlined_call_operand.vmem [shape: bf16[48,96], index: 3, kind: output, shape index: {}]  }
   0x1   :  { %246 = vmatprep.subr.bf16.mxu1 %v257_v0  ;;  %v252_v1 = vld [vmem:[%s336_s1] sm:$0xff]   ;;  %230 = vmatprep.subr.bf16.mxu0 %v257_v0  ;;  %22 = vst.msk [vmem:[#allocation2 + $0x10] sm:$0xff] %vm19_vm0, %v257_v0  ;;  %20 = vst.msk [vmem:[#allocation2] sm:$0xff] %vm19_vm0, %v257_v0  ;;  %v253_v2 = vld [vmem:[%s336_s1 + $0x8] sm:$0xff]   ;;  %v160_v6 = vlaneseq  ;;  %vm194_vm3 = vcmask 781312  }
   0x2   :  { %21 = vst.msk [vmem:[#allocation2 + $0x8] sm:$0xff] %vm19_vm0, %v257_v0  ;;  %23 = vst.msk [vmem:[#allocation2 + $0x18] sm:$0xff] %vm19_vm0, %v257_v0  ;;  %238 = vmatprep.mubr.msk.bf16.mxu1 %vm258_vm1, %v257_v0  ;;  %234 = vmatprep.mubr.msk.bf16.mxu0 %vm258_vm1, %v257_v0  ;;  %v254_v3 = vld [vmem:[%s337_s0 + $0x8] sm:$0xff]   ;;  %v255_v4 = vld [vmem:[%s337_s0] sm:$0xff]  }
   0x3   :  { %24 = vst.msk [vmem:[#allocation2 + $0x20] sm:$0xff] %vm19_vm0, %v257_v0  ;;  %25 = vst.msk [vmem:[#allocation2 + $0x28] sm:$0xff] %vm19_vm0, %v257_v0  ;;  %248 = vmatpush3.bf16.msra.mxu1 %v252_v1  ;;  %231 = vmatpush3.bf16.msra.mxu0 %v252_v1  ;;  %v256_v5 = vld [vmem:[%s337_s0 + $0x10] sm:$0xff]   ;;  %v161_v9 = vshrl.u32 %v160_v6, 7  ;;  %v158_v11 = vld [vmem:[%s338_s2] sm:$0x1] }
   0x4   :  { %247 = vmatprep.subr.bf16.mxu1 %v257_v0  ;;  %232 = vmatprep.subr.bf16.mxu0 %v257_v0  ;;  %v159_v21 = vunpack.c.l.bf16 %v158_v11 }
   0x5   :  { %v162_v22 = vsub.s32 0, %v161_v9 }
   0x7   :  { %249 = vmatpush3.bf16.msra.mxu1 %v253_v2  ;;  %233 = vmatpush3.bf16.msra.mxu0 %v253_v2  ;;  %v163_v28 = vrot.slane %v159_v21, %v162_v22 }
   0x8   :  { %v28_v7 = vld [vmem:[#allocation2 + $0x10] sm:$0xff]  ;;  %v26_v8 = vld [vmem:[#allocation2] sm:$0xff] }
   0x9   :  { %v29_v12 = vld [vmem:[#allocation2 + $0x18] sm:$0xff]  ;;  %v27_v14 = vld [vmem:[#allocation2 + $0x8] sm:$0xff] }
   0xa   :  { %239 = vmatmul.mubr.msk.bf16.vlgmr.msra.gmra.mrb[0].mxu1 %vm69_vm2, %v254_v3  ;;  %235 = vmatmul.mubr.msk.bf16.vlgmr.msra.gmra.mrb[0].mxu0 %vm69_vm2, %v255_v4  ;;  %v30_v27 = vld [vmem:[#allocation2 + $0x20] sm:$0xff]  ;;  %v31_v30 = vld [vmem:[#allocation2 + $0x28] sm:$0xff] }
   0xb   :  { %242 = vmatprep.mubr.msk.bf16.mxu1 %vm258_vm1, %v257_v0 }
  0x12   :  { %243 = vmatmul.mubr.msk.bf16.gmra.mrb[4].mxu1 %vm69_vm2, %v256_v5 }
  0xdd   :  { %v121_v10 = vpop.f32.mrb[0].mxu1  ;;  %v113_v13 = vpop.f32.mrb[0].mxu0 }
  0xde   :  { %v138_v15 = vadd.f32 %v121_v10, %v28_v7  ;;  %v240_v16 = vpop.f32.mrb[1].mxu1  ;;  %v136_v17 = vadd.f32 %v113_v13, %v26_v8  ;;  %v236_v18 = vpop.f32.mrb[1].mxu0 }
  0xdf   :  { %v124_v19 = vpop.f32.mrb[2].mxu1  ;;  %v116_v20 = vpop.f32.mrb[2].mxu0 }
  0xe0   :  { %145 = vst.msk [vmem:[#allocation2 + $0x10] sm:$0xff] %vm19_vm0, %v138_v15  ;;  %v139_v23 = vadd.f32 %v124_v19, %v29_v12  ;;  %v241_v24 = vpop.f32.mrb[3].mxu1  ;;  %143 = vst.msk [vmem:[#allocation2] sm:$0xff] %vm19_vm0, %v136_v17  ;;  %v137_v25 = vadd.f32 %v116_v20, %v27_v14  ;;  %v237_v26 = vpop.f32.mrb[3].mxu0 }
  0xe2   :  { %146 = vst.msk [vmem:[#allocation2 + $0x18] sm:$0xff] %vm19_vm0, %v139_v23  ;;  %144 = vst.msk [vmem:[#allocation2 + $0x8] sm:$0xff] %vm19_vm0, %v137_v25 }
  0xe5   :  { %v129_v29 = vpop.f32.mrb[4].mxu1 }
  0xe6   :  { %v140_v31 = vadd.f32 %v129_v29, %v30_v27  ;;  %v244_v32 = vpop.f32.mrb[5].mxu1 }
  0xe7   :  { %v154_v33 = vld [vmem:[#allocation2 + $0x10] sm:$0xff]  ;;  %v152_v34 = vld [vmem:[#allocation2] sm:$0xff]  ;;  %v132_v35 = vpop.f32.mrb[6].mxu1 }
  0xe8   :  { %v166_v36 = vadd.f32 %v163_v28, %v154_v33  ;;  %v164_v37 = vadd.f32 %v163_v28, %v152_v34  ;;  %147 = vst.msk [vmem:[#allocation2 + $0x20] sm:$0xff] %vm19_vm0, %v140_v31  ;;  %v141_v38 = vadd.f32 %v132_v35, %v31_v30  ;;  %v245_v39 = vpop.f32.mrb[7].mxu1 }
  0xe9   :  { %v155_v40 = vld [vmem:[#allocation2 + $0x18] sm:$0xff]  ;;  %v153_v41 = vld [vmem:[#allocation2 + $0x8] sm:$0xff] }
  0xea   :  { %v221_v42 = vpack.c.bf16 %v166_v36, %v166_v36  ;;  %v167_v43 = vadd.f32 %v163_v28, %v155_v40  ;;  %v219_v44 = vpack.c.bf16 %v164_v37, %v164_v37  ;;  %v165_v45 = vadd.f32 %v163_v28, %v153_v41  ;;  %148 = vst.msk [vmem:[#allocation2 + $0x28] sm:$0xff] %vm19_vm0, %v141_v38 }
  0xec   :  { %197 = vst.msk [vmem:[%s339_s3 + $0x8] sm:$0xf] %vm194_vm3, %v221_v42  ;;  %v222_v46 = vpack.c.bf16 %v167_v43, %v167_v43  ;;  %195 = vst.msk [vmem:[%s339_s3] sm:$0xf] %vm194_vm3, %v219_v44  ;;  %v220_v47 = vpack.c.bf16 %v165_v45, %v165_v45 }
  0xee   :  { %198 = vst.msk [vmem:[%s339_s3 + $0xc] sm:$0xf] %vm194_vm3, %v222_v46  ;;  %196 = vst.msk [vmem:[%s339_s3 + $0x4] sm:$0xf] %vm194_vm3, %v220_v47 }
  0xef   :  { %v156_v48 = vld [vmem:[#allocation2 + $0x20] sm:$0xff] }
  0xf0   :  { %v168_v49 = vadd.f32 %v163_v28, %v156_v48 }
  0xf1   :  { %v157_v50 = vld [vmem:[#allocation2 + $0x28] sm:$0xff] }
  0xf2   :  { %v223_v51 = vpack.c.bf16 %v168_v49, %v168_v49  ;;  %v169_v52 = vadd.f32 %v163_v28, %v157_v50 }
  0xf4   :  { %199 = vst.msk [vmem:[%s339_s3 + $0x10] sm:$0xf] %vm194_vm3, %v223_v51  ;;  %v224_v53 = vpack.c.bf16 %v169_v52, %v169_v52 }
  0xf6   :  { %200 = vst.msk [vmem:[%s339_s3 + $0x14] sm:$0xf] %vm194_vm3, %v224_v53 }

// kernel: mbae_encoder_forward.18
= control target key start
LH: loop header
LB: loop body
LE: loop exit
PB: predicated region body
PF: predicated region fallthrough
CT: control target
= control target key end

     0   :  { %vm26_vm0 = vcmask 261120   ;;  %v108_v47 = vlaneseq  ;;  %vm154_vm1 = vcmask 257024   ;;  %s304_s0 = inlined_call_operand.vmem [shape: bf16[48,32], index: 0, kind: input, shape index: {}]   ;;  %s305_s1 = inlined_call_operand.vmem [shape: bf16[1,32], index: 1, kind: input, shape index: {}]   ;;  %s306_s2 = inlined_call_operand.vmem [shape: bf16[1,32], index: 2, kind: input, shape index: {}]   ;;  %s307_s3 = inlined_call_operand.vmem [shape: bf16[48,32], index: 3, kind: output, shape index: {}]  }
   0x1   :  { %v178_v0 = vld [vmem:[%s304_s0] sm:$0xff]   ;;  %v189_v1 = vld [vmem:[%s304_s0 + $0x8] sm:$0xff]   ;;  %v190_v6 = vld [vmem:[%s304_s0 + $0x10] sm:$0xff]  }
   0x2   :  { %v179_v2 = vunpack.c.l.bf16 %v178_v0  ;;  %v183_v3 = vunpack.c.l.bf16 %v189_v1  ;;  %v180_v4 = vunpack.c.h.bf16 %v178_v0  ;;  %v184_v5 = vunpack.c.h.bf16 %v189_v1  ;;  %v106_v54 = vld [vmem:[%s305_s1] sm:$0x1] }
   0x3   :  { %v187_v11 = vunpack.c.l.bf16 %v190_v6  ;;  %v188_v12 = vunpack.c.h.bf16 %v190_v6  ;;  %v109_v53 = vshrl.u32 %v108_v47, 7  ;;  %v118_v59 = vld [vmem:[%s306_s2] sm:$0x1]  ;;  %v107_v62 = vunpack.c.l.bf16 %v106_v54 }
   0x4   :  { %v27_v7 = vsel %vm26_vm0, %v179_v2, 0.0  ;;  %v33_v8 = vsel %vm26_vm0, %v183_v3, 0.0  ;;  %v30_v9 = vsel %vm26_vm0, %v180_v4, 0.0  ;;  %v36_v10 = vsel %vm26_vm0, %v184_v5, 0.0 }
   0x5   :  { %28 = vadd.xlane.f32.xlu0 %v27_v7  ;;  %34 = vadd.xlane.f32.xlu1 %v33_v8  ;;  %v39_v13 = vsel %vm26_vm0, %v187_v11, 0.0  ;;  %v42_v14 = vsel %vm26_vm0, %v188_v12, 0.0  ;;  %v110_v63 = vsub.s32 0, %v109_v53 }
   0x9   :  { %31 = vadd.xlane.f32.xlu0 %v30_v9  ;;  %37 = vadd.xlane.f32.xlu1 %v36_v10 }
   0xd   :  { %40 = vadd.xlane.f32.xlu0 %v39_v13  ;;  %43 = vadd.xlane.f32.xlu1 %v42_v14 }
  0x92   :  { %v29_v15 = vpop.xlane.xlu0 %28  ;;  %v35_v16 = vpop.xlane.xlu1 %34 }
  0x93   :  { %v46_v17 = vmul.f32 0.03125, %v29_v15  ;;  %v48_v18 = vmul.f32 0.03125, %v35_v16 }
  0x95   :  { %v238_v19 = vsub.f32 %v179_v2, %v46_v17  ;;  %v240_v20 = vsub.f32 %v183_v3, %v48_v18  ;;  %v119_v2 = vunpack.c.l.bf16 %v118_v59 }
  0x96   :  { %v32_v21 = vpop.xlane.xlu0 %31  ;;  %v38_v22 = vpop.xlane.xlu1 %37 }
  0x97   :  { %v47_v23 = vmul.f32 0.03125, %v32_v21  ;;  %v49_v24 = vmul.f32 0.03125, %v38_v22  ;;  %v58_v25 = vmul.f32 %v238_v19, %v238_v19  ;;  %v60_v26 = vmul.f32 %v240_v20, %v240_v20 }
  0x98   :  { %v123_v8 = vrot.slane %v119_v2, %v110_v63 }
  0x99   :  { %v246_v27 = vsub.f32 %v180_v4, %v47_v23  ;;  %v248_v28 = vsub.f32 %v184_v5, %v49_v24  ;;  %v64_v29 = vsel %vm26_vm0, %v58_v25, 0.0  ;;  %v70_v32 = vsel %vm26_vm0, %v60_v26, 0.0 }
  0x9a   :  { %65 = vadd.xlane.f32.xlu0 %v64_v29  ;;  %v41_v30 = vpop.xlane.xlu0 %40  ;;  %v44_v31 = vpop.xlane.xlu1 %43  ;;  %v111_v5 = vrot.slane %v107_v62, %v110_v63 }
  0x9b   :  { %v50_v33 = vmul.f32 0.03125, %v41_v30  ;;  %v51_v34 = vmul.f32 0.03125, %v44_v31  ;;  %v59_v35 = vmul.f32 %v246_v27, %v246_v27  ;;  %v61_v36 = vmul.f32 %v248_v28, %v248_v28 }
  0x9d   :  { %v256_v37 = vsub.f32 %v187_v11, %v50_v33  ;;  %v258_v38 = vsub.f32 %v188_v12, %v51_v34  ;;  %v67_v39 = vsel %vm26_vm0, %v59_v35, 0.0  ;;  %v73_v40 = vsel %vm26_vm0, %v61_v36, 0.0 }
  0x9e   :  { %71 = vadd.xlane.f32.xlu0 %v70_v32  ;;  %68 = vadd.xlane.f32.xlu1 %v67_v39 }
  0x9f   :  { %v62_v41 = vmul.f32 %v256_v37, %v256_v37  ;;  %v63_v42 = vmul.f32 %v258_v38, %v258_v38 }
  0xa1   :  { %v76_v43 = vsel %vm26_vm0, %v62_v41, 0.0  ;;  %v79_v44 = vsel %vm26_vm0, %v63_v42, 0.0 }
  0xa2   :  { %74 = vadd.xlane.f32.xlu1 %v73_v40  ;;  %77 = vadd.xlane.f32.xlu0 %v76_v43 }
  0xa6   :  { %80 = vadd.xlane.f32.xlu1 %v79_v44 }
 0x127   :  { %v66_v45 = vpop.xlane.xlu0 %65 }
 0x128   :  { %v82_v46 = vmul.f32 0.03125, %v66_v45 }
 0x12a   :  { %v88_v48 = vadd.f32 1e-05, %v82_v46 }
 0x12b   :  { %v69_v49 = vpop.xlane.xlu1 %68  ;;  %v72_v50 = vpop.xlane.xlu0 %71 }
 0x12c   :  { %191 = vrsqrt.f32 %v88_v48  ;;  %v83_v51 = vmul.f32 0.03125, %v69_v49  ;;  %v84_v52 = vmul.f32 0.03125, %v72_v50 }
 0x12e   :  { %v89_v55 = vadd.f32 1e-05, %v83_v51  ;;  %v90_v56 = vadd.f32 1e-05, %v84_v52 }
 0x12f   :  { %v75_v57 = vpop.xlane.xlu1 %74  ;;  %v78_v58 = vpop.xlane.xlu0 %77 }
 0x130   :  { %193 = vrsqrt.f32 %v89_v55  ;;  %v85_v60 = vmul.f32 0.03125, %v75_v57  ;;  %v86_v61 = vmul.f32 0.03125, %v78_v58 }
 0x131   :  { %195 = vrsqrt.f32 %v90_v56 }
 0x132   :  { %v91_v0 = vadd.f32 1e-05, %v85_v60  ;;  %v92_v1 = vadd.f32 1e-05, %v86_v61 }
 0x133   :  { %v81_v3 = vpop.xlane.xlu1 %80 }
 0x134   :  { %197 = vrsqrt.f32 %v91_v0  ;;  %v87_v4 = vmul.f32 0.03125, %v81_v3 }
 0x135   :  { %199 = vrsqrt.f32 %v92_v1 }
 0x136   :  { %v192_v6 = vpop.eup %191  ;;  %v93_v7 = vadd.f32 1e-05, %v87_v4 }
 0x137   :  { %v100_v9 = vmul.f32 %v192_v6, %v238_v19 }
 0x138   :  { %201 = vrsqrt.f32 %v93_v7 }
 0x139   :  { %v112_v10 = vmul.f32 %v111_v5, %v100_v9 }
 0x13a   :  { %v194_v11 = vpop.eup %193 }
 0x13b   :  { %v196_v12 = vpop.eup %195  ;;  %v124_v13 = vadd.f32 %v123_v8, %v112_v10  ;;  %v101_v14 = vmul.f32 %v194_v11, %v246_v27 }
 0x13c   :  { %v102_v15 = vmul.f32 %v196_v12, %v240_v20 }
 0x13d   :  { %v171_v16 = vpack.c.bf16 %v124_v13, %v124_v13  ;;  %v113_v17 = vmul.f32 %v111_v5, %v101_v14 }
 0x13e   :  { %v198_v18 = vpop.eup %197  ;;  %v114_v21 = vmul.f32 %v111_v5, %v102_v15 }
 0x13f   :  { %v200_v22 = vpop.eup %199  ;;  %155 = vst.msk [vmem:[%s307_s3] sm:$0xf] %vm154_vm1, %v171_v16  ;;  %v125_v19 = vadd.f32 %v123_v8, %v113_v17  ;;  %v103_v23 = vmul.f32 %v198_v18, %v248_v28 }
 0x140   :  { %v126_v24 = vadd.f32 %v123_v8, %v114_v21  ;;  %v104_v25 = vmul.f32 %v200_v22, %v256_v37 }
 0x141   :  { %v172_v26 = vpack.c.bf16 %v125_v19, %v125_v19  ;;  %v115_v27 = vmul.f32 %v111_v5, %v103_v23 }
 0x142   :  { %v202_v29 = vpop.eup %201  ;;  %v173_v20 = vpack.c.bf16 %v126_v24, %v126_v24  ;;  %v116_v30 = vmul.f32 %v111_v5, %v104_v25 }
 0x143   :  { %156 = vst.msk [vmem:[%s307_s3 + $0x4] sm:$0xf] %vm154_vm1, %v172_v26  ;;  %v127_v31 = vadd.f32 %v123_v8, %v115_v27  ;;  %v105_v32 = vmul.f32 %v202_v29, %v258_v38 }
 0x144   :  { %157 = vst.msk [vmem:[%s307_s3 + $0x8] sm:$0xf] %vm154_vm1, %v173_v20  ;;  %v128_v28 = vadd.f32 %v123_v8, %v116_v30 }
 0x145   :  { %v174_v33 = vpack.c.bf16 %v127_v31, %v127_v31  ;;  %v117_v34 = vmul.f32 %v111_v5, %v105_v32 }
 0x146   :  { %v175_v35 = vpack.c.bf16 %v128_v28, %v128_v28 }
 0x147   :  { %158 = vst.msk [vmem:[%s307_s3 + $0xc] sm:$0xf] %vm154_vm1, %v174_v33  ;;  %v129_v36 = vadd.f32 %v123_v8, %v117_v34 }
 0x148   :  { %159 = vst.msk [vmem:[%s307_s3 + $0x10] sm:$0xf] %vm154_vm1, %v175_v35 }
 0x149   :  { %v176_v37 = vpack.c.bf16 %v129_v36, %v129_v36 }
 0x14b   :  { %160 = vst.msk [vmem:[%s307_s3 + $0x14] sm:$0xf] %vm154_vm1, %v176_v37 }

// kernel: mbae_encoder_forward.21
= control target key start
LH: loop header
LB: loop body
LE: loop exit
PB: predicated region body
PF: predicated region fallthrough
CT: control target
= control target key end

     0   :  { %v368_v0 = vmov 0.0   ;;  %vm369_vm0 = vmmov 0   ;;  %vm67_vm1 = vcmask 261120   ;;  %v36_v6 = vlaneseq  ;;  %s510_s2 = inlined_call_operand.vmem [shape: bf16[32,32], index: 2, kind: input, shape index: {}]   ;;  %s511_s0 = inlined_call_operand.vmem [shape: bf16[48,32], index: 0, kind: input, shape index: {}]   ;;  %s512_s3 = inlined_call_operand.vmem [shape: bf16[1,32], index: 3, kind: input, shape index: {}]   ;;  %s513_s1 = inlined_call_operand.vmem [shape: bf16[48,32], index: 1, kind: input, shape index: {}, may-alias: {1,6}]   ;;  %s514_s4 = inlined_call_operand.vmem [shape: bf16[1,32], index: 4, kind: input, shape index: {}]   ;;  %s515_s5 = inlined_call_operand.vmem [shape: bf16[1,32], index: 5, kind: input, shape index: {}]   ;;  %s516_s6 = inlined_call_operand.vmem [shape: bf16[48,32], index: 6, kind: output, shape index: {}, may-alias: {1,6}]  }
   0x1   :  { %329 = vmatprep.subr.bf16.mxu0 %v368_v0  ;;  %345 = vmatprep.subr.bf16.mxu1 %v368_v0  ;;  %v351_v1 = vld [vmem:[%s510_s2] sm:$0xff]   ;;  %v352_v2 = vld [vmem:[%s510_s2 + $0x8] sm:$0xff]   ;;  %v355_v5 = vld [vmem:[%s511_s0 + $0x10] sm:$0xff]   ;;  %vm279_vm2 = vcmask 257024  }
   0x2   :  { %333 = vmatprep.mubr.msk.bf16.mxu0 %vm369_vm0, %v368_v0  ;;  %337 = vmatprep.mubr.msk.bf16.mxu1 %vm369_vm0, %v368_v0  ;;  %v353_v3 = vld [vmem:[%s511_s0] sm:$0xff]   ;;  %v354_v4 = vld [vmem:[%s511_s0 + $0x8] sm:$0xff]   ;;  %v37_v7 = vshrl.u32 %v36_v6, 7  ;;  %v323_v32 = vld [vmem:[%s513_s1 + $0x10] sm:$0xff]  }
   0x3   :  { %330 = vmatpush3.bf16.msra.mxu0 %v351_v1  ;;  %347 = vmatpush3.bf16.msra.mxu1 %v351_v1  ;;  %v34_v8 = vld [vmem:[%s512_s3] sm:$0x1]  ;;  %v322_v11 = vld [vmem:[%s513_s1 + $0x8] sm:$0xff]   ;;  %v320_v37 = vunpack.c.l.bf16 %v323_v32  ;;  %v321_v43 = vunpack.c.h.bf16 %v323_v32 }
   0x4   :  { %331 = vmatprep.subr.bf16.mxu0 %v368_v0  ;;  %346 = vmatprep.subr.bf16.mxu1 %v368_v0  ;;  %v35_v9 = vunpack.c.l.bf16 %v34_v8  ;;  %v429_v10 = vsub.s32 0, %v37_v7  ;;  %v311_v12 = vld [vmem:[%s513_s1] sm:$0xff]   ;;  %v316_v14 = vunpack.c.l.bf16 %v322_v11  ;;  %v317_v22 = vunpack.c.h.bf16 %v322_v11 }
   0x5   :  { %v312_v15 = vunpack.c.l.bf16 %v311_v12  ;;  %v313_v23 = vunpack.c.h.bf16 %v311_v12 }
   0x6   :  { %v39_v13 = vrot.slane %v35_v9, %v429_v10 }
   0x7   :  { %332 = vmatpush3.bf16.msra.mxu0 %v352_v2  ;;  %348 = vmatpush3.bf16.msra.mxu1 %v352_v2 }
   0xa   :  { %334 = vmatmul.mubr.msk.bf16.vlgmr.msra.gmra.mrb[0].mxu0 %vm67_vm1, %v353_v3  ;;  %338 = vmatmul.mubr.msk.bf16.vlgmr.msra.gmra.mrb[0].mxu1 %vm67_vm1, %v354_v4 }
   0xb   :  { %341 = vmatprep.mubr.msk.bf16.mxu1 %vm369_vm0, %v368_v0 }
  0x12   :  { %342 = vmatmul.mubr.msk.bf16.gmra.mrb[4].mxu1 %vm67_vm1, %v355_v5 }
  0xdd   :  { %v111_v16 = vpop.f32.mrb[0].mxu0  ;;  %v119_v17 = vpop.f32.mrb[0].mxu1 }
  0xde   :  { %v112_v18 = vadd.f32 %v111_v16, %v39_v13  ;;  %v120_v19 = vadd.f32 %v119_v17, %v39_v13  ;;  %v335_v20 = vpop.f32.mrb[1].mxu0  ;;  %v339_v21 = vpop.f32.mrb[1].mxu1 }
  0xdf   :  { %v114_v24 = vpop.f32.mrb[2].mxu0  ;;  %v122_v25 = vpop.f32.mrb[2].mxu1 }
  0xe0   :  { %v115_v26 = vadd.f32 %v114_v24, %v39_v13  ;;  %v123_v27 = vadd.f32 %v122_v25, %v39_v13  ;;  %v336_v28 = vpop.f32.mrb[3].mxu0  ;;  %v340_v29 = vpop.f32.mrb[3].mxu1  ;;  %v148_v30 = vadd.f32 %v316_v14, %v120_v19  ;;  %v146_v31 = vadd.f32 %v312_v15, %v112_v18  ;;  %v231_v25 = vld [vmem:[%s514_s4] sm:$0x1] }
  0xe2   :  { %v158_v33 = vsel %vm67_vm1, %v148_v30, 0.0  ;;  %v152_v34 = vsel %vm67_vm1, %v146_v31, 0.0  ;;  %v149_v35 = vadd.f32 %v317_v22, %v123_v27  ;;  %v147_v36 = vadd.f32 %v313_v23, %v115_v26 }
  0xe3   :  { %159 = vadd.xlane.f32.xlu1 %v158_v33  ;;  %153 = vadd.xlane.f32.xlu0 %v152_v34  ;;  %v232_v33 = vunpack.c.l.bf16 %v231_v25 }
  0xe4   :  { %v161_v41 = vsel %vm67_vm1, %v149_v35, 0.0  ;;  %v155_v42 = vsel %vm67_vm1, %v147_v36, 0.0 }
  0xe5   :  { %v127_v38 = vpop.f32.mrb[4].mxu1 }
  0xe6   :  { %v128_v39 = vadd.f32 %v127_v38, %v39_v13  ;;  %v343_v40 = vpop.f32.mrb[5].mxu1 }
  0xe7   :  { %162 = vadd.xlane.f32.xlu1 %v161_v41  ;;  %v130_v44 = vpop.f32.mrb[6].mxu1  ;;  %156 = vadd.xlane.f32.xlu0 %v155_v42 }
  0xe8   :  { %v131_v45 = vadd.f32 %v130_v44, %v39_v13  ;;  %v344_v46 = vpop.f32.mrb[7].mxu1  ;;  %v150_v47 = vadd.f32 %v320_v37, %v128_v39  ;;  %v236_v39 = vrot.slane %v232_v33, %v429_v10 }
  0xea   :  { %v164_v48 = vsel %vm67_vm1, %v150_v47, 0.0  ;;  %v151_v49 = vadd.f32 %v321_v43, %v131_v45 }
  0xeb   :  { %165 = vadd.xlane.f32.xlu0 %v164_v48 }
  0xec   :  { %v167_v50 = vsel %vm67_vm1, %v151_v49, 0.0 }
  0xed   :  { %168 = vadd.xlane.f32.xlu1 %v167_v50 }
 0x170   :  { %v160_v51 = vpop.xlane.xlu1 %159  ;;  %v154_v52 = vpop.xlane.xlu0 %153 }
 0x171   :  { %v173_v53 = vmul.f32 0.03125, %v160_v51  ;;  %v171_v54 = vmul.f32 0.03125, %v154_v52 }
 0x173   :  { %v447_v55 = vsub.f32 %v148_v30, %v173_v53  ;;  %v449_v56 = vsub.f32 %v146_v31, %v171_v54  ;;  %v243_v30 = vld [vmem:[%s515_s5] sm:$0x1] }
 0x174   :  { %v163_v57 = vpop.xlane.xlu1 %162  ;;  %v157_v58 = vpop.xlane.xlu0 %156 }
 0x175   :  { %v174_v59 = vmul.f32 0.03125, %v163_v57  ;;  %v172_v60 = vmul.f32 0.03125, %v157_v58  ;;  %v183_v61 = vmul.f32 %v449_v56, %v449_v56  ;;  %v185_v62 = vmul.f32 %v447_v55, %v447_v55 }
 0x177   :  { %v455_v63 = vsub.f32 %v149_v35, %v174_v59  ;;  %v178_v0 = vsub.f32 %v147_v36, %v172_v60  ;;  %v189_v1 = vsel %vm67_vm1, %v183_v61, 0.0  ;;  %v195_v6 = vsel %vm67_vm1, %v185_v62, 0.0 }
 0x178   :  { %190 = vadd.xlane.f32.xlu0 %v189_v1  ;;  %v166_v2 = vpop.xlane.xlu0 %165  ;;  %v244_v36 = vunpack.c.l.bf16 %v243_v30 }
 0x179   :  { %v175_v3 = vmul.f32 0.03125, %v166_v2  ;;  %v184_v4 = vmul.f32 %v178_v0, %v178_v0  ;;  %v186_v11 = vmul.f32 %v455_v63, %v455_v63 }
 0x17a   :  { %v169_v5 = vpop.xlane.xlu1 %168  ;;  %v248_v42 = vrot.slane %v244_v36, %v429_v10 }
 0x17b   :  { %v459_v7 = vsub.f32 %v150_v47, %v175_v3  ;;  %v176_v8 = vmul.f32 0.03125, %v169_v5  ;;  %v192_v9 = vsel %vm67_vm1, %v184_v4, 0.0  ;;  %v198_v14 = vsel %vm67_vm1, %v186_v11, 0.0 }
 0x17c   :  { %196 = vadd.xlane.f32.xlu0 %v195_v6  ;;  %193 = vadd.xlane.f32.xlu1 %v192_v9 }
 0x17d   :  { %v464_v12 = vsub.f32 %v151_v49, %v176_v8  ;;  %v187_v13 = vmul.f32 %v459_v7, %v459_v7 }
 0x17f   :  { %v201_v15 = vsel %vm67_vm1, %v187_v13, 0.0  ;;  %v188_v16 = vmul.f32 %v464_v12, %v464_v12 }
 0x180   :  { %199 = vadd.xlane.f32.xlu1 %v198_v14  ;;  %202 = vadd.xlane.f32.xlu0 %v201_v15 }
 0x181   :  { %v204_v17 = vsel %vm67_vm1, %v188_v16, 0.0 }
 0x184   :  { %205 = vadd.xlane.f32.xlu1 %v204_v17 }
 0x205   :  { %v191_v18 = vpop.xlane.xlu0 %190 }
 0x206   :  { %v207_v19 = vmul.f32 0.03125, %v191_v18 }
 0x208   :  { %v213_v20 = vadd.f32 1e-05, %v207_v19 }
 0x209   :  { %v194_v21 = vpop.xlane.xlu1 %193  ;;  %v197_v22 = vpop.xlane.xlu0 %196 }
 0x20a   :  { %356 = vrsqrt.f32 %v213_v20  ;;  %v208_v23 = vmul.f32 0.03125, %v194_v21  ;;  %v209_v24 = vmul.f32 0.03125, %v197_v22 }
 0x20c   :  { %v214_v26 = vadd.f32 1e-05, %v208_v23  ;;  %v215_v27 = vadd.f32 1e-05, %v209_v24 }
 0x20d   :  { %v200_v28 = vpop.xlane.xlu1 %199  ;;  %v203_v29 = vpop.xlane.xlu0 %202 }
 0x20e   :  { %358 = vrsqrt.f32 %v214_v26  ;;  %v210_v31 = vmul.f32 0.03125, %v200_v28  ;;  %v211_v32 = vmul.f32 0.03125, %v203_v29 }
 0x20f   :  { %360 = vrsqrt.f32 %v215_v27 }
 0x210   :  { %v216_v34 = vadd.f32 1e-05, %v210_v31  ;;  %v217_v35 = vadd.f32 1e-05, %v211_v32 }
 0x211   :  { %v206_v37 = vpop.xlane.xlu1 %205 }
 0x212   :  { %362 = vrsqrt.f32 %v216_v34  ;;  %v212_v38 = vmul.f32 0.03125, %v206_v37 }
 0x213   :  { %364 = vrsqrt.f32 %v217_v35 }
 0x214   :  { %v357_v40 = vpop.eup %356  ;;  %v218_v41 = vadd.f32 1e-05, %v212_v38 }
 0x215   :  { %v225_v43 = vmul.f32 %v357_v40, %v449_v56 }
 0x216   :  { %366 = vrsqrt.f32 %v218_v41 }
 0x217   :  { %v237_v44 = vmul.f32 %v236_v39, %v225_v43 }
 0x218   :  { %v359_v45 = vpop.eup %358 }
 0x219   :  { %v361_v46 = vpop.eup %360  ;;  %v249_v47 = vadd.f32 %v248_v42, %v237_v44  ;;  %v226_v48 = vmul.f32 %v359_v45, %v178_v0 }
 0x21a   :  { %v227_v49 = vmul.f32 %v361_v46, %v447_v55 }
 0x21b   :  { %v304_v50 = vpack.c.bf16 %v249_v47, %v249_v47  ;;  %v238_v51 = vmul.f32 %v236_v39, %v226_v48 }
 0x21c   :  { %v363_v52 = vpop.eup %362  ;;  %v239_v53 = vmul.f32 %v236_v39, %v227_v49 }
 0x21d   :  { %v365_v54 = vpop.eup %364  ;;  %280 = vst.msk [vmem:[%s516_s6] sm:$0xf] %vm279_vm2, %v304_v50  ;;  %v250_v10 = vadd.f32 %v248_v42, %v238_v51  ;;  %v228_v56 = vmul.f32 %v363_v52, %v455_v63 }
 0x21e   :  { %v251_v57 = vadd.f32 %v248_v42, %v239_v53  ;;  %v229_v58 = vmul.f32 %v365_v54, %v459_v7 }
 0x21f   :  { %v305_v59 = vpack.c.bf16 %v250_v10, %v250_v10  ;;  %v240_v60 = vmul.f32 %v236_v39, %v228_v56 }
 0x220   :  { %v367_v61 = vpop.eup %366  ;;  %v306_v55 = vpack.c.bf16 %v251_v57, %v251_v57  ;;  %v241_v62 = vmul.f32 %v236_v39, %v229_v58 }
 0x221   :  { %281 = vst.msk [vmem:[%s516_s6 + $0x4] sm:$0xf] %vm279_vm2, %v305_v59  ;;  %v252_v0 = vadd.f32 %v248_v42, %v240_v60  ;;  %v230_v1 = vmul.f32 %v367_v61, %v464_v12 }
 0x222   :  { %282 = vst.msk [vmem:[%s516_s6 + $0x8] sm:$0xf] %vm279_vm2, %v306_v55  ;;  %v253_v63 = vadd.f32 %v248_v42, %v241_v62 }
 0x223   :  { %v307_v2 = vpack.c.bf16 %v252_v0, %v252_v0  ;;  %v242_v3 = vmul.f32 %v236_v39, %v230_v1 }
 0x224   :  { %v308_v4 = vpack.c.bf16 %v253_v63, %v253_v63 }
 0x225   :  { %283 = vst.msk [vmem:[%s516_s6 + $0xc] sm:$0xf] %vm279_vm2, %v307_v2  ;;  %v254_v5 = vadd.f32 %v248_v42, %v242_v3 }
 0x226   :  { %284 = vst.msk [vmem:[%s516_s6 + $0x10] sm:$0xf] %vm279_vm2, %v308_v4 }
 0x227   :  { %v309_v6 = vpack.c.bf16 %v254_v5, %v254_v5 }
 0x229   :  { %285 = vst.msk [vmem:[%s516_s6 + $0x14] sm:$0xf] %vm279_vm2, %v309_v6 }

// kernel: mbae_encoder_forward.20
= control target key start
LH: loop header
LB: loop body
LE: loop exit
PB: predicated region body
PF: predicated region fallthrough
CT: control target
= control target key end

     0   :  { %s1018_s18 = smov 0   ;;  %s1020_s19 = smov 0   ;;  %s1122_s0 = inlined_call_operand.vmem [shape: bf16[3,2,2,18,16], index: 0, kind: input, shape index: {}, may-alias: {0,1,2}]   ;;  %s1123_s1 = inlined_call_operand.vmem [shape: bf16[3,2,2,18,16], index: 1, kind: input, shape index: {}, may-alias: {0,1,2}]   ;;  %s1124_s2 = inlined_call_operand.vmem [shape: bf16[3,2,2,18,16], index: 2, kind: input, shape index: {}, may-alias: {0,1,2}]   ;;  %s1125_s3 = inlined_call_operand.vmem [shape: f32[2,1,18], index: 3, kind: input, shape index: {}]   ;;  %s1126_s4 = inlined_call_operand.vmem [shape: bf16[2,2,18,16], index: 4, kind: output, shape index: {0}]   ;;  %s1127_s5 = inlined_call_operand.vmem [shape: bf16[2,18,18], index: 5, kind: output, shape index: {1}]  }
   0x1   :  { %s1022_s20 = smov 0   ;;  %s1024_s21 = smov 0  }
   0x2   :  { %s1026_s22 = smov 0  }
   0x3 LB: > { %s25_s23 = sadd.s32 1, %s977_s20  ;;  %s28_s24 = sadd.s32 1, %s981_s21  ;;  %s985_s22 = sphi %s1026_s22, %s16_s22   ;;  %s981_s21 = sphi %s1024_s21, %s1133_s21   ;;  %s977_s20 = sphi %s1022_s20, %s1132_s20   ;;  %s973_s19 = sphi %s1020_s19, %s1131_s19   ;;  %s969_s18 = sphi %s1018_s18, %s1130_s18  }
   0x4   : > { %p26_p0 = scmp.ge.s32.totalorder %s25_s23, 2  ;;  %p819_p1 = scmp.ge.s32.totalorder %s985_s22, 1 }
   0x5   : > { %p252_p2 = scmp.lt.s32.totalorder %s985_s22, 5 }
   0x6   : > { %s1135_s23 = smov (%p26_p0, %s25_s23), 0  ;;  %s1137_s24 = smov (!%p26_p0, %s28_s24), %s981_s21 }
   0x7   : > { %p253_p3 = pnand %p819_p1, %p252_p2  ;;  %p30_p4 = scmp.ge.s32.totalorder %s1137_s24, 2 }
   0x8   : > { %p316_p5 = scmp.lt.s32.totalorder (!%p253_p3), %s973_s19, 1  ;;  %p318_p6 = scmp.lt.s32.totalorder (!%p253_p3), %s969_s18, 1 }
   0x9   : > { %s1139_s24 = smov (%p30_p4, %s1137_s24), 0  ;;  %256 = sbr.rel (%p253_p3) target bundleno = 802 (0x322), region = 36 }
   0xa   : > { %1128 = sst [smem:[#allocation3_spill]] %s1139_s24  ;;  %p825_p7 = scmp.ne.s32.totalorder (!%p253_p3), %s969_s18, 0 }
  0x10   : > { %s1141_s19 = smov (!%p316_p5, %s973_s19), 1  ;;  %vm367_vm0 = vcmask (!%p825_p7), 146432   ;;  %vm370_vm1 = vcmask (!%p825_p7), 140288   ;;  %v987_v0 = vmov (!%p825_p7), 0.0  }
  0x11   : > { %s319_s25 = scalar_select %p318_p6, %s969_s18, 1 }
  0x12   : > { %s886_s26 = smul.u32 6, %s1141_s19  ;;  %s347_s29 = scalar_lea.vmem %s1125_s3, %s1141_s19  ;;  %368 = vst.msk [vmem:[#allocation2] sm:$0xff] (!%p825_p7), %vm367_vm0, %v987_v0  ;;  %369 = vst.msk [vmem:[#allocation2 + $0x8] sm:$0xff] (!%p825_p7), %vm367_vm0, %v987_v0 }
  0x13   : > { %s885_s30 = smul.u32 3, %s319_s25  ;;  %371 = vst.msk [vmem:[#allocation2 + $0x10] sm:$0x3] (!%p825_p7), %vm370_vm1, %v987_v0 }
  0x14   : > { %s887_s6 = smul.u32 12, %s1141_s19 }
  0x15   : > { %s322_s7 = sadd.s32 %s886_s26, %s885_s30  ;;  %366 = sbr.rel (%p825_p7) target bundleno = 28 (0x1c), region = 40 }
  0x16   : > { %s820_s8 = sshll.u32 %s322_s7, 2  ;;  %s1063_s11 = scalar_lea.vmem %s1127_s5, %s887_s6 }
  0x17   : > { %s324_s14 = scalar_lea.vmem %s1122_s0, %s820_s8  ;;  %s727_s17 = scalar_lea.vmem %s1123_s1, %s820_s8 }
  0x18   : > { %s1074_s25 = scalar_lea.vmem %s1124_s2, %s820_s8  ;;  %s1079_s30 = scalar_lea.vmem %s1126_s4, %s820_s8 }
  0x1c PF: > { %v929_v1 = vld [vmem:[%s727_s17 + $0x30] sm:$0xff]   ;;  %vm397_vm2 = vcmask 130048   ;;  %v930_v2 = vld [vmem:[%s727_s17 + $0x38] ss:$0 sps:$4 sm:$0x11]   ;;  %v931_v3 = vld [vmem:[%s324_s14] sm:$0xff]  }
  0x1d   : > { %882 = vmatprep.subr.msk.bf16.mxu0 %vm397_vm2, %v929_v1  ;;  %v405_v4 = vsel %vm397_vm2, %v929_v1, 0  ;;  %870 = vmatprep.mubr.msk.bf16.mxu0 %vm397_vm2, %v931_v3  ;;  %v408_v5 = vsel %vm397_vm2, %v930_v2, 0  ;;  %v932_v6 = vld [vmem:[%s324_s14 + $0x8] ss:$0 sps:$4 sm:$0x11]   ;;  %vm478_vm3 = vcmask 140288  }
  0x1e   : > { %867 = vmatpush3.bf16.xpose.msra.mxu0 %v405_v4  ;;  %v838_v8 = vld [vmem:[%s347_s29] ss:$0 sm:$0xff]  ;;  %vm471_vm4 = vcmask 146432   ;;  %v934_v37 = vld [vmem:[%s1074_s25 + $0x68] ss:$0 sps:$4 sm:$0x11]  }
  0x1f   : > { %883 = vmatprep.subr.msk.bf16.mxu0 %vm397_vm2, %v930_v2  ;;  %v933_v36 = vld [vmem:[%s1074_s25 + $0x60] sm:$0xff]   ;;  %vm532_vm5 = vcmask 1040384   ;;  %v508_v47 = vld [vmem:[#allocation2 + $0x10] sm:$0x3]  ;;  %v507_v49 = vld [vmem:[#allocation2 + $0x8] sm:$0xff]  ;;  %vm600_vm6 = vcmask 122880  }
  0x20   : > { %874 = vmatprep.subr.bf16.mxu1 %v933_v36  ;;  %v534_v38 = vsel %vm532_vm5, %v934_v37, 0  ;;  %v506_v43 = vld [vmem:[#allocation2] sm:$0xff]  ;;  %vm597_vm7 = vcmask 125952   ;;  %p846_p8 = scmp.ne.s32.totalorder %s969_s18, 1 }
  0x21   : > { %875 = vmatpush3.bf16.msra.mxu1 %v933_v36  ;;  %vm625_vm8 = vcmask (!%p846_p8), 142336   ;;  %vm628_vm9 = vcmask (!%p846_p8), 139264  }
  0x22   : > { %884 = vmatprep.subr.msk.bf16.mxu1 %vm532_vm5, %v934_v37 }
  0x25   : > { %877 = vmatpush3.bf16.msra.mxu1 %v534_v38 }
  0x26   : > { %869 = vmatpush3.bf16.xpose.msra.mxu0 %v408_v5 }
  0x2d   : > { %871 = vmatmul.mubr.msk.bf16.vlgmr.msra.gmra.mrb[0].mxu0 %vm397_vm2, %v932_v6 }
 0x100   : > { %v872_v7 = vpop.f32.mrb[0].mxu0 }
 0x101   : > { %v460_v9 = vmul.f32 0.25, %v872_v7  ;;  %v444_v10 = vpop.f32.mrb[1].mxu0 }
 0x102   : > { %v458_v11 = vmul.f32 0.25, %v444_v10  ;;  %v873_v12 = vpop.f32.mrb[2].mxu0 }
 0x103   : > { %v447_v13 = vpop.f32.mrb[3].mxu0  ;;  %v470_v14 = vadd.f32 %v838_v8, %v460_v9 }
 0x104   : > { %v459_v15 = vmul.f32 0.25, %v447_v13  ;;  %v468_v16 = vadd.f32 %v838_v8, %v458_v11 }
 0x105   : > { %v479_v17 = vsel %vm478_vm3, %v470_v14, -inf }
 0x106   : > { %v469_v18 = vadd.f32 %v838_v8, %v459_v15  ;;  %480 = vmax.xlane.f32.xlu1 %v479_v17  ;;  %v472_v19 = vsel %vm471_vm4, %v468_v16, -inf }
 0x107   : > { %473 = vmax.xlane.f32.xlu0 %v472_v19 }
 0x108   : > { %v475_v20 = vsel %vm471_vm4, %v469_v18, -inf }
 0x10b   : > { %476 = vmax.xlane.f32.xlu0 %v475_v20 }
 0x193   : > { %v481_v21 = vpop.xlane.xlu1 %480 }
 0x194   : > { %v484_v22 = vsub.f32 %v470_v14, %v481_v21  ;;  %v474_v23 = vpop.xlane.xlu0 %473 }
 0x195   : > { %v482_v24 = vsub.f32 %v468_v16, %v474_v23 }
 0x196   : > { %v489_v25 = vmul.f32 1.442695, %v484_v22 }
 0x197   : > { %v485_v26 = vmul.f32 1.442695, %v482_v24 }
 0x198   : > { %v477_v27 = vpop.xlane.xlu0 %476 }
 0x199   : > { %935 = vpow2.f32 %v485_v26  ;;  %v483_v28 = vsub.f32 %v469_v18, %v477_v27 }
 0x19a   : > { %937 = vpow2.f32 %v489_v25 }
 0x19b   : > { %v487_v29 = vmul.f32 1.442695, %v483_v28 }
 0x19d   : > { %939 = vpow2.f32 %v487_v29 }
 0x1a3   : > { %v936_v30 = vpop.eup %935 }
 0x1a4   : > { %v491_v31 = vsel %vm471_vm4, %v936_v30, 0.0  ;;  %v938_v32 = vpop.eup %937 }
 0x1a5   : > { %492 = vadd.xlane.f32.xlu1 %v491_v31  ;;  %v497_v34 = vsel %vm478_vm3, %v938_v32, 0.0 }
 0x1a7   : > { %v940_v33 = vpop.eup %939 }
 0x1a8   : > { %v494_v35 = vsel %vm471_vm4, %v940_v33, 0.0 }
 0x1a9   : > { %498 = vadd.xlane.f32.xlu1 %v497_v34  ;;  %495 = vadd.xlane.f32.xlu0 %v494_v35 }
 0x232   : > { %v493_v39 = vpop.xlane.xlu1 %492 }
 0x233   : > { %941 = vrcp.f32 %v493_v39 }
 0x236   : > { %v499_v40 = vpop.xlane.xlu1 %498  ;;  %v496_v41 = vpop.xlane.xlu0 %495 }
 0x237   : > { %943 = vrcp.f32 %v499_v40 }
 0x238   : > { %945 = vrcp.f32 %v496_v41 }
 0x23d   : > { %v942_v42 = vpop.eup %941 }
 0x23e   : > { %v503_v44 = vmul.f32 %v942_v42, %v936_v30 }
 0x240   : > { %v509_v45 = vadd.f32 %v506_v43, %v503_v44 }
 0x241   : > { %v944_v46 = vpop.eup %943 }
 0x242   : > { %v946_v48 = vpop.eup %945  ;;  %512 = vst.msk [vmem:[#allocation2] sm:$0xff] %vm471_vm4, %v509_v45  ;;  %v505_v50 = vmul.f32 %v944_v46, %v938_v32 }
 0x243   : > { %v504_v51 = vmul.f32 %v946_v48, %v940_v33 }
 0x244   : > { %v511_v52 = vadd.f32 %v508_v47, %v505_v50  ;;  %v516_v53 = vpack.c.bf16 %v505_v50, %v505_v50 }
 0x245   : > { %v510_v54 = vadd.f32 %v507_v49, %v504_v51  ;;  %v515_v55 = vpack.c.bf16 %v504_v51, %v503_v44 }
 0x246   : > { %514 = vst.msk [vmem:[#allocation2 + $0x10] sm:$0x3] %vm478_vm3, %v511_v52 }
 0x247   : > { %513 = vst.msk [vmem:[#allocation2 + $0x8] sm:$0xff] %vm471_vm4, %v510_v54  ;;  %878 = vmatprep.mubr.msk.bf16.mxu1 %vm471_vm4, %v515_v55 }
 0x248   : > { %879 = vmatmul.mubr.msk.bf16.vlgmr.msra.gmra.mrb[0].mxu1 %vm471_vm4, %v516_v53 }
 0x249   : > { %v606_v63 = vld [vmem:[#allocation2] sm:$0xff] (!%p846_p8) }
 0x24a   : > { %v609_v2 = vmul.f32 (!%p846_p8), 0.5, %v606_v63 }
 0x24c   : > { %v855_v5 = vpack.c.bf16 (!%p846_p8), %v609_v2, %v609_v2 }
 0x24d   : > { %v608_v1 = vld [vmem:[#allocation2 + $0x10] sm:$0x3] (!%p846_p8) }
 0x24e   : > { %v607_v0 = vld [vmem:[#allocation2 + $0x8] sm:$0xff] (!%p846_p8)  ;;  %v611_v4 = vmul.f32 (!%p846_p8), 0.5, %v608_v1  ;;  %626 = vst.msk [vmem:[%s1063_s11] sm:$0xf] (!%p846_p8), %vm625_vm8, %v855_v5 }
 0x24f   : > { %v610_v3 = vmul.f32 (!%p846_p8), 0.5, %v607_v0 }
 0x250   : > { %v857_v7 = vpack.c.bf16 (!%p846_p8), %v611_v4, %v611_v4 }
 0x251   : > { %v856_v6 = vpack.c.bf16 (!%p846_p8), %v610_v3, %v610_v3 }
 0x252   : > { %629 = vst.msk [vmem:[%s1063_s11 + $0x8] sm:$0x1] (!%p846_p8), %vm628_vm9, %v857_v7 }
 0x253   : > { %627 = vst.msk [vmem:[%s1063_s11 + $0x4] sm:$0xf] (!%p846_p8), %vm625_vm8, %v856_v6 }
 0x31b   : > { %v880_v56 = vpop.f32.mrb[0].mxu1  ;;  %605 = sbr.rel (%p846_p8) target bundleno = 802 (0x322), region = 44 }
 0x31c   : > { %v854_v57 = vpack.c.bf16 %v880_v56, %v880_v56  ;;  %v570_v58 = vpop.f32.mrb[1].mxu1 }
 0x31d   : > { %v852_v59 = vpack.c.bf16 %v570_v58, %v570_v58  ;;  %v881_v60 = vpop.f32.mrb[2].mxu1 }
 0x31e   : > { %601 = vst.msk [vmem:[%s1079_s30 + $0x8] sm:$0x1] %vm600_vm6, %v854_v57  ;;  %v573_v61 = vpop.f32.mrb[3].mxu1 }
 0x31f   : > { %598 = vst.msk [vmem:[%s1079_s30] sm:$0xf] %vm597_vm7, %v852_v59  ;;  %v853_v62 = vpack.c.bf16 %v573_v61, %v573_v61 }
 0x321   : > { %599 = vst.msk [vmem:[%s1079_s30 + $0x4] sm:$0xf] %vm597_vm7, %v853_v62 }
 0x322 PF: > { %s16_s22 = sadd.s32 1, %s985_s22   ;;  %s1129_s29 = sld [smem:[#allocation3_spill]] }
 0x323   : > { %p13_p9 = scmp.ge.s32.totalorder %s16_s22, 6   ;;  %s1130_s18 = smov %s977_s20 }
 0x324   : > { %s1131_s19 = smov %s981_s21  ;;  %s1132_s20 = smov %s1135_s23 }
 0x325   :  { %15 = sbr.rel (!%p13_p9) target bundleno = 3 (0x3), region = 95 }
 0x328   : > { %s1133_s21 = smov %s1129_s29 }

// kernel: mbae_encoder_forward.22
= control target key start
LH: loop header
LB: loop body
LE: loop exit
PB: predicated region body
PF: predicated region fallthrough
CT: control target
= control target key end

     0   :  { %vm31_vm0 = vcmask 261120   ;;  %v606_v0 = vmov 0.0   ;;  %vm607_vm1 = vmmov 0   ;;  %v50_v10 = vlaneseq  ;;  %s811_s1 = inlined_call_operand.vmem [shape: bf16[32,64], index: 1, kind: input, shape index: {}]   ;;  %s812_s0 = inlined_call_operand.vmem [shape: bf16[48,32], index: 0, kind: input, shape index: {}, may-alias: {0,7}]   ;;  %s813_s3 = inlined_call_operand.vmem [shape: bf16[64,32], index: 3, kind: input, shape index: {}]   ;;  %s814_s2 = inlined_call_operand.vmem [shape: bf16[1,64], index: 2, kind: input, shape index: {}]   ;;  %s815_s4 = inlined_call_operand.vmem [shape: bf16[1,32], index: 4, kind: input, shape index: {}]   ;;  %s816_s5 = inlined_call_operand.vmem [shape: bf16[1,32], index: 5, kind: input, shape index: {}]   ;;  %s817_s6 = inlined_call_operand.vmem [shape: bf16[1,32], index: 6, kind: input, shape index: {}]   ;;  %s818_s7 = inlined_call_operand.vmem [shape: bf16[48,32], index: 7, kind: output, shape index: {}, may-alias: {0,7}]  }
   0x1   :  { %532 = vmatprep.subr.bf16.mxu0 %v606_v0  ;;  %v570_v1 = vld [vmem:[%s811_s1] sm:$0xff]   ;;  %536 = vmatprep.mubr.msk.bf16.mxu0 %vm607_vm1, %v606_v0  ;;  %32 = vst.msk [vmem:[#allocation2] sm:$0xff] %vm31_vm0, %v606_v0  ;;  %33 = vst.msk [vmem:[#allocation2 + $0x8] sm:$0xff] %vm31_vm0, %v606_v0  ;;  %v571_v2 = vld [vmem:[%s811_s1 + $0x8] sm:$0xff]   ;;  %vm243_vm2 = vcmask 523264   ;;  %vm482_vm3 = vcmask 257024  }
   0x2   :  { %34 = vst.msk [vmem:[#allocation2 + $0x10] sm:$0xff] %vm31_vm0, %v606_v0  ;;  %35 = vst.msk [vmem:[#allocation2 + $0x18] sm:$0xff] %vm31_vm0, %v606_v0  ;;  %548 = vmatprep.subr.bf16.mxu1 %v606_v0  ;;  %556 = vmatprep.mubr.msk.bf16.mxu1 %vm607_vm1, %v606_v0  ;;  %v675_v3 = vld [vmem:[%s812_s0] sm:$0xff]   ;;  %v685_v4 = vld [vmem:[%s812_s0 + $0x8] sm:$0xff]   ;;  %v51_v11 = vshrl.u32 %v50_v10, 7 }
   0x3   :  { %36 = vst.msk [vmem:[#allocation2 + $0x20] sm:$0xff] %vm31_vm0, %v606_v0  ;;  %37 = vst.msk [vmem:[#allocation2 + $0x28] sm:$0xff] %vm31_vm0, %v606_v0  ;;  %533 = vmatpush3.bf16.msra.mxu0 %v570_v1  ;;  %v694_v5 = vld [vmem:[%s812_s0 + $0x10] sm:$0xff]   ;;  %v575_v6 = vld [vmem:[%s813_s3] sm:$0xff]  }
   0x4   :  { %534 = vmatprep.subr.bf16.mxu0 %v606_v0  ;;  %549 = vmatpush3.bf16.msra.mxu1 %v575_v6  ;;  %v576_v7 = vld [vmem:[%s813_s3 + $0x8] sm:$0xff]   ;;  %v577_v8 = vld [vmem:[%s813_s3 + $0x10] sm:$0xff]   ;;  %v578_v9 = vld [vmem:[%s813_s3 + $0x18] sm:$0xff]   ;;  %v716_v14 = vsub.s32 0, %v51_v11 }
   0x5   :  { %550 = vmatprep.subr.bf16.mxu1 %v606_v0  ;;  %v48_v12 = vld [vmem:[%s814_s2] sm:$0x1] }
   0x6   :  { %v49_v13 = vunpack.c.l.bf16 %v48_v12 }
   0x7   :  { %535 = vmatpush3.bf16.msra.mxu0 %v571_v2 }
   0x8   :  { %551 = vmatpush3.bf16.msra.mxu1 %v576_v7  ;;  %v53_v15 = vrot.slane %v49_v13, %v716_v14 }
   0x9   :  { %552 = vmatprep.subr.bf16.mxu1 %v606_v0 }
   0xa   :  { %537 = vmatmul.mubr.msk.bf16.vlgmr.msra.gmra.mrb[0].mxu0 %vm31_vm0, %v675_v3 }
   0xb   :  { %540 = vmatprep.mubr.msk.bf16.mxu0 %vm607_vm1, %v606_v0 }
   0xc   :  { %553 = vmatpush3.bf16.msra.mxu1 %v577_v8 }
   0xd   :  { %554 = vmatprep.subr.bf16.mxu1 %v606_v0 }
  0x10   :  { %555 = vmatpush3.bf16.msra.mxu1 %v578_v9 }
  0x12   :  { %541 = vmatmul.mubr.msk.bf16.gmra.mrb[4].mxu0 %vm31_vm0, %v685_v4 }
  0x13   :  { %544 = vmatprep.mubr.msk.bf16.mxu0 %vm607_vm1, %v606_v0 }
  0x1a   :  { %545 = vmatmul.mubr.msk.bf16.gmra.mrb[8].mxu0 %vm31_vm0, %v694_v5 }
  0xdd   :  { %v125_v16 = vpop.f32.mrb[0].mxu0 }
  0xde   :  { %v126_v17 = vadd.f32 %v125_v16, %v53_v15  ;;  %v538_v18 = vpop.f32.mrb[1].mxu0 }
  0xdf   :  { %v128_v19 = vpop.f32.mrb[2].mxu0 }
  0xe0   :  { %v148_v20 = vmul.f32 %v126_v17, %v126_v17  ;;  %v129_v21 = vadd.f32 %v128_v19, %v53_v15  ;;  %v539_v22 = vpop.f32.mrb[3].mxu0 }
  0xe2   :  { %v154_v23 = vmul.f32 %v148_v20, %v126_v17  ;;  %v149_v24 = vmul.f32 %v129_v21, %v129_v21 }
  0xe4   :  { %v160_v25 = vmul.f32 0.044715, %v154_v23  ;;  %v155_v26 = vmul.f32 %v149_v24, %v129_v21 }
  0xe5   :  { %v133_v27 = vpop.f32.mrb[4].mxu0 }
  0xe6   :  { %v166_v28 = vadd.f32 %v160_v25, %v126_v17  ;;  %v161_v29 = vmul.f32 0.044715, %v155_v26  ;;  %v134_v30 = vadd.f32 %v133_v27, %v53_v15  ;;  %v542_v31 = vpop.f32.mrb[5].mxu0 }
  0xe7   :  { %v136_v32 = vpop.f32.mrb[6].mxu0 }
  0xe8   :  { %v172_v33 = vmul.f32 0.7978846, %v166_v28  ;;  %v167_v34 = vadd.f32 %v161_v29, %v129_v21  ;;  %v150_v35 = vmul.f32 %v134_v30, %v134_v30  ;;  %v137_v36 = vadd.f32 %v136_v32, %v53_v15  ;;  %v543_v37 = vpop.f32.mrb[7].mxu0 }
  0xea   :  { %582 = vtanh.f32 %v172_v33  ;;  %v173_v38 = vmul.f32 0.7978846, %v167_v34  ;;  %v156_v39 = vmul.f32 %v150_v35, %v134_v30  ;;  %v151_v40 = vmul.f32 %v137_v36, %v137_v36  ;;  %v202_v33 = vld [vmem:[#allocation2] sm:$0xff]  ;;  %v203_v34 = vld [vmem:[#allocation2 + $0x8] sm:$0xff] }
  0xec   :  { %584 = vtanh.f32 %v173_v38  ;;  %v162_v41 = vmul.f32 0.044715, %v156_v39  ;;  %v157_v42 = vmul.f32 %v151_v40, %v137_v36  ;;  %v343_v38 = vld [vmem:[%s815_s4] sm:$0x1] }
  0xed   :  { %v141_v43 = vpop.f32.mrb[8].mxu0  ;;  %v344_v40 = vunpack.c.l.bf16 %v343_v38 }
  0xee   :  { %v168_v44 = vadd.f32 %v162_v41, %v134_v30  ;;  %v163_v45 = vmul.f32 0.044715, %v157_v42  ;;  %v142_v46 = vadd.f32 %v141_v43, %v53_v15  ;;  %v546_v47 = vpop.f32.mrb[9].mxu0  ;;  %v204_v41 = vld [vmem:[#allocation2 + $0x10] sm:$0xff]  ;;  %v325_v42 = vunpack.c.l.bf16 %v675_v3 }
  0xef   :  { %v144_v48 = vpop.f32.mrb[10].mxu0  ;;  %v348_v47 = vrot.slane %v344_v40, %v716_v14 }
  0xf0   :  { %v174_v49 = vmul.f32 0.7978846, %v168_v44  ;;  %v169_v50 = vadd.f32 %v163_v45, %v137_v36  ;;  %v152_v51 = vmul.f32 %v142_v46, %v142_v46  ;;  %v145_v52 = vadd.f32 %v144_v48, %v53_v15  ;;  %v547_v53 = vpop.f32.mrb[11].mxu0  ;;  %v205_v44 = vld [vmem:[#allocation2 + $0x18] sm:$0xff] }
  0xf1   :  { %v326_v48 = vunpack.c.h.bf16 %v675_v3 }
  0xf2   :  { %586 = vtanh.f32 %v174_v49  ;;  %v175_v54 = vmul.f32 0.7978846, %v169_v50  ;;  %v158_v55 = vmul.f32 %v152_v51, %v142_v46  ;;  %v153_v56 = vmul.f32 %v145_v52, %v145_v52 }
  0xf4   :  { %v583_v57 = vpop.eup %582  ;;  %588 = vtanh.f32 %v175_v54  ;;  %v164_v58 = vmul.f32 0.044715, %v158_v55  ;;  %v159_v59 = vmul.f32 %v153_v56, %v145_v52 }
  0xf5   :  { %v184_v60 = vadd.f32 1.0, %v583_v57  ;;  %v206_v57 = vld [vmem:[#allocation2 + $0x20] sm:$0xff] }
  0xf6   :  { %v585_v61 = vpop.eup %584  ;;  %v170_v62 = vadd.f32 %v164_v58, %v142_v46  ;;  %v165_v63 = vmul.f32 0.044715, %v159_v59 }
  0xf7   :  { %v190_v1 = vmul.f32 0.5, %v184_v60  ;;  %v185_v2 = vadd.f32 1.0, %v585_v61  ;;  %v327_v60 = vunpack.c.l.bf16 %v685_v4  ;;  %v207_v61 = vld [vmem:[#allocation2 + $0x28] sm:$0xff] }
  0xf8   :  { %v176_v6 = vmul.f32 0.7978846, %v170_v62  ;;  %v171_v7 = vadd.f32 %v165_v63, %v145_v52 }
  0xf9   :  { %v191_v8 = vmul.f32 0.5, %v185_v2  ;;  %v196_v10 = vmul.f32 %v190_v1, %v126_v17  ;;  %v328_v1 = vunpack.c.h.bf16 %v685_v4  ;;  %v329_v4 = vunpack.c.l.bf16 %v694_v5 }
  0xfa   :  { %590 = vtanh.f32 %v176_v6  ;;  %v177_v9 = vmul.f32 0.7978846, %v171_v7 }
  0xfb   :  { %v197_v11 = vmul.f32 %v191_v8, %v129_v21 }
  0xfc   :  { %v587_v12 = vpop.eup %586  ;;  %592 = vtanh.f32 %v177_v9 }
  0xfd   :  { %v186_v13 = vadd.f32 1.0, %v587_v12  ;;  %v208_v15 = vpack.c.bf16 %v197_v11, %v196_v10 }
  0xfe   :  { %v589_v16 = vpop.eup %588 }
  0xff   :  { %v192_v18 = vmul.f32 0.5, %v186_v13  ;;  %v187_v19 = vadd.f32 1.0, %v589_v16  ;;  %557 = vmatmul.mubr.msk.bf16.vlgmr.msra.gmra.mrb[0].mxu1 %vm243_vm2, %v208_v15 }
 0x100   :  { %560 = vmatprep.mubr.msk.bf16.mxu1 %vm607_vm1, %v606_v0 }
 0x101   :  { %v193_v20 = vmul.f32 0.5, %v187_v19  ;;  %v198_v22 = vmul.f32 %v192_v18, %v134_v30  ;;  %v330_v18 = vunpack.c.h.bf16 %v694_v5 }
 0x103   :  { %v199_v23 = vmul.f32 %v193_v20, %v137_v36 }
 0x104   :  { %v591_v24 = vpop.eup %590 }
 0x105   :  { %v188_v25 = vadd.f32 1.0, %v591_v24  ;;  %v209_v17 = vpack.c.bf16 %v199_v23, %v198_v22 }
 0x106   :  { %v593_v21 = vpop.eup %592 }
 0x107   :  { %v194_v26 = vmul.f32 0.5, %v188_v25  ;;  %v189_v27 = vadd.f32 1.0, %v593_v21  ;;  %561 = vmatmul.mubr.msk.bf16.gmra.mrb[4].mxu1 %vm243_vm2, %v209_v17 }
 0x108   :  { %564 = vmatprep.mubr.msk.bf16.mxu1 %vm607_vm1, %v606_v0 }
 0x109   :  { %v195_v28 = vmul.f32 0.5, %v189_v27  ;;  %v200_v29 = vmul.f32 %v194_v26, %v142_v46 }
 0x10b   :  { %v201_v31 = vmul.f32 %v195_v28, %v145_v52 }
 0x10d   :  { %v210_v32 = vpack.c.bf16 %v201_v31, %v200_v29 }
 0x10f   :  { %565 = vmatmul.mubr.msk.bf16.gmra.mrb[8].mxu1 %vm243_vm2, %v210_v32 }
 0x1d2   :  { %v287_v30 = vpop.f32.mrb[0].mxu1 }
 0x1d3   :  { %v310_v35 = vadd.f32 %v287_v30, %v202_v33  ;;  %v558_v36 = vpop.f32.mrb[1].mxu1 }
 0x1d4   :  { %v290_v37 = vpop.f32.mrb[2].mxu1 }
 0x1d5   :  { %316 = vst.msk [vmem:[#allocation2] sm:$0xff] %vm31_vm0, %v310_v35  ;;  %v311_v39 = vadd.f32 %v290_v37, %v203_v34  ;;  %v559_v0 = vpop.f32.mrb[3].mxu1 }
 0x1d7   :  { %317 = vst.msk [vmem:[#allocation2 + $0x8] sm:$0xff] %vm31_vm0, %v311_v39 }
 0x1da   :  { %v295_v43 = vpop.f32.mrb[4].mxu1 }
 0x1db   :  { %v312_v45 = vadd.f32 %v295_v43, %v204_v41  ;;  %v562_v46 = vpop.f32.mrb[5].mxu1 }
 0x1dc   :  { %v298_v49 = vpop.f32.mrb[6].mxu1  ;;  %v331_v50 = vld [vmem:[#allocation2] sm:$0xff] }
 0x1dd   :  { %318 = vst.msk [vmem:[#allocation2 + $0x10] sm:$0xff] %vm31_vm0, %v312_v45  ;;  %v313_v51 = vadd.f32 %v298_v49, %v205_v44  ;;  %v563_v52 = vpop.f32.mrb[7].mxu1  ;;  %v337_v53 = vadd.f32 %v331_v50, %v325_v42 }
 0x1de   :  { %v332_v54 = vld [vmem:[#allocation2 + $0x8] sm:$0xff] }
 0x1df   :  { %319 = vst.msk [vmem:[#allocation2 + $0x18] sm:$0xff] %vm31_vm0, %v313_v51  ;;  %v349_v55 = vadd.f32 %v348_v47, %v337_v53  ;;  %v338_v56 = vadd.f32 %v332_v54, %v326_v48 }
 0x1e1   :  { %v355_v58 = vsel %vm31_vm0, %v349_v55, 0.0  ;;  %v350_v59 = vadd.f32 %v348_v47, %v338_v56 }
 0x1e2   :  { %356 = vadd.xlane.f32.xlu0 %v355_v58  ;;  %v303_v3 = vpop.f32.mrb[8].mxu1 }
 0x1e3   :  { %v314_v62 = vadd.f32 %v303_v3, %v206_v57  ;;  %v566_v63 = vpop.f32.mrb[9].mxu1  ;;  %v358_v9 = vsel %vm31_vm0, %v350_v59, 0.0 }
 0x1e4   :  { %v306_v2 = vpop.f32.mrb[10].mxu1  ;;  %v333_v6 = vld [vmem:[#allocation2 + $0x10] sm:$0xff] }
 0x1e5   :  { %320 = vst.msk [vmem:[#allocation2 + $0x20] sm:$0xff] %vm31_vm0, %v314_v62  ;;  %v315_v7 = vadd.f32 %v306_v2, %v207_v61  ;;  %v567_v8 = vpop.f32.mrb[11].mxu1  ;;  %v339_v10 = vadd.f32 %v333_v6, %v327_v60  ;;  %v434_v60 = vld [vmem:[%s816_s5] sm:$0x1] }
 0x1e6   :  { %359 = vadd.xlane.f32.xlu0 %v358_v9  ;;  %v334_v11 = vld [vmem:[#allocation2 + $0x18] sm:$0xff]  ;;  %v446_v62 = vld [vmem:[%s817_s6] sm:$0x1] }
 0x1e7   :  { %321 = vst.msk [vmem:[#allocation2 + $0x28] sm:$0xff] %vm31_vm0, %v315_v7  ;;  %v351_v12 = vadd.f32 %v348_v47, %v339_v10  ;;  %v340_v13 = vadd.f32 %v334_v11, %v328_v1  ;;  %v435_v1 = vunpack.c.l.bf16 %v434_v60  ;;  %v447_v6 = vunpack.c.l.bf16 %v446_v62 }
 0x1e9   :  { %v361_v15 = vsel %vm31_vm0, %v351_v12, 0.0  ;;  %v352_v16 = vadd.f32 %v348_v47, %v340_v13  ;;  %v439_v9 = vrot.slane %v435_v1, %v716_v14 }
 0x1ea   :  { %362 = vadd.xlane.f32.xlu1 %v361_v15 }
 0x1eb   :  { %v364_v20 = vsel %vm31_vm0, %v352_v16, 0.0 }
 0x1ec   :  { %v335_v19 = vld [vmem:[#allocation2 + $0x20] sm:$0xff] }
 0x1ed   :  { %v341_v22 = vadd.f32 %v335_v19, %v329_v4 }
 0x1ee   :  { %365 = vadd.xlane.f32.xlu1 %v364_v20  ;;  %v336_v23 = vld [vmem:[#allocation2 + $0x28] sm:$0xff] }
 0x1ef   :  { %v353_v24 = vadd.f32 %v348_v47, %v341_v22  ;;  %v342_v25 = vadd.f32 %v336_v23, %v330_v18 }
 0x1f1   :  { %v367_v17 = vsel %vm31_vm0, %v353_v24, 0.0  ;;  %v354_v21 = vadd.f32 %v348_v47, %v342_v25 }
 0x1f2   :  { %368 = vadd.xlane.f32.xlu0 %v367_v17 }
 0x1f3   :  { %v370_v26 = vsel %vm31_vm0, %v354_v21, 0.0 }
 0x1f4   :  { %371 = vadd.xlane.f32.xlu1 %v370_v26 }
 0x26f   :  { %v357_v27 = vpop.xlane.xlu0 %356 }
 0x270   :  { %v374_v28 = vmul.f32 0.03125, %v357_v27 }
 0x272   :  { %v380_v29 = vsub.f32 %v349_v55, %v374_v28 }
 0x273   :  { %v360_v31 = vpop.xlane.xlu0 %359 }
 0x274   :  { %v375_v5 = vmul.f32 0.03125, %v360_v31  ;;  %v386_v32 = vmul.f32 %v380_v29, %v380_v29 }
 0x276   :  { %v748_v33 = vsub.f32 %v350_v59, %v375_v5  ;;  %v392_v30 = vsel %vm31_vm0, %v386_v32, 0.0 }
 0x277   :  { %v363_v34 = vpop.xlane.xlu1 %362  ;;  %393 = vadd.xlane.f32.xlu0 %v392_v30 }
 0x278   :  { %v376_v35 = vmul.f32 0.03125, %v363_v34  ;;  %v387_v36 = vmul.f32 %v748_v33, %v748_v33 }
 0x27a   :  { %v753_v37 = vsub.f32 %v351_v12, %v376_v35  ;;  %v395_v38 = vsel %vm31_vm0, %v387_v36, 0.0  ;;  %v451_v12 = vrot.slane %v447_v6, %v716_v14 }
 0x27b   :  { %v366_v39 = vpop.xlane.xlu1 %365  ;;  %396 = vadd.xlane.f32.xlu1 %v395_v38 }
 0x27c   :  { %v377_v0 = vmul.f32 0.03125, %v366_v39  ;;  %v388_v40 = vmul.f32 %v753_v37, %v753_v37 }
 0x27e   :  { %v758_v41 = vsub.f32 %v352_v16, %v377_v0  ;;  %v398_v42 = vsel %vm31_vm0, %v388_v40, 0.0 }
 0x27f   :  { %399 = vadd.xlane.f32.xlu0 %v398_v42  ;;  %v369_v43 = vpop.xlane.xlu0 %368 }
 0x280   :  { %v378_v44 = vmul.f32 0.03125, %v369_v43  ;;  %v389_v45 = vmul.f32 %v758_v41, %v758_v41 }
 0x281   :  { %v372_v46 = vpop.xlane.xlu1 %371 }
 0x282   :  { %v763_v47 = vsub.f32 %v353_v24, %v378_v44  ;;  %v379_v48 = vmul.f32 0.03125, %v372_v46  ;;  %v401_v49 = vsel %vm31_vm0, %v389_v45, 0.0 }
 0x283   :  { %402 = vadd.xlane.f32.xlu1 %v401_v49 }
 0x284   :  { %v766_v50 = vsub.f32 %v354_v21, %v379_v48  ;;  %v390_v51 = vmul.f32 %v763_v47, %v763_v47 }
 0x286   :  { %v404_v52 = vsel %vm31_vm0, %v390_v51, 0.0  ;;  %v391_v53 = vmul.f32 %v766_v50, %v766_v50 }
 0x287   :  { %405 = vadd.xlane.f32.xlu0 %v404_v52 }
 0x288   :  { %v407_v54 = vsel %vm31_vm0, %v391_v53, 0.0 }
 0x289   :  { %408 = vadd.xlane.f32.xlu1 %v407_v54 }
 0x304   :  { %v394_v55 = vpop.xlane.xlu0 %393 }
 0x305   :  { %v410_v56 = vmul.f32 0.03125, %v394_v55 }
 0x307   :  { %v416_v57 = vadd.f32 1e-05, %v410_v56 }
 0x308   :  { %v397_v58 = vpop.xlane.xlu1 %396 }
 0x309   :  { %594 = vrsqrt.f32 %v416_v57  ;;  %v411_v59 = vmul.f32 0.03125, %v397_v58 }
 0x30b   :  { %v417_v3 = vadd.f32 1e-05, %v411_v59 }
 0x30c   :  { %v400_v61 = vpop.xlane.xlu0 %399 }
 0x30d   :  { %596 = vrsqrt.f32 %v417_v3  ;;  %v412_v63 = vmul.f32 0.03125, %v400_v61 }
 0x30f   :  { %v418_v2 = vadd.f32 1e-05, %v412_v63 }
 0x310   :  { %v403_v7 = vpop.xlane.xlu1 %402 }
 0x311   :  { %598 = vrsqrt.f32 %v418_v2  ;;  %v413_v8 = vmul.f32 0.03125, %v403_v7 }
 0x313   :  { %v595_v10 = vpop.eup %594  ;;  %v419_v11 = vadd.f32 1e-05, %v413_v8 }
 0x314   :  { %v428_v13 = vmul.f32 %v595_v10, %v380_v29  ;;  %v406_v15 = vpop.xlane.xlu0 %405 }
 0x315   :  { %600 = vrsqrt.f32 %v419_v11  ;;  %v414_v16 = vmul.f32 0.03125, %v406_v15 }
 0x316   :  { %v440_v4 = vmul.f32 %v439_v9, %v428_v13  ;;  %v409_v18 = vpop.xlane.xlu1 %408 }
 0x317   :  { %v597_v19 = vpop.eup %596  ;;  %v420_v20 = vadd.f32 1e-05, %v414_v16  ;;  %v415_v22 = vmul.f32 0.03125, %v409_v18 }
 0x318   :  { %v452_v23 = vadd.f32 %v451_v12, %v440_v4  ;;  %v429_v24 = vmul.f32 %v597_v19, %v748_v33 }
 0x319   :  { %602 = vrsqrt.f32 %v420_v20  ;;  %v421_v25 = vadd.f32 1e-05, %v415_v22 }
 0x31a   :  { %v514_v17 = vpack.c.bf16 %v452_v23, %v452_v23  ;;  %v441_v21 = vmul.f32 %v439_v9, %v429_v24 }
 0x31b   :  { %v599_v26 = vpop.eup %598  ;;  %604 = vrsqrt.f32 %v421_v25 }
 0x31c   :  { %483 = vst.msk [vmem:[%s818_s7] sm:$0xf] %vm482_vm3, %v514_v17  ;;  %v453_v14 = vadd.f32 %v451_v12, %v441_v21  ;;  %v430_v27 = vmul.f32 %v599_v26, %v753_v37 }
 0x31e   :  { %v515_v28 = vpack.c.bf16 %v453_v14, %v453_v14  ;;  %v442_v29 = vmul.f32 %v439_v9, %v430_v27 }
 0x31f   :  { %v601_v31 = vpop.eup %600 }
 0x320   :  { %484 = vst.msk [vmem:[%s818_s7 + $0x4] sm:$0xf] %vm482_vm3, %v515_v28  ;;  %v454_v5 = vadd.f32 %v451_v12, %v442_v29  ;;  %v431_v32 = vmul.f32 %v601_v31, %v758_v41 }
 0x322   :  { %v516_v33 = vpack.c.bf16 %v454_v5, %v454_v5  ;;  %v443_v30 = vmul.f32 %v439_v9, %v431_v32 }
 0x323   :  { %v603_v34 = vpop.eup %602 }
 0x324   :  { %485 = vst.msk [vmem:[%s818_s7 + $0x8] sm:$0xf] %vm482_vm3, %v516_v33  ;;  %v455_v35 = vadd.f32 %v451_v12, %v443_v30  ;;  %v432_v36 = vmul.f32 %v603_v34, %v763_v47 }
 0x325   :  { %v605_v37 = vpop.eup %604 }
 0x326   :  { %v517_v38 = vpack.c.bf16 %v455_v35, %v455_v35  ;;  %v444_v39 = vmul.f32 %v439_v9, %v432_v36  ;;  %v433_v0 = vmul.f32 %v605_v37, %v766_v50 }
 0x328   :  { %486 = vst.msk [vmem:[%s818_s7 + $0xc] sm:$0xf] %vm482_vm3, %v517_v38  ;;  %v456_v40 = vadd.f32 %v451_v12, %v444_v39  ;;  %v445_v41 = vmul.f32 %v439_v9, %v433_v0 }
 0x32a   :  { %v518_v42 = vpack.c.bf16 %v456_v40, %v456_v40  ;;  %v457_v43 = vadd.f32 %v451_v12, %v445_v41 }
 0x32c   :  { %487 = vst.msk [vmem:[%s818_s7 + $0x10] sm:$0xf] %vm482_vm3, %v518_v42  ;;  %v519_v44 = vpack.c.bf16 %v457_v43, %v457_v43 }
 0x32e   :  { %488 = vst.msk [vmem:[%s818_s7 + $0x14] sm:$0xf] %vm482_vm3, %v519_v44 }

// kernel: mbae_encoder_forward.28
= control target key start
LH: loop header
LB: loop body
LE: loop exit
PB: predicated region body
PF: predicated region fallthrough
CT: control target
= control target key end

     0   :  { %vm30_vm0 = vcmask 261120   ;;  %v138_v62 = vlaneseq  ;;  %vm196_vm1 = vcmask 257024   ;;  %s386_s0 = inlined_call_operand.vmem [shape: bf16[64,32], index: 0, kind: input, shape index: {}]   ;;  %s387_s1 = inlined_call_operand.vmem [shape: bf16[1,32], index: 1, kind: input, shape index: {}]   ;;  %s388_s2 = inlined_call_operand.vmem [shape: bf16[1,32], index: 2, kind: input, shape index: {}]   ;;  %s389_s3 = inlined_call_operand.vmem [shape: bf16[64,32], index: 3, kind: output, shape index: {}]  }
   0x1   :  { %v226_v0 = vld [vmem:[%s386_s0] sm:$0xff]   ;;  %v241_v1 = vld [vmem:[%s386_s0 + $0x8] sm:$0xff]   ;;  %v242_v6 = vld [vmem:[%s386_s0 + $0x10] sm:$0xff]  }
   0x2   :  { %v227_v2 = vunpack.c.l.bf16 %v226_v0  ;;  %v231_v3 = vunpack.c.l.bf16 %v241_v1  ;;  %v228_v4 = vunpack.c.h.bf16 %v226_v0  ;;  %v232_v5 = vunpack.c.h.bf16 %v241_v1  ;;  %v243_v13 = vld [vmem:[%s386_s0 + $0x18] sm:$0xff]  }
   0x3   :  { %v235_v11 = vunpack.c.l.bf16 %v242_v6  ;;  %v236_v12 = vunpack.c.h.bf16 %v242_v6  ;;  %v239_v16 = vunpack.c.l.bf16 %v243_v13  ;;  %v240_v17 = vunpack.c.h.bf16 %v243_v13 }
   0x4   :  { %v31_v7 = vsel %vm30_vm0, %v227_v2, 0.0  ;;  %v37_v8 = vsel %vm30_vm0, %v231_v3, 0.0  ;;  %v34_v9 = vsel %vm30_vm0, %v228_v4, 0.0  ;;  %v40_v10 = vsel %vm30_vm0, %v232_v5, 0.0 }
   0x5   :  { %32 = vadd.xlane.f32.xlu0 %v31_v7  ;;  %38 = vadd.xlane.f32.xlu1 %v37_v8  ;;  %v43_v14 = vsel %vm30_vm0, %v235_v11, 0.0  ;;  %v46_v15 = vsel %vm30_vm0, %v236_v12, 0.0  ;;  %v49_v18 = vsel %vm30_vm0, %v239_v16, 0.0  ;;  %v52_v19 = vsel %vm30_vm0, %v240_v17, 0.0 }
   0x9   :  { %35 = vadd.xlane.f32.xlu0 %v34_v9  ;;  %41 = vadd.xlane.f32.xlu1 %v40_v10  ;;  %v150_v10 = vld [vmem:[%s388_s2] sm:$0x1] }
   0xd   :  { %44 = vadd.xlane.f32.xlu0 %v43_v14  ;;  %47 = vadd.xlane.f32.xlu1 %v46_v15 }
  0x11   :  { %50 = vadd.xlane.f32.xlu0 %v49_v18  ;;  %53 = vadd.xlane.f32.xlu1 %v52_v19 }
  0x92   :  { %v33_v20 = vpop.xlane.xlu0 %32  ;;  %v39_v21 = vpop.xlane.xlu1 %38 }
  0x93   :  { %v56_v22 = vmul.f32 0.03125, %v33_v20  ;;  %v58_v23 = vmul.f32 0.03125, %v39_v21 }
  0x95   :  { %v300_v24 = vsub.f32 %v227_v2, %v56_v22  ;;  %v302_v25 = vsub.f32 %v231_v3, %v58_v23 }
  0x96   :  { %v36_v26 = vpop.xlane.xlu0 %35  ;;  %v42_v27 = vpop.xlane.xlu1 %41 }
  0x97   :  { %v57_v28 = vmul.f32 0.03125, %v36_v26  ;;  %v59_v29 = vmul.f32 0.03125, %v42_v27  ;;  %v72_v30 = vmul.f32 %v300_v24, %v300_v24  ;;  %v74_v31 = vmul.f32 %v302_v25, %v302_v25 }
  0x99   :  { %v308_v32 = vsub.f32 %v228_v4, %v57_v28  ;;  %v310_v33 = vsub.f32 %v232_v5, %v59_v29  ;;  %v80_v34 = vsel %vm30_vm0, %v72_v30, 0.0  ;;  %v86_v37 = vsel %vm30_vm0, %v74_v31, 0.0  ;;  %v136_v5 = vld [vmem:[%s387_s1] sm:$0x1] }
  0x9a   :  { %81 = vadd.xlane.f32.xlu0 %v80_v34  ;;  %v45_v35 = vpop.xlane.xlu0 %44  ;;  %v48_v36 = vpop.xlane.xlu1 %47  ;;  %v139_v4 = vshrl.u32 %v138_v62, 7  ;;  %v137_v13 = vunpack.c.l.bf16 %v136_v5 }
  0x9b   :  { %v60_v38 = vmul.f32 0.03125, %v45_v35  ;;  %v61_v39 = vmul.f32 0.03125, %v48_v36  ;;  %v73_v40 = vmul.f32 %v308_v32, %v308_v32  ;;  %v75_v41 = vmul.f32 %v310_v33, %v310_v33 }
  0x9c   :  { %v140_v14 = vsub.s32 0, %v139_v4 }
  0x9d   :  { %v318_v42 = vsub.f32 %v235_v11, %v60_v38  ;;  %v320_v43 = vsub.f32 %v236_v12, %v61_v39  ;;  %v83_v44 = vsel %vm30_vm0, %v73_v40, 0.0  ;;  %v89_v47 = vsel %vm30_vm0, %v75_v41, 0.0 }
  0x9e   :  { %87 = vadd.xlane.f32.xlu0 %v86_v37  ;;  %84 = vadd.xlane.f32.xlu1 %v83_v44  ;;  %v51_v45 = vpop.xlane.xlu0 %50  ;;  %v54_v46 = vpop.xlane.xlu1 %53  ;;  %v141_v22 = vrot.slane %v137_v13, %v140_v14 }
  0x9f   :  { %v62_v48 = vmul.f32 0.03125, %v51_v45  ;;  %v63_v49 = vmul.f32 0.03125, %v54_v46  ;;  %v76_v50 = vmul.f32 %v318_v42, %v318_v42  ;;  %v77_v51 = vmul.f32 %v320_v43, %v320_v43 }
  0xa1   :  { %v328_v52 = vsub.f32 %v239_v16, %v62_v48  ;;  %v330_v53 = vsub.f32 %v240_v17, %v63_v49  ;;  %v92_v54 = vsel %vm30_vm0, %v76_v50, 0.0  ;;  %v95_v55 = vsel %vm30_vm0, %v77_v51, 0.0 }
  0xa2   :  { %90 = vadd.xlane.f32.xlu1 %v89_v47  ;;  %93 = vadd.xlane.f32.xlu0 %v92_v54  ;;  %v151_v17 = vunpack.c.l.bf16 %v150_v10 }
  0xa3   :  { %v78_v56 = vmul.f32 %v328_v52, %v328_v52  ;;  %v79_v57 = vmul.f32 %v330_v53, %v330_v53 }
  0xa4   :  { %v155_v28 = vrot.slane %v151_v17, %v140_v14 }
  0xa5   :  { %v98_v58 = vsel %vm30_vm0, %v78_v56, 0.0  ;;  %v101_v59 = vsel %vm30_vm0, %v79_v57, 0.0 }
  0xa6   :  { %96 = vadd.xlane.f32.xlu1 %v95_v55  ;;  %99 = vadd.xlane.f32.xlu0 %v98_v58 }
  0xaa   :  { %102 = vadd.xlane.f32.xlu1 %v101_v59 }
 0x127   :  { %v82_v60 = vpop.xlane.xlu0 %81 }
 0x128   :  { %v104_v61 = vmul.f32 0.03125, %v82_v60 }
 0x12a   :  { %v112_v63 = vadd.f32 1e-05, %v104_v61 }
 0x12b   :  { %v85_v0 = vpop.xlane.xlu1 %84  ;;  %v88_v1 = vpop.xlane.xlu0 %87 }
 0x12c   :  { %244 = vrsqrt.f32 %v112_v63  ;;  %v105_v2 = vmul.f32 0.03125, %v85_v0  ;;  %v106_v3 = vmul.f32 0.03125, %v88_v1 }
 0x12e   :  { %v113_v6 = vadd.f32 1e-05, %v105_v2  ;;  %v114_v7 = vadd.f32 1e-05, %v106_v3 }
 0x12f   :  { %v91_v8 = vpop.xlane.xlu1 %90  ;;  %v94_v9 = vpop.xlane.xlu0 %93 }
 0x130   :  { %246 = vrsqrt.f32 %v113_v6  ;;  %v107_v11 = vmul.f32 0.03125, %v91_v8  ;;  %v108_v12 = vmul.f32 0.03125, %v94_v9 }
 0x131   :  { %248 = vrsqrt.f32 %v114_v7 }
 0x132   :  { %v115_v15 = vadd.f32 1e-05, %v107_v11  ;;  %v116_v16 = vadd.f32 1e-05, %v108_v12 }
 0x133   :  { %v97_v18 = vpop.xlane.xlu1 %96  ;;  %v100_v19 = vpop.xlane.xlu0 %99 }
 0x134   :  { %250 = vrsqrt.f32 %v115_v15  ;;  %v109_v20 = vmul.f32 0.03125, %v97_v18  ;;  %v110_v21 = vmul.f32 0.03125, %v100_v19 }
 0x135   :  { %252 = vrsqrt.f32 %v116_v16 }
 0x136   :  { %v245_v23 = vpop.eup %244  ;;  %v117_v26 = vadd.f32 1e-05, %v109_v20  ;;  %v118_v27 = vadd.f32 1e-05, %v110_v21 }
 0x137   :  { %v128_v29 = vmul.f32 %v245_v23, %v300_v24  ;;  %v103_v30 = vpop.xlane.xlu1 %102 }
 0x138   :  { %254 = vrsqrt.f32 %v117_v26  ;;  %v111_v31 = vmul.f32 0.03125, %v103_v30 }
 0x139   :  { %v142_v34 = vmul.f32 %v141_v22, %v128_v29  ;;  %256 = vrsqrt.f32 %v118_v27 }
 0x13a   :  { %v247_v35 = vpop.eup %246  ;;  %v119_v36 = vadd.f32 1e-05, %v111_v31 }
 0x13b   :  { %v249_v37 = vpop.eup %248  ;;  %v156_v38 = vadd.f32 %v155_v28, %v142_v34  ;;  %v129_v39 = vmul.f32 %v247_v35, %v308_v32 }
 0x13c   :  { %v130_v40 = vmul.f32 %v249_v37, %v302_v25  ;;  %258 = vrsqrt.f32 %v119_v36 }
 0x13d   :  { %v217_v41 = vpack.c.bf16 %v156_v38, %v156_v38  ;;  %v143_v44 = vmul.f32 %v141_v22, %v129_v39 }
 0x13e   :  { %v251_v45 = vpop.eup %250  ;;  %v144_v46 = vmul.f32 %v141_v22, %v130_v40 }
 0x13f   :  { %v253_v24 = vpop.eup %252  ;;  %197 = vst.msk [vmem:[%s389_s3] sm:$0xf] %vm196_vm1, %v217_v41  ;;  %v157_v47 = vadd.f32 %v155_v28, %v143_v44  ;;  %v131_v48 = vmul.f32 %v251_v45, %v310_v33 }
 0x140   :  { %v158_v49 = vadd.f32 %v155_v28, %v144_v46  ;;  %v132_v32 = vmul.f32 %v253_v24, %v318_v42 }
 0x141   :  { %v218_v50 = vpack.c.bf16 %v157_v47, %v157_v47  ;;  %v145_v51 = vmul.f32 %v141_v22, %v131_v48 }
 0x142   :  { %v255_v25 = vpop.eup %254  ;;  %v219_v54 = vpack.c.bf16 %v158_v49, %v158_v49  ;;  %v146_v55 = vmul.f32 %v141_v22, %v132_v32 }
 0x143   :  { %v257_v56 = vpop.eup %256  ;;  %198 = vst.msk [vmem:[%s389_s3 + $0x4] sm:$0xf] %vm196_vm1, %v218_v50  ;;  %v159_v57 = vadd.f32 %v155_v28, %v145_v51  ;;  %v133_v58 = vmul.f32 %v255_v25, %v320_v43 }
 0x144   :  { %199 = vst.msk [vmem:[%s389_s3 + $0x8] sm:$0xf] %vm196_vm1, %v219_v54  ;;  %v160_v33 = vadd.f32 %v155_v28, %v146_v55  ;;  %v134_v42 = vmul.f32 %v257_v56, %v328_v52 }
 0x145   :  { %v220_v59 = vpack.c.bf16 %v159_v57, %v159_v57  ;;  %v147_v60 = vmul.f32 %v141_v22, %v133_v58 }
 0x146   :  { %v259_v61 = vpop.eup %258  ;;  %v221_v62 = vpack.c.bf16 %v160_v33, %v160_v33  ;;  %v148_v63 = vmul.f32 %v141_v22, %v134_v42 }
 0x147   :  { %200 = vst.msk [vmem:[%s389_s3 + $0xc] sm:$0xf] %vm196_vm1, %v220_v59  ;;  %v161_v0 = vadd.f32 %v155_v28, %v147_v60  ;;  %v135_v43 = vmul.f32 %v259_v61, %v330_v53 }
 0x148   :  { %201 = vst.msk [vmem:[%s389_s3 + $0x10] sm:$0xf] %vm196_vm1, %v221_v62  ;;  %v162_v1 = vadd.f32 %v155_v28, %v148_v63 }
 0x149   :  { %v222_v52 = vpack.c.bf16 %v161_v0, %v161_v0  ;;  %v149_v2 = vmul.f32 %v141_v22, %v135_v43 }
 0x14a   :  { %v223_v3 = vpack.c.bf16 %v162_v1, %v162_v1 }
 0x14b   :  { %202 = vst.msk [vmem:[%s389_s3 + $0x14] sm:$0xf] %vm196_vm1, %v222_v52  ;;  %v163_v4 = vadd.f32 %v155_v28, %v149_v2 }
 0x14c   :  { %203 = vst.msk [vmem:[%s389_s3 + $0x18] sm:$0xf] %vm196_vm1, %v223_v3 }
 0x14d   :  { %v224_v53 = vpack.c.bf16 %v163_v4, %v163_v4 }
 0x14f   :  { %204 = vst.msk [vmem:[%s389_s3 + $0x1c] sm:$0xf] %vm196_vm1, %v224_v53 }

// kernel: mbae_encoder_forward.29
= control target key start
LH: loop header
LB: loop body
LE: loop exit
PB: predicated region body
PF: predicated region fallthrough
CT: control target
= control target key end

     0   :  { %s464_s15 = smov 0   ;;  %s506_s0 = inlined_call_operand.vmem [shape: bf16[2,28,32], index: 0, kind: input, shape index: {}]   ;;  %s507_s1 = inlined_call_operand.vmem [shape: bf16[28,32], index: 1, kind: input, shape index: {}]   ;;  %s508_s2 = inlined_call_operand.vmem [shape: bf16[32,16], index: 2, kind: input, shape index: {}]   ;;  %s509_s3 = inlined_call_operand.vmem [shape: bf16[1,16], index: 3, kind: input, shape index: {}]   ;;  %s510_s4 = inlined_call_operand.vmem [shape: bf16[2,28,16], index: 4, kind: output, shape index: {}]  }
   0x1 LB: > { %s376_s16 = sadd.s32 4294967295, %s437_s15   ;;  %p380_p0 = scmp.ge.s32.totalorder %s437_s15, 1  ;;  %s437_s15 = sphi %s464_s15, %s14_s15  }
   0x2   : > { %p162_p1 = scmp.lt.s32.totalorder %s437_s15, 3 }
   0x4   : > { %p163_p2 = pnand %p380_p0, %p162_p1 }
   0x5   : > { %v429_v0 = vld [vmem:[%s508_s2] sm:$0xff] (!%p163_p2)   ;;  %p188_p3 = scmp.lt.s32.totalorder (!%p163_p2), %s376_s16, 1  ;;  %v430_v1 = vld [vmem:[%s508_s2 + $0x8] sm:$0xff] (!%p163_p2)   ;;  %vm243_vm0 = vcmask (!%p163_p2), 261120   ;;  %v227_v22 = vlaneseq (!%p163_p2)  ;;  %vm315_vm1 = vcmask (!%p163_p2), 125952   ;;  %vm319_vm2 = vcmask (!%p163_p2), 123904  }
   0x6   : > { %166 = sbr.rel (%p163_p2) target bundleno = 244 (0xf4), region = 36  ;;  %413 = vmatprep.subr.bf16.mxu0 (!%p163_p2), %v429_v0  ;;  %v406_v2 = vld [vmem:[%s507_s1] sm:$0xff] (!%p163_p2)   ;;  %v209_v3 = vld [vmem:[%s507_s1 + $0x8] sm:$0xf] (!%p163_p2)  ;;  %v210_v4 = vld [vmem:[%s507_s1 + $0xc] sm:$0x3] (!%p163_p2) }
   0x7   : > { %414 = vmatpush3.bf16.msra.mxu0 (!%p163_p2), %v429_v0  ;;  %v407_v5 = vunpack.c.l.bf16 (!%p163_p2), %v406_v2  ;;  %v408_v6 = vunpack.c.h.bf16 (!%p163_p2), %v406_v2  ;;  %v213_v7 = vunpack.c.l.bf16 (!%p163_p2), %v209_v3  ;;  %v214_v8 = vunpack.c.l.bf16 (!%p163_p2), %v210_v4  ;;  %v225_v24 = vld [vmem:[%s509_s3] sm:$0x1] (!%p163_p2) }
   0x8   : > { %415 = vmatprep.subr.bf16.mxu0 (!%p163_p2), %v430_v1  ;;  %v228_v23 = vshrl.u32 (!%p163_p2), %v227_v22, 7  ;;  %v226_v25 = vunpack.c.l.bf16 (!%p163_p2), %v225_v24 }
   0xa   : > { %v229_v26 = vsub.s32 (!%p163_p2), 0, %v228_v23 }
   0xb   : > { %416 = vmatpush3.bf16.msra.mxu0 (!%p163_p2), %v430_v1 }
   0xc   : > { %v230_v27 = vrot.slane (!%p163_p2), %v226_v25, %v229_v26 }
   0xd   : > { %s512_s16 = smov (!%p188_p3, %s376_s16), 1 }
   0xe   : > { %s395_s27 = sshll.u32 %s512_s16, 4 }
   0xf   : > { %s192_s30 = scalar_lea.vmem %s506_s0, %s395_s27  ;;  %s197_s9 = scalar_lea.vmem %s510_s4, %s395_s27 }
  0x10   : > { %v402_v9 = vld [vmem:[%s192_s30] sm:$0xff]   ;;  %v201_v10 = vld [vmem:[%s192_s30 + $0x8] sm:$0xf]  ;;  %v202_v11 = vld [vmem:[%s192_s30 + $0xc] sm:$0x3] }
  0x11   : > { %v403_v12 = vunpack.c.l.bf16 %v402_v9  ;;  %v404_v13 = vunpack.c.h.bf16 %v402_v9  ;;  %v205_v14 = vunpack.c.l.bf16 %v201_v10  ;;  %v206_v15 = vunpack.c.l.bf16 %v202_v11 }
  0x13   : > { %v215_v16 = vadd.f32 %v407_v5, %v403_v12  ;;  %v216_v17 = vadd.f32 %v408_v6, %v404_v13  ;;  %v217_v18 = vadd.f32 %v213_v7, %v205_v14  ;;  %v218_v19 = vadd.f32 %v214_v8, %v206_v15 }
  0x15   : > { %v219_v20 = vpack.c.bf16 %v216_v17, %v215_v16  ;;  %v220_v21 = vpack.c.bf16 %v218_v19, %v217_v18 }
  0x17   : > { %417 = vmatprep.mubr.msk.bf16.mxu0 %vm243_vm0, %v219_v20 }
  0x18   : > { %418 = vmatmul.mubr.msk.bf16.vlgmr.msra.gmra.mrb[0].mxu0 %vm243_vm0, %v220_v21 }
  0xeb   : > { %v419_v28 = vpop.f32.mrb[0].mxu0 }
  0xec   : > { %v293_v29 = vadd.f32 %v419_v28, %v230_v27  ;;  %v284_v30 = vpop.f32.mrb[1].mxu0 }
  0xed   : > { %v285_v31 = vadd.f32 %v284_v30, %v230_v27  ;;  %v420_v32 = vpop.f32.mrb[2].mxu0 }
  0xee   : > { %v399_v33 = vpack.c.bf16 %v293_v29, %v293_v29  ;;  %v296_v34 = vadd.f32 %v420_v32, %v230_v27  ;;  %v287_v35 = vpop.f32.mrb[3].mxu0 }
  0xef   : > { %v397_v36 = vpack.c.bf16 %v285_v31, %v285_v31  ;;  %v288_v37 = vadd.f32 %v287_v35, %v230_v27 }
  0xf0   : > { %318 = vst.msk [vmem:[%s197_s9 + $0x8] sm:$0xf] %vm315_vm1, %v399_v33  ;;  %v400_v38 = vpack.c.bf16 %v296_v34, %v296_v34 }
  0xf1   : > { %316 = vst.msk [vmem:[%s197_s9] sm:$0xf] %vm315_vm1, %v397_v36  ;;  %v398_v39 = vpack.c.bf16 %v288_v37, %v288_v37 }
  0xf2   : > { %320 = vst.msk [vmem:[%s197_s9 + $0xc] sm:$0x3] %vm319_vm2, %v400_v38 }
  0xf3   : > { %317 = vst.msk [vmem:[%s197_s9 + $0x4] sm:$0xf] %vm315_vm1, %v398_v39 }
  0xf4 PF: > { %s14_s15 = sadd.s32 1, %s437_s15  }
  0xf5   : > { %p11_p4 = scmp.ge.s32.totalorder %s14_s15, 4  }
  0xf7   :  { %13 = sbr.rel (!%p11_p4) target bundleno = 1 (0x1), region = 66 }

</bundles_post_ra>
